<compile_context>
chip_gen: v6e
topology: v6e:2x2x1
jax: 0.10.0
libtpu: 0.0.40
codegen_flags: <defaults>
</compile_context>

<pallas_src>
import functools

import jax
import jax.numpy as jnp
from jax.experimental import pallas as pl
from jax.experimental.pallas import tpu as pltpu

HIDDEN = 128  # forced by the original forward(): h_0/c_0 are built with size 128
FC_PAD = 128  # lane-dense padded output width of the fused FC


def _lstm_kernel(x_ref,      # (1, tchunk*B, D)  f32   time-major input chunk
                 wih1_ref,   # (D, 4H)           f32
                 b1_ref,     # (1, 4H)           f32   b_ih1 + b_hh1
                 whh1_ref,   # (H, 4H)           bf16
                 w2_ref,     # (2H, 4H)          bf16  [W_ih2 ; W_hh2]
                 b2_ref,     # (1, 4H)           f32   b_ih2 + b_hh2
                 wfc_ref,    # (H, FC_PAD)       f32   zero-padded FC weight
                 bfc_ref,    # (1, FC_PAD)       f32   zero-padded FC bias
                 out_ref,    # (B, FC_PAD)       f32   padded logits
                 h1, c1, h2, c2,                 # VMEM scratch (B, H) f32
                 *, batch, tchunk, seq_len):
    t = pl.program_id(0)
    n = pl.num_programs(0)
    B = batch
    H = h1.shape[-1]

    @pl.when(t == 0)
    def _():
        h1[...] = jnp.zeros_like(h1)
        c1[...] = jnp.zeros_like(c1)
        h2[...] = jnp.zeros_like(h2)
        c2[...] = jnp.zeros_like(c2)

    # Layer-1 input projection for the whole chunk in one MXU pass (no time dep).
    gx = jnp.dot(x_ref[0], wih1_ref[...],
                 preferred_element_type=jnp.float32) + b1_ref[...]   # (tchunk*B, 4H)

    whh1 = whh1_ref[...]
    w2 = w2_ref[...]
    b2b = jnp.broadcast_to(b2_ref[...], (B, 4 * H))   # hoisted out of the unroll

    h1v, c1v = h1[...], c1[...]
    h2v, c2v = h2[...], c2[...]

    needs_mask = (seq_len % tchunk) != 0  # static

    def activate(g, c):
        i = jax.nn.sigmoid(g[:, 0 * H:1 * H])
        f = jax.nn.sigmoid(g[:, 1 * H:2 * H])
        gg = jnp.tanh(g[:, 2 * H:3 * H])
        o = jax.nn.sigmoid(g[:, 3 * H:4 * H])
        c_new = f * c + i * gg
        h_new = o * jnp.tanh(c_new)
        return h_new, c_new

    # Static unroll over the timestep chunk (tchunk is a small static int).
    for s in range(tchunk):
        # layer 1: x-projection precomputed above; only h @ Whh1 stays in-loop.
        g1 = gx[s * B:(s + 1) * B, :] + jnp.dot(
            h1v.astype(jnp.bfloat16), whh1, preferred_element_type=jnp.float32)
        h1n, c1n = activate(g1, c1v)

        # layer 2: single fused [h1, h2] @ [Wih2; Whh2] dot (K = 2H = 256).
        # (dropout between layers is identity at inference)
        xh = jnp.concatenate([h1n, h2v], axis=-1).astype(jnp.bfloat16)
        g2 = jnp.dot(xh, w2, preferred_element_type=jnp.float32) + b2b
        h2n, c2n = activate(g2, c2v)

        if needs_mask:
            valid = (t * tchunk + s) < seq_len   # freeze state on padded steps
            h1v = jnp.where(valid, h1n, h1v)
            c1v = jnp.where(valid, c1n, c1v)
            h2v = jnp.where(valid, h2n, h2v)
            c2v = jnp.where(valid, c2n, c2v)
        else:
            h1v, c1v, h2v, c2v = h1n, c1n, h2n, c2n

    h1[...] = h1v
    c1[...] = c1v
    h2[...] = h2v
    c2[...] = c2v

    # Fused final FC (padded to 128 lanes -> unmasked lane-dense store).
    @pl.when(t == n - 1)
    def _():
        out_ref[...] = jnp.dot(h2v, wfc_ref[...],
                               preferred_element_type=jnp.float32) + bfc_ref[...]


def lstm_fc_forward(x, params, tchunk=16):
    """x: (B, T, D_in) float32.  Returns (B, output_size) float32."""
    B, T, D = x.shape
    H = HIDDEN
    out_size = params["w_fc"].shape[0]

    # Chunk the time axis; pad to a multiple of tchunk (masked in-kernel).
    tchunk = max(1, min(tchunk, T))
    n_chunks = -(-T // tchunk)
    T_pad = n_chunks * tchunk

    # Time-major, padded, chunk-flattened input stream: (n_chunks, tchunk*B, D).
    x_tm = jnp.transpose(x, (1, 0, 2))                       # (T, B, D)
    if T_pad != T:
        x_tm = jnp.pad(x_tm, ((0, T_pad - T), (0, 0), (0, 0)))
    x_chunks = x_tm.reshape(n_chunks, tchunk * B, D)

    # --- weight prep (wrapper side) ---
    wih1_t = params["w_ih1"].T.astype(jnp.float32)           # (D, 4H)  f32
    b1 = (params["b_ih1"] + params["b_hh1"])[None]           # (1, 4H)  f32
    whh1_t = params["w_hh1"].T.astype(jnp.bfloat16)          # (H, 4H)  bf16
    w2_cat = jnp.concatenate(
        [params["w_ih2"].T, params["w_hh2"].T], axis=0
    ).astype(jnp.bfloat16)                                   # (2H, 4H) bf16
    b2 = (params["b_ih2"] + params["b_hh2"])[None]           # (1, 4H)  f32

    # FC fused into the kernel epilogue; pad the output dim to a lane-dense 128.
    wfc_pad = jnp.zeros((H, FC_PAD), jnp.float32).at[:, :out_size].set(
        params["w_fc"].T.astype(jnp.float32))
    bfc_pad = jnp.zeros((1, FC_PAD), jnp.float32).at[:, :out_size].set(
        params["b_fc"].astype(jnp.float32))

    kernel = functools.partial(_lstm_kernel, batch=B, tchunk=tchunk, seq_len=T)
    full = lambda shape: pl.BlockSpec(shape, lambda t: (0,) * len(shape))

    logits_pad = pl.pallas_call(
        kernel,
        out_shape=jax.ShapeDtypeStruct((B, FC_PAD), jnp.float32),
        grid_spec=pltpu.PrefetchScalarGridSpec(
            num_scalar_prefetch=0,
            grid=(n_chunks,),
            in_specs=[
                pl.BlockSpec((1, tchunk * B, D), lambda t: (t, 0, 0)),
                full((D, 4 * H)),
                full((1, 4 * H)),
                full((H, 4 * H)),
                full((2 * H, 4 * H)),
                full((1, 4 * H)),
                full((H, FC_PAD)),
                full((1, FC_PAD)),
            ],
            out_specs=pl.BlockSpec((B, FC_PAD), lambda t: (0, 0)),
            scratch_shapes=[pltpu.VMEM((B, H), jnp.float32)] * 4,  # h1,c1,h2,c2
        ),
        compiler_params=pltpu.CompilerParams(
            dimension_semantics=("arbitrary",)),  # time axis is a recurrence
    )(x_chunks, wih1_t, b1, whh1_t, w2_cat, b2, wfc_pad, bfc_pad)

    return logits_pad[:, :out_size]


def init_params(key, input_size, hidden_size, output_size):
    """Deterministic PyTorch-style init: U(-1/sqrt(H), 1/sqrt(H))."""
    ks = jax.random.split(key, 11)
    bound = 1.0 / jnp.sqrt(hidden_size)
    u = lambda k, shape: jax.random.uniform(k, shape, jnp.float32, -bound, bound)
    H = hidden_size
    return {
        "w_ih1": u(ks[0], (4 * H, input_size)),
        "w_hh1": u(ks[1], (4 * H, H)),
        "b_ih1": u(ks[2], (4 * H,)),
        "b_hh1": u(ks[3], (4 * H,)),
        "w_ih2": u(ks[4], (4 * H, H)),
        "w_hh2": u(ks[5], (4 * H, H)),
        "b_ih2": u(ks[6], (4 * H,)),
        "b_hh2": u(ks[7], (4 * H,)),
        "w_fc": u(ks[8], (output_size, H)),
        "b_fc": u(ks[9], (output_size,)),
    }


def reference_forward(x, params):
    """Pure-JAX f32 reference of the PyTorch forward (eval mode)."""
    B, T, D = x.shape
    H = HIDDEN

    def cell(x_in, h, c, wih, whh, b_ih, b_hh):
        g = x_in @ wih.T + h @ whh.T + b_ih + b_hh
        i = jax.nn.sigmoid(g[:, 0 * H:1 * H])
        f = jax.nn.sigmoid(g[:, 1 * H:2 * H])
        gg = jnp.tanh(g[:, 2 * H:3 * H])
        o = jax.nn.sigmoid(g[:, 3 * H:4 * H])
        c = f * c + i * gg
        h = o * jnp.tanh(c)
        return h, c

    h1 = c1 = h2 = c2 = jnp.zeros((B, H), jnp.float32)
    for t in range(T):
        h1, c1 = cell(x[:, t, :], h1, c1,
                      params["w_ih1"], params["w_hh1"],
                      params["b_ih1"], params["b_hh1"])
        h2, c2 = cell(h1, h2, c2,
                      params["w_ih2"], params["w_hh2"],
                      params["b_ih2"], params["b_hh2"])
    return h2 @ params["w_fc"].T + params["b_fc"]


if __name__ == "__main__":
    key = jax.random.PRNGKey(0)
    k_x, k_p = jax.random.split(key)

    B, T, D_in, out_size = 2, 8, 16, 10
    x = jax.random.normal(k_x, (B, T, D_in), jnp.float32)
    params = init_params(k_p, D_in, HIDDEN, out_size)

    out = lstm_fc_forward(x, params)
    out = jax.block_until_ready(out)

    ref = reference_forward(x, params)
    assert out.shape == (B, out_size)
    # bf16 matmul operands in the recurrence -> looser tolerance than pure f32
    assert jnp.allclose(out, ref, atol=2e-2, rtol=2e-2), "mismatch vs JAX reference"

    print("KERNEL_OK")
</pallas_src>

<mosaic_0001>
module attributes {stable_mosaic.version = 11 : i64} {
  func.func @_lstm_kernel(%arg0: i32, %arg1: memref<1x16x16xf32, #tpu.memory_space<vmem>>, %arg2: memref<16x512xf32, #tpu.memory_space<vmem>>, %arg3: memref<1x512xf32, #tpu.memory_space<vmem>>, %arg4: memref<128x512xbf16, #tpu.memory_space<vmem>>, %arg5: memref<256x512xbf16, #tpu.memory_space<vmem>>, %arg6: memref<1x512xf32, #tpu.memory_space<vmem>>, %arg7: memref<128x128xf32, #tpu.memory_space<vmem>>, %arg8: memref<1x128xf32, #tpu.memory_space<vmem>>, %arg9: memref<2x128xf32, #tpu.memory_space<vmem>>, %arg10: memref<2x128xf32, #tpu.memory_space<vmem>>, %arg11: memref<2x128xf32, #tpu.memory_space<vmem>>, %arg12: memref<2x128xf32, #tpu.memory_space<vmem>>, %arg13: memref<2x128xf32, #tpu.memory_space<vmem>>) attributes {dimension_semantics = [#tpu.dimension_semantics<arbitrary>], iteration_bounds = array<i64: 1>, scalar_prefetch = 0 : i64, scratch_operands = 4 : i64, tpu.core_type = #tpu.core_type<tc>, window_params = [{transform_indices = @transform_0, window_bounds = array<i64: 1, 16, 16>}, {pipeline_mode = #tpu.pipeline_mode<synchronous>, transform_indices = @transform_1, window_bounds = array<i64: 16, 512>}, {pipeline_mode = #tpu.pipeline_mode<synchronous>, transform_indices = @transform_2, window_bounds = array<i64: 1, 512>}, {pipeline_mode = #tpu.pipeline_mode<synchronous>, transform_indices = @transform_3, window_bounds = array<i64: 128, 512>}, {pipeline_mode = #tpu.pipeline_mode<synchronous>, transform_indices = @transform_4, window_bounds = array<i64: 256, 512>}, {pipeline_mode = #tpu.pipeline_mode<synchronous>, transform_indices = @transform_5, window_bounds = array<i64: 1, 512>}, {pipeline_mode = #tpu.pipeline_mode<synchronous>, transform_indices = @transform_6, window_bounds = array<i64: 128, 128>}, {pipeline_mode = #tpu.pipeline_mode<synchronous>, transform_indices = @transform_7, window_bounds = array<i64: 1, 128>}, {pipeline_mode = #tpu.pipeline_mode<synchronous>, transform_indices = @transform_8, window_bounds = array<i64: 2, 128>}]} {
    %c0_i32 = arith.constant 0 : i32
    %0 = arith.cmpi eq, %arg0, %c0_i32 : i32
    %1 = arith.extui %0 : i1 to i32
    %c0_i32_0 = arith.constant 0 : i32
    %2 = arith.cmpi ne, %1, %c0_i32_0 : i32
    scf.if %2 {
      %cst_95 = arith.constant 0.000000e+00 : f32
      %490 = vector.broadcast %cst_95 : f32 to vector<2x128xf32>
      %c0_96 = arith.constant 0 : index
      %c0_97 = arith.constant 0 : index
      %491 = vector.load %arg10[%c0_96, %c0_97] : memref<2x128xf32, #tpu.memory_space<vmem>>, vector<2x128xf32>
      tpu.vector_store %arg10[%c0_96, %c0_97], %490 {strides = array<i32>} : memref<2x128xf32, #tpu.memory_space<vmem>>, vector<2x128xf32>,
      %cst_98 = arith.constant 0.000000e+00 : f32
      %492 = vector.broadcast %cst_98 : f32 to vector<2x128xf32>
      %c0_99 = arith.constant 0 : index
      %c0_100 = arith.constant 0 : index
      %493 = vector.load %arg11[%c0_99, %c0_100] : memref<2x128xf32, #tpu.memory_space<vmem>>, vector<2x128xf32>
      tpu.vector_store %arg11[%c0_99, %c0_100], %492 {strides = array<i32>} : memref<2x128xf32, #tpu.memory_space<vmem>>, vector<2x128xf32>,
      %cst_101 = arith.constant 0.000000e+00 : f32
      %494 = vector.broadcast %cst_101 : f32 to vector<2x128xf32>
      %c0_102 = arith.constant 0 : index
      %c0_103 = arith.constant 0 : index
      %495 = vector.load %arg12[%c0_102, %c0_103] : memref<2x128xf32, #tpu.memory_space<vmem>>, vector<2x128xf32>
      tpu.vector_store %arg12[%c0_102, %c0_103], %494 {strides = array<i32>} : memref<2x128xf32, #tpu.memory_space<vmem>>, vector<2x128xf32>,
      %cst_104 = arith.constant 0.000000e+00 : f32
      %496 = vector.broadcast %cst_104 : f32 to vector<2x128xf32>
      %c0_105 = arith.constant 0 : index
      %c0_106 = arith.constant 0 : index
      %497 = vector.load %arg13[%c0_105, %c0_106] : memref<2x128xf32, #tpu.memory_space<vmem>>, vector<2x128xf32>
      tpu.vector_store %arg13[%c0_105, %c0_106], %496 {strides = array<i32>} : memref<2x128xf32, #tpu.memory_space<vmem>>, vector<2x128xf32>,
    } else {
    }
    %c0 = arith.constant 0 : index
    %c0_1 = arith.constant 0 : index
    %c0_2 = arith.constant 0 : index
    %3 = vector.load %arg1[%c0, %c0_1, %c0_2] : memref<1x16x16xf32, #tpu.memory_space<vmem>>, vector<1x16x16xf32>
    %4 = vector.shape_cast %3 : vector<1x16x16xf32> to vector<16x16xf32>
    %c0_3 = arith.constant 0 : index
    %c0_4 = arith.constant 0 : index
    %5 = vector.load %arg2[%c0_3, %c0_4] : memref<16x512xf32, #tpu.memory_space<vmem>>, vector<16x512xf32>
    %cst = arith.constant dense<0.000000e+00> : vector<16x512xf32>
    %6 = tpu.matmul %4, %5, %cst {dimension_numbers = #tpu.dot_dimension_numbers<[1], [0], [0], [1], [0, 0, 1, 1], [], []>} : vector<16x16xf32>, vector<16x512xf32>, vector<16x512xf32> -> vector<16x512xf32>
    %c0_5 = arith.constant 0 : index
    %c0_6 = arith.constant 0 : index
    %7 = vector.load %arg3[%c0_5, %c0_6] : memref<1x512xf32, #tpu.memory_space<vmem>>, vector<1x512xf32>
    %8 = vector.broadcast %7 : vector<1x512xf32> to vector<16x512xf32>
    %9 = arith.addf %6, %8 : vector<16x512xf32>
    %c0_7 = arith.constant 0 : index
    %c0_8 = arith.constant 0 : index
    %10 = vector.load %arg4[%c0_7, %c0_8] : memref<128x512xbf16, #tpu.memory_space<vmem>>, vector<128x512xbf16>
    %c0_9 = arith.constant 0 : index
    %c0_10 = arith.constant 0 : index
    %11 = vector.load %arg5[%c0_9, %c0_10] : memref<256x512xbf16, #tpu.memory_space<vmem>>, vector<256x512xbf16>
    %c0_11 = arith.constant 0 : index
    %c0_12 = arith.constant 0 : index
    %12 = vector.load %arg6[%c0_11, %c0_12] : memref<1x512xf32, #tpu.memory_space<vmem>>, vector<1x512xf32>
    %13 = vector.shape_cast %12 : vector<1x512xf32> to vector<1x512xf32>
    %14 = vector.broadcast %13 : vector<1x512xf32> to vector<2x512xf32>
    %c0_13 = arith.constant 0 : index
    %c0_14 = arith.constant 0 : index
    %15 = vector.load %arg10[%c0_13, %c0_14] : memref<2x128xf32, #tpu.memory_space<vmem>>, vector<2x128xf32>
    %c0_15 = arith.constant 0 : index
    %c0_16 = arith.constant 0 : index
    %16 = vector.load %arg11[%c0_15, %c0_16] : memref<2x128xf32, #tpu.memory_space<vmem>>, vector<2x128xf32>
    %c0_17 = arith.constant 0 : index
    %c0_18 = arith.constant 0 : index
    %17 = vector.load %arg12[%c0_17, %c0_18] : memref<2x128xf32, #tpu.memory_space<vmem>>, vector<2x128xf32>
    %c0_19 = arith.constant 0 : index
    %c0_20 = arith.constant 0 : index
    %18 = vector.load %arg13[%c0_19, %c0_20] : memref<2x128xf32, #tpu.memory_space<vmem>>, vector<2x128xf32>
    %19 = vector.extract_strided_slice %9 {offsets = [0, 0], sizes = [2, 512], strides = [1, 1]} : vector<16x512xf32> to vector<2x512xf32>
    %20 = arith.truncf %15 : vector<2x128xf32> to vector<2x128xbf16>
    %cst_21 = arith.constant dense<0.000000e+00> : vector<2x512xf32>
    %21 = tpu.matmul %20, %10, %cst_21 {dimension_numbers = #tpu.dot_dimension_numbers<[1], [0], [0], [1], [0, 0, 1, 1], [], []>} : vector<2x128xbf16>, vector<128x512xbf16>, vector<2x512xf32> -> vector<2x512xf32>
    %22 = arith.addf %19, %21 : vector<2x512xf32>
    %23 = vector.extract_strided_slice %22 {offsets = [0, 0], sizes = [2, 128], strides = [1, 1]} : vector<2x512xf32> to vector<2x128xf32>
    %24 = arith.negf %23 : vector<2x128xf32>
    %25 = math.exp %24 : vector<2x128xf32>
    %cst_22 = arith.constant 1.000000e+00 : f32
    %26 = vector.broadcast %cst_22 : f32 to vector<2x128xf32>
    %27 = arith.addf %26, %25 : vector<2x128xf32>
    %28 = arith.divf %26, %27 : vector<2x128xf32>
    %29 = vector.extract_strided_slice %22 {offsets = [0, 128], sizes = [2, 128], strides = [1, 1]} : vector<2x512xf32> to vector<2x128xf32>
    %30 = arith.negf %29 : vector<2x128xf32>
    %31 = math.exp %30 : vector<2x128xf32>
    %cst_23 = arith.constant 1.000000e+00 : f32
    %32 = vector.broadcast %cst_23 : f32 to vector<2x128xf32>
    %33 = arith.addf %32, %31 : vector<2x128xf32>
    %34 = arith.divf %32, %33 : vector<2x128xf32>
    %35 = vector.extract_strided_slice %22 {offsets = [0, 256], sizes = [2, 128], strides = [1, 1]} : vector<2x512xf32> to vector<2x128xf32>
    %36 = math.tanh %35 : vector<2x128xf32>
    %37 = vector.extract_strided_slice %22 {offsets = [0, 384], sizes = [2, 128], strides = [1, 1]} : vector<2x512xf32> to vector<2x128xf32>
    %38 = arith.negf %37 : vector<2x128xf32>
    %39 = math.exp %38 : vector<2x128xf32>
    %cst_24 = arith.constant 1.000000e+00 : f32
    %40 = vector.broadcast %cst_24 : f32 to vector<2x128xf32>
    %41 = arith.addf %40, %39 : vector<2x128xf32>
    %42 = arith.divf %40, %41 : vector<2x128xf32>
    %43 = arith.mulf %34, %16 : vector<2x128xf32>
    %44 = arith.mulf %28, %36 : vector<2x128xf32>
    %45 = arith.addf %43, %44 : vector<2x128xf32>
    %46 = math.tanh %45 : vector<2x128xf32>
    %47 = arith.mulf %42, %46 : vector<2x128xf32>
    %48 = tpu.concatenate %47, %17 in 1 : vector<2x128xf32>, vector<2x128xf32> -> vector<2x256xf32>
    %49 = arith.truncf %48 : vector<2x256xf32> to vector<2x256xbf16>
    %cst_25 = arith.constant dense<0.000000e+00> : vector<2x512xf32>
    %50 = tpu.matmul %49, %11, %cst_25 {dimension_numbers = #tpu.dot_dimension_numbers<[1], [0], [0], [1], [0, 0, 1, 1], [], []>} : vector<2x256xbf16>, vector<256x512xbf16>, vector<2x512xf32> -> vector<2x512xf32>
    %51 = arith.addf %50, %14 : vector<2x512xf32>
    %52 = vector.extract_strided_slice %51 {offsets = [0, 0], sizes = [2, 128], strides = [1, 1]} : vector<2x512xf32> to vector<2x128xf32>
    %53 = arith.negf %52 : vector<2x128xf32>
    %54 = math.exp %53 : vector<2x128xf32>
    %cst_26 = arith.constant 1.000000e+00 : f32
    %55 = vector.broadcast %cst_26 : f32 to vector<2x128xf32>
    %56 = arith.addf %55, %54 : vector<2x128xf32>
    %57 = arith.divf %55, %56 : vector<2x128xf32>
    %58 = vector.extract_strided_slice %51 {offsets = [0, 128], sizes = [2, 128], strides = [1, 1]} : vector<2x512xf32> to vector<2x128xf32>
    %59 = arith.negf %58 : vector<2x128xf32>
    %60 = math.exp %59 : vector<2x128xf32>
    %cst_27 = arith.constant 1.000000e+00 : f32
    %61 = vector.broadcast %cst_27 : f32 to vector<2x128xf32>
    %62 = arith.addf %61, %60 : vector<2x128xf32>
    %63 = arith.divf %61, %62 : vector<2x128xf32>
    %64 = vector.extract_strided_slice %51 {offsets = [0, 256], sizes = [2, 128], strides = [1, 1]} : vector<2x512xf32> to vector<2x128xf32>
    %65 = math.tanh %64 : vector<2x128xf32>
    %66 = vector.extract_strided_slice %51 {offsets = [0, 384], sizes = [2, 128], strides = [1, 1]} : vector<2x512xf32> to vector<2x128xf32>
    %67 = arith.negf %66 : vector<2x128xf32>
    %68 = math.exp %67 : vector<2x128xf32>
    %cst_28 = arith.constant 1.000000e+00 : f32
    %69 = vector.broadcast %cst_28 : f32 to vector<2x128xf32>
    %70 = arith.addf %69, %68 : vector<2x128xf32>
    %71 = arith.divf %69, %70 : vector<2x128xf32>
    %72 = arith.mulf %63, %18 : vector<2x128xf32>
    %73 = arith.mulf %57, %65 : vector<2x128xf32>
    %74 = arith.addf %72, %73 : vector<2x128xf32>
    %75 = math.tanh %74 : vector<2x128xf32>
    %76 = arith.mulf %71, %75 : vector<2x128xf32>
    %77 = vector.extract_strided_slice %9 {offsets = [2, 0], sizes = [2, 512], strides = [1, 1]} : vector<16x512xf32> to vector<2x512xf32>
    %78 = arith.truncf %47 : vector<2x128xf32> to vector<2x128xbf16>
    %cst_29 = arith.constant dense<0.000000e+00> : vector<2x512xf32>
    %79 = tpu.matmul %78, %10, %cst_29 {dimension_numbers = #tpu.dot_dimension_numbers<[1], [0], [0], [1], [0, 0, 1, 1], [], []>} : vector<2x128xbf16>, vector<128x512xbf16>, vector<2x512xf32> -> vector<2x512xf32>
    %80 = arith.addf %77, %79 : vector<2x512xf32>
    %81 = vector.extract_strided_slice %80 {offsets = [0, 0], sizes = [2, 128], strides = [1, 1]} : vector<2x512xf32> to vector<2x128xf32>
    %82 = arith.negf %81 : vector<2x128xf32>
    %83 = math.exp %82 : vector<2x128xf32>
    %cst_30 = arith.constant 1.000000e+00 : f32
    %84 = vector.broadcast %cst_30 : f32 to vector<2x128xf32>
    %85 = arith.addf %84, %83 : vector<2x128xf32>
    %86 = arith.divf %84, %85 : vector<2x128xf32>
    %87 = vector.extract_strided_slice %80 {offsets = [0, 128], sizes = [2, 128], strides = [1, 1]} : vector<2x512xf32> to vector<2x128xf32>
    %88 = arith.negf %87 : vector<2x128xf32>
    %89 = math.exp %88 : vector<2x128xf32>
    %cst_31 = arith.constant 1.000000e+00 : f32
    %90 = vector.broadcast %cst_31 : f32 to vector<2x128xf32>
    %91 = arith.addf %90, %89 : vector<2x128xf32>
    %92 = arith.divf %90, %91 : vector<2x128xf32>
    %93 = vector.extract_strided_slice %80 {offsets = [0, 256], sizes = [2, 128], strides = [1, 1]} : vector<2x512xf32> to vector<2x128xf32>
    %94 = math.tanh %93 : vector<2x128xf32>
    %95 = vector.extract_strided_slice %80 {offsets = [0, 384], sizes = [2, 128], strides = [1, 1]} : vector<2x512xf32> to vector<2x128xf32>
    %96 = arith.negf %95 : vector<2x128xf32>
    %97 = math.exp %96 : vector<2x128xf32>
    %cst_32 = arith.constant 1.000000e+00 : f32
    %98 = vector.broadcast %cst_32 : f32 to vector<2x128xf32>
    %99 = arith.addf %98, %97 : vector<2x128xf32>
    %100 = arith.divf %98, %99 : vector<2x128xf32>
    %101 = arith.mulf %92, %45 : vector<2x128xf32>
    %102 = arith.mulf %86, %94 : vector<2x128xf32>
    %103 = arith.addf %101, %102 : vector<2x128xf32>
    %104 = math.tanh %103 : vector<2x128xf32>
    %105 = arith.mulf %100, %104 : vector<2x128xf32>
    %106 = tpu.concatenate %105, %76 in 1 : vector<2x128xf32>, vector<2x128xf32> -> vector<2x256xf32>
    %107 = arith.truncf %106 : vector<2x256xf32> to vector<2x256xbf16>
    %cst_33 = arith.constant dense<0.000000e+00> : vector<2x512xf32>
    %108 = tpu.matmul %107, %11, %cst_33 {dimension_numbers = #tpu.dot_dimension_numbers<[1], [0], [0], [1], [0, 0, 1, 1], [], []>} : vector<2x256xbf16>, vector<256x512xbf16>, vector<2x512xf32> -> vector<2x512xf32>
    %109 = arith.addf %108, %14 : vector<2x512xf32>
    %110 = vector.extract_strided_slice %109 {offsets = [0, 0], sizes = [2, 128], strides = [1, 1]} : vector<2x512xf32> to vector<2x128xf32>
    %111 = arith.negf %110 : vector<2x128xf32>
    %112 = math.exp %111 : vector<2x128xf32>
    %cst_34 = arith.constant 1.000000e+00 : f32
    %113 = vector.broadcast %cst_34 : f32 to vector<2x128xf32>
    %114 = arith.addf %113, %112 : vector<2x128xf32>
    %115 = arith.divf %113, %114 : vector<2x128xf32>
    %116 = vector.extract_strided_slice %109 {offsets = [0, 128], sizes = [2, 128], strides = [1, 1]} : vector<2x512xf32> to vector<2x128xf32>
    %117 = arith.negf %116 : vector<2x128xf32>
    %118 = math.exp %117 : vector<2x128xf32>
    %cst_35 = arith.constant 1.000000e+00 : f32
    %119 = vector.broadcast %cst_35 : f32 to vector<2x128xf32>
    %120 = arith.addf %119, %118 : vector<2x128xf32>
    %121 = arith.divf %119, %120 : vector<2x128xf32>
    %122 = vector.extract_strided_slice %109 {offsets = [0, 256], sizes = [2, 128], strides = [1, 1]} : vector<2x512xf32> to vector<2x128xf32>
    %123 = math.tanh %122 : vector<2x128xf32>
    %124 = vector.extract_strided_slice %109 {offsets = [0, 384], sizes = [2, 128], strides = [1, 1]} : vector<2x512xf32> to vector<2x128xf32>
    %125 = arith.negf %124 : vector<2x128xf32>
    %126 = math.exp %125 : vector<2x128xf32>
    %cst_36 = arith.constant 1.000000e+00 : f32
    %127 = vector.broadcast %cst_36 : f32 to vector<2x128xf32>
    %128 = arith.addf %127, %126 : vector<2x128xf32>
    %129 = arith.divf %127, %128 : vector<2x128xf32>
    %130 = arith.mulf %121, %74 : vector<2x128xf32>
    %131 = arith.mulf %115, %123 : vector<2x128xf32>
    %132 = arith.addf %130, %131 : vector<2x128xf32>
    %133 = math.tanh %132 : vector<2x128xf32>
    %134 = arith.mulf %129, %133 : vector<2x128xf32>
    %135 = vector.extract_strided_slice %9 {offsets = [4, 0], sizes = [2, 512], strides = [1, 1]} : vector<16x512xf32> to vector<2x512xf32>
    %136 = arith.truncf %105 : vector<2x128xf32> to vector<2x128xbf16>
    %cst_37 = arith.constant dense<0.000000e+00> : vector<2x512xf32>
    %137 = tpu.matmul %136, %10, %cst_37 {dimension_numbers = #tpu.dot_dimension_numbers<[1], [0], [0], [1], [0, 0, 1, 1], [], []>} : vector<2x128xbf16>, vector<128x512xbf16>, vector<2x512xf32> -> vector<2x512xf32>
    %138 = arith.addf %135, %137 : vector<2x512xf32>
    %139 = vector.extract_strided_slice %138 {offsets = [0, 0], sizes = [2, 128], strides = [1, 1]} : vector<2x512xf32> to vector<2x128xf32>
    %140 = arith.negf %139 : vector<2x128xf32>
    %141 = math.exp %140 : vector<2x128xf32>
    %cst_38 = arith.constant 1.000000e+00 : f32
    %142 = vector.broadcast %cst_38 : f32 to vector<2x128xf32>
    %143 = arith.addf %142, %141 : vector<2x128xf32>
    %144 = arith.divf %142, %143 : vector<2x128xf32>
    %145 = vector.extract_strided_slice %138 {offsets = [0, 128], sizes = [2, 128], strides = [1, 1]} : vector<2x512xf32> to vector<2x128xf32>
    %146 = arith.negf %145 : vector<2x128xf32>
    %147 = math.exp %146 : vector<2x128xf32>
    %cst_39 = arith.constant 1.000000e+00 : f32
    %148 = vector.broadcast %cst_39 : f32 to vector<2x128xf32>
    %149 = arith.addf %148, %147 : vector<2x128xf32>
    %150 = arith.divf %148, %149 : vector<2x128xf32>
    %151 = vector.extract_strided_slice %138 {offsets = [0, 256], sizes = [2, 128], strides = [1, 1]} : vector<2x512xf32> to vector<2x128xf32>
    %152 = math.tanh %151 : vector<2x128xf32>
    %153 = vector.extract_strided_slice %138 {offsets = [0, 384], sizes = [2, 128], strides = [1, 1]} : vector<2x512xf32> to vector<2x128xf32>
    %154 = arith.negf %153 : vector<2x128xf32>
    %155 = math.exp %154 : vector<2x128xf32>
    %cst_40 = arith.constant 1.000000e+00 : f32
    %156 = vector.broadcast %cst_40 : f32 to vector<2x128xf32>
    %157 = arith.addf %156, %155 : vector<2x128xf32>
    %158 = arith.divf %156, %157 : vector<2x128xf32>
    %159 = arith.mulf %150, %103 : vector<2x128xf32>
    %160 = arith.mulf %144, %152 : vector<2x128xf32>
    %161 = arith.addf %159, %160 : vector<2x128xf32>
    %162 = math.tanh %161 : vector<2x128xf32>
    %163 = arith.mulf %158, %162 : vector<2x128xf32>
    %164 = tpu.concatenate %163, %134 in 1 : vector<2x128xf32>, vector<2x128xf32> -> vector<2x256xf32>
    %165 = arith.truncf %164 : vector<2x256xf32> to vector<2x256xbf16>
    %cst_41 = arith.constant dense<0.000000e+00> : vector<2x512xf32>
    %166 = tpu.matmul %165, %11, %cst_41 {dimension_numbers = #tpu.dot_dimension_numbers<[1], [0], [0], [1], [0, 0, 1, 1], [], []>} : vector<2x256xbf16>, vector<256x512xbf16>, vector<2x512xf32> -> vector<2x512xf32>
    %167 = arith.addf %166, %14 : vector<2x512xf32>
    %168 = vector.extract_strided_slice %167 {offsets = [0, 0], sizes = [2, 128], strides = [1, 1]} : vector<2x512xf32> to vector<2x128xf32>
    %169 = arith.negf %168 : vector<2x128xf32>
    %170 = math.exp %169 : vector<2x128xf32>
    %cst_42 = arith.constant 1.000000e+00 : f32
    %171 = vector.broadcast %cst_42 : f32 to vector<2x128xf32>
    %172 = arith.addf %171, %170 : vector<2x128xf32>
    %173 = arith.divf %171, %172 : vector<2x128xf32>
    %174 = vector.extract_strided_slice %167 {offsets = [0, 128], sizes = [2, 128], strides = [1, 1]} : vector<2x512xf32> to vector<2x128xf32>
    %175 = arith.negf %174 : vector<2x128xf32>
    %176 = math.exp %175 : vector<2x128xf32>
    %cst_43 = arith.constant 1.000000e+00 : f32
    %177 = vector.broadcast %cst_43 : f32 to vector<2x128xf32>
    %178 = arith.addf %177, %176 : vector<2x128xf32>
    %179 = arith.divf %177, %178 : vector<2x128xf32>
    %180 = vector.extract_strided_slice %167 {offsets = [0, 256], sizes = [2, 128], strides = [1, 1]} : vector<2x512xf32> to vector<2x128xf32>
    %181 = math.tanh %180 : vector<2x128xf32>
    %182 = vector.extract_strided_slice %167 {offsets = [0, 384], sizes = [2, 128], strides = [1, 1]} : vector<2x512xf32> to vector<2x128xf32>
    %183 = arith.negf %182 : vector<2x128xf32>
    %184 = math.exp %183 : vector<2x128xf32>
    %cst_44 = arith.constant 1.000000e+00 : f32
    %185 = vector.broadcast %cst_44 : f32 to vector<2x128xf32>
    %186 = arith.addf %185, %184 : vector<2x128xf32>
    %187 = arith.divf %185, %186 : vector<2x128xf32>
    %188 = arith.mulf %179, %132 : vector<2x128xf32>
    %189 = arith.mulf %173, %181 : vector<2x128xf32>
    %190 = arith.addf %188, %189 : vector<2x128xf32>
    %191 = math.tanh %190 : vector<2x128xf32>
    %192 = arith.mulf %187, %191 : vector<2x128xf32>
    %193 = vector.extract_strided_slice %9 {offsets = [6, 0], sizes = [2, 512], strides = [1, 1]} : vector<16x512xf32> to vector<2x512xf32>
    %194 = arith.truncf %163 : vector<2x128xf32> to vector<2x128xbf16>
    %cst_45 = arith.constant dense<0.000000e+00> : vector<2x512xf32>
    %195 = tpu.matmul %194, %10, %cst_45 {dimension_numbers = #tpu.dot_dimension_numbers<[1], [0], [0], [1], [0, 0, 1, 1], [], []>} : vector<2x128xbf16>, vector<128x512xbf16>, vector<2x512xf32> -> vector<2x512xf32>
    %196 = arith.addf %193, %195 : vector<2x512xf32>
    %197 = vector.extract_strided_slice %196 {offsets = [0, 0], sizes = [2, 128], strides = [1, 1]} : vector<2x512xf32> to vector<2x128xf32>
    %198 = arith.negf %197 : vector<2x128xf32>
    %199 = math.exp %198 : vector<2x128xf32>
    %cst_46 = arith.constant 1.000000e+00 : f32
    %200 = vector.broadcast %cst_46 : f32 to vector<2x128xf32>
    %201 = arith.addf %200, %199 : vector<2x128xf32>
    %202 = arith.divf %200, %201 : vector<2x128xf32>
    %203 = vector.extract_strided_slice %196 {offsets = [0, 128], sizes = [2, 128], strides = [1, 1]} : vector<2x512xf32> to vector<2x128xf32>
    %204 = arith.negf %203 : vector<2x128xf32>
    %205 = math.exp %204 : vector<2x128xf32>
    %cst_47 = arith.constant 1.000000e+00 : f32
    %206 = vector.broadcast %cst_47 : f32 to vector<2x128xf32>
    %207 = arith.addf %206, %205 : vector<2x128xf32>
    %208 = arith.divf %206, %207 : vector<2x128xf32>
    %209 = vector.extract_strided_slice %196 {offsets = [0, 256], sizes = [2, 128], strides = [1, 1]} : vector<2x512xf32> to vector<2x128xf32>
    %210 = math.tanh %209 : vector<2x128xf32>
    %211 = vector.extract_strided_slice %196 {offsets = [0, 384], sizes = [2, 128], strides = [1, 1]} : vector<2x512xf32> to vector<2x128xf32>
    %212 = arith.negf %211 : vector<2x128xf32>
    %213 = math.exp %212 : vector<2x128xf32>
    %cst_48 = arith.constant 1.000000e+00 : f32
    %214 = vector.broadcast %cst_48 : f32 to vector<2x128xf32>
    %215 = arith.addf %214, %213 : vector<2x128xf32>
    %216 = arith.divf %214, %215 : vector<2x128xf32>
    %217 = arith.mulf %208, %161 : vector<2x128xf32>
    %218 = arith.mulf %202, %210 : vector<2x128xf32>
    %219 = arith.addf %217, %218 : vector<2x128xf32>
    %220 = math.tanh %219 : vector<2x128xf32>
    %221 = arith.mulf %216, %220 : vector<2x128xf32>
    %222 = tpu.concatenate %221, %192 in 1 : vector<2x128xf32>, vector<2x128xf32> -> vector<2x256xf32>
    %223 = arith.truncf %222 : vector<2x256xf32> to vector<2x256xbf16>
    %cst_49 = arith.constant dense<0.000000e+00> : vector<2x512xf32>
    %224 = tpu.matmul %223, %11, %cst_49 {dimension_numbers = #tpu.dot_dimension_numbers<[1], [0], [0], [1], [0, 0, 1, 1], [], []>} : vector<2x256xbf16>, vector<256x512xbf16>, vector<2x512xf32> -> vector<2x512xf32>
    %225 = arith.addf %224, %14 : vector<2x512xf32>
    %226 = vector.extract_strided_slice %225 {offsets = [0, 0], sizes = [2, 128], strides = [1, 1]} : vector<2x512xf32> to vector<2x128xf32>
    %227 = arith.negf %226 : vector<2x128xf32>
    %228 = math.exp %227 : vector<2x128xf32>
    %cst_50 = arith.constant 1.000000e+00 : f32
    %229 = vector.broadcast %cst_50 : f32 to vector<2x128xf32>
    %230 = arith.addf %229, %228 : vector<2x128xf32>
    %231 = arith.divf %229, %230 : vector<2x128xf32>
    %232 = vector.extract_strided_slice %225 {offsets = [0, 128], sizes = [2, 128], strides = [1, 1]} : vector<2x512xf32> to vector<2x128xf32>
    %233 = arith.negf %232 : vector<2x128xf32>
    %234 = math.exp %233 : vector<2x128xf32>
    %cst_51 = arith.constant 1.000000e+00 : f32
    %235 = vector.broadcast %cst_51 : f32 to vector<2x128xf32>
    %236 = arith.addf %235, %234 : vector<2x128xf32>
    %237 = arith.divf %235, %236 : vector<2x128xf32>
    %238 = vector.extract_strided_slice %225 {offsets = [0, 256], sizes = [2, 128], strides = [1, 1]} : vector<2x512xf32> to vector<2x128xf32>
    %239 = math.tanh %238 : vector<2x128xf32>
    %240 = vector.extract_strided_slice %225 {offsets = [0, 384], sizes = [2, 128], strides = [1, 1]} : vector<2x512xf32> to vector<2x128xf32>
    %241 = arith.negf %240 : vector<2x128xf32>
    %242 = math.exp %241 : vector<2x128xf32>
    %cst_52 = arith.constant 1.000000e+00 : f32
    %243 = vector.broadcast %cst_52 : f32 to vector<2x128xf32>
    %244 = arith.addf %243, %242 : vector<2x128xf32>
    %245 = arith.divf %243, %244 : vector<2x128xf32>
    %246 = arith.mulf %237, %190 : vector<2x128xf32>
    %247 = arith.mulf %231, %239 : vector<2x128xf32>
    %248 = arith.addf %246, %247 : vector<2x128xf32>
    %249 = math.tanh %248 : vector<2x128xf32>
    %250 = arith.mulf %245, %249 : vector<2x128xf32>
    %251 = vector.extract_strided_slice %9 {offsets = [8, 0], sizes = [2, 512], strides = [1, 1]} : vector<16x512xf32> to vector<2x512xf32>
    %252 = arith.truncf %221 : vector<2x128xf32> to vector<2x128xbf16>
    %cst_53 = arith.constant dense<0.000000e+00> : vector<2x512xf32>
    %253 = tpu.matmul %252, %10, %cst_53 {dimension_numbers = #tpu.dot_dimension_numbers<[1], [0], [0], [1], [0, 0, 1, 1], [], []>} : vector<2x128xbf16>, vector<128x512xbf16>, vector<2x512xf32> -> vector<2x512xf32>
    %254 = arith.addf %251, %253 : vector<2x512xf32>
    %255 = vector.extract_strided_slice %254 {offsets = [0, 0], sizes = [2, 128], strides = [1, 1]} : vector<2x512xf32> to vector<2x128xf32>
    %256 = arith.negf %255 : vector<2x128xf32>
    %257 = math.exp %256 : vector<2x128xf32>
    %cst_54 = arith.constant 1.000000e+00 : f32
    %258 = vector.broadcast %cst_54 : f32 to vector<2x128xf32>
    %259 = arith.addf %258, %257 : vector<2x128xf32>
    %260 = arith.divf %258, %259 : vector<2x128xf32>
    %261 = vector.extract_strided_slice %254 {offsets = [0, 128], sizes = [2, 128], strides = [1, 1]} : vector<2x512xf32> to vector<2x128xf32>
    %262 = arith.negf %261 : vector<2x128xf32>
    %263 = math.exp %262 : vector<2x128xf32>
    %cst_55 = arith.constant 1.000000e+00 : f32
    %264 = vector.broadcast %cst_55 : f32 to vector<2x128xf32>
    %265 = arith.addf %264, %263 : vector<2x128xf32>
    %266 = arith.divf %264, %265 : vector<2x128xf32>
    %267 = vector.extract_strided_slice %254 {offsets = [0, 256], sizes = [2, 128], strides = [1, 1]} : vector<2x512xf32> to vector<2x128xf32>
    %268 = math.tanh %267 : vector<2x128xf32>
    %269 = vector.extract_strided_slice %254 {offsets = [0, 384], sizes = [2, 128], strides = [1, 1]} : vector<2x512xf32> to vector<2x128xf32>
    %270 = arith.negf %269 : vector<2x128xf32>
    %271 = math.exp %270 : vector<2x128xf32>
    %cst_56 = arith.constant 1.000000e+00 : f32
    %272 = vector.broadcast %cst_56 : f32 to vector<2x128xf32>
    %273 = arith.addf %272, %271 : vector<2x128xf32>
    %274 = arith.divf %272, %273 : vector<2x128xf32>
    %275 = arith.mulf %266, %219 : vector<2x128xf32>
    %276 = arith.mulf %260, %268 : vector<2x128xf32>
    %277 = arith.addf %275, %276 : vector<2x128xf32>
    %278 = math.tanh %277 : vector<2x128xf32>
    %279 = arith.mulf %274, %278 : vector<2x128xf32>
    %280 = tpu.concatenate %279, %250 in 1 : vector<2x128xf32>, vector<2x128xf32> -> vector<2x256xf32>
    %281 = arith.truncf %280 : vector<2x256xf32> to vector<2x256xbf16>
    %cst_57 = arith.constant dense<0.000000e+00> : vector<2x512xf32>
    %282 = tpu.matmul %281, %11, %cst_57 {dimension_numbers = #tpu.dot_dimension_numbers<[1], [0], [0], [1], [0, 0, 1, 1], [], []>} : vector<2x256xbf16>, vector<256x512xbf16>, vector<2x512xf32> -> vector<2x512xf32>
    %283 = arith.addf %282, %14 : vector<2x512xf32>
    %284 = vector.extract_strided_slice %283 {offsets = [0, 0], sizes = [2, 128], strides = [1, 1]} : vector<2x512xf32> to vector<2x128xf32>
    %285 = arith.negf %284 : vector<2x128xf32>
    %286 = math.exp %285 : vector<2x128xf32>
    %cst_58 = arith.constant 1.000000e+00 : f32
    %287 = vector.broadcast %cst_58 : f32 to vector<2x128xf32>
    %288 = arith.addf %287, %286 : vector<2x128xf32>
    %289 = arith.divf %287, %288 : vector<2x128xf32>
    %290 = vector.extract_strided_slice %283 {offsets = [0, 128], sizes = [2, 128], strides = [1, 1]} : vector<2x512xf32> to vector<2x128xf32>
    %291 = arith.negf %290 : vector<2x128xf32>
    %292 = math.exp %291 : vector<2x128xf32>
    %cst_59 = arith.constant 1.000000e+00 : f32
    %293 = vector.broadcast %cst_59 : f32 to vector<2x128xf32>
    %294 = arith.addf %293, %292 : vector<2x128xf32>
    %295 = arith.divf %293, %294 : vector<2x128xf32>
    %296 = vector.extract_strided_slice %283 {offsets = [0, 256], sizes = [2, 128], strides = [1, 1]} : vector<2x512xf32> to vector<2x128xf32>
    %297 = math.tanh %296 : vector<2x128xf32>
    %298 = vector.extract_strided_slice %283 {offsets = [0, 384], sizes = [2, 128], strides = [1, 1]} : vector<2x512xf32> to vector<2x128xf32>
    %299 = arith.negf %298 : vector<2x128xf32>
    %300 = math.exp %299 : vector<2x128xf32>
    %cst_60 = arith.constant 1.000000e+00 : f32
    %301 = vector.broadcast %cst_60 : f32 to vector<2x128xf32>
    %302 = arith.addf %301, %300 : vector<2x128xf32>
    %303 = arith.divf %301, %302 : vector<2x128xf32>
    %304 = arith.mulf %295, %248 : vector<2x128xf32>
    %305 = arith.mulf %289, %297 : vector<2x128xf32>
    %306 = arith.addf %304, %305 : vector<2x128xf32>
    %307 = math.tanh %306 : vector<2x128xf32>
    %308 = arith.mulf %303, %307 : vector<2x128xf32>
    %309 = vector.extract_strided_slice %9 {offsets = [10, 0], sizes = [2, 512], strides = [1, 1]} : vector<16x512xf32> to vector<2x512xf32>
    %310 = arith.truncf %279 : vector<2x128xf32> to vector<2x128xbf16>
    %cst_61 = arith.constant dense<0.000000e+00> : vector<2x512xf32>
    %311 = tpu.matmul %310, %10, %cst_61 {dimension_numbers = #tpu.dot_dimension_numbers<[1], [0], [0], [1], [0, 0, 1, 1], [], []>} : vector<2x128xbf16>, vector<128x512xbf16>, vector<2x512xf32> -> vector<2x512xf32>
    %312 = arith.addf %309, %311 : vector<2x512xf32>
    %313 = vector.extract_strided_slice %312 {offsets = [0, 0], sizes = [2, 128], strides = [1, 1]} : vector<2x512xf32> to vector<2x128xf32>
    %314 = arith.negf %313 : vector<2x128xf32>
    %315 = math.exp %314 : vector<2x128xf32>
    %cst_62 = arith.constant 1.000000e+00 : f32
    %316 = vector.broadcast %cst_62 : f32 to vector<2x128xf32>
    %317 = arith.addf %316, %315 : vector<2x128xf32>
    %318 = arith.divf %316, %317 : vector<2x128xf32>
    %319 = vector.extract_strided_slice %312 {offsets = [0, 128], sizes = [2, 128], strides = [1, 1]} : vector<2x512xf32> to vector<2x128xf32>
    %320 = arith.negf %319 : vector<2x128xf32>
    %321 = math.exp %320 : vector<2x128xf32>
    %cst_63 = arith.constant 1.000000e+00 : f32
    %322 = vector.broadcast %cst_63 : f32 to vector<2x128xf32>
    %323 = arith.addf %322, %321 : vector<2x128xf32>
    %324 = arith.divf %322, %323 : vector<2x128xf32>
    %325 = vector.extract_strided_slice %312 {offsets = [0, 256], sizes = [2, 128], strides = [1, 1]} : vector<2x512xf32> to vector<2x128xf32>
    %326 = math.tanh %325 : vector<2x128xf32>
    %327 = vector.extract_strided_slice %312 {offsets = [0, 384], sizes = [2, 128], strides = [1, 1]} : vector<2x512xf32> to vector<2x128xf32>
    %328 = arith.negf %327 : vector<2x128xf32>
    %329 = math.exp %328 : vector<2x128xf32>
    %cst_64 = arith.constant 1.000000e+00 : f32
    %330 = vector.broadcast %cst_64 : f32 to vector<2x128xf32>
    %331 = arith.addf %330, %329 : vector<2x128xf32>
    %332 = arith.divf %330, %331 : vector<2x128xf32>
    %333 = arith.mulf %324, %277 : vector<2x128xf32>
    %334 = arith.mulf %318, %326 : vector<2x128xf32>
    %335 = arith.addf %333, %334 : vector<2x128xf32>
    %336 = math.tanh %335 : vector<2x128xf32>
    %337 = arith.mulf %332, %336 : vector<2x128xf32>
    %338 = tpu.concatenate %337, %308 in 1 : vector<2x128xf32>, vector<2x128xf32> -> vector<2x256xf32>
    %339 = arith.truncf %338 : vector<2x256xf32> to vector<2x256xbf16>
    %cst_65 = arith.constant dense<0.000000e+00> : vector<2x512xf32>
    %340 = tpu.matmul %339, %11, %cst_65 {dimension_numbers = #tpu.dot_dimension_numbers<[1], [0], [0], [1], [0, 0, 1, 1], [], []>} : vector<2x256xbf16>, vector<256x512xbf16>, vector<2x512xf32> -> vector<2x512xf32>
    %341 = arith.addf %340, %14 : vector<2x512xf32>
    %342 = vector.extract_strided_slice %341 {offsets = [0, 0], sizes = [2, 128], strides = [1, 1]} : vector<2x512xf32> to vector<2x128xf32>
    %343 = arith.negf %342 : vector<2x128xf32>
    %344 = math.exp %343 : vector<2x128xf32>
    %cst_66 = arith.constant 1.000000e+00 : f32
    %345 = vector.broadcast %cst_66 : f32 to vector<2x128xf32>
    %346 = arith.addf %345, %344 : vector<2x128xf32>
    %347 = arith.divf %345, %346 : vector<2x128xf32>
    %348 = vector.extract_strided_slice %341 {offsets = [0, 128], sizes = [2, 128], strides = [1, 1]} : vector<2x512xf32> to vector<2x128xf32>
    %349 = arith.negf %348 : vector<2x128xf32>
    %350 = math.exp %349 : vector<2x128xf32>
    %cst_67 = arith.constant 1.000000e+00 : f32
    %351 = vector.broadcast %cst_67 : f32 to vector<2x128xf32>
    %352 = arith.addf %351, %350 : vector<2x128xf32>
    %353 = arith.divf %351, %352 : vector<2x128xf32>
    %354 = vector.extract_strided_slice %341 {offsets = [0, 256], sizes = [2, 128], strides = [1, 1]} : vector<2x512xf32> to vector<2x128xf32>
    %355 = math.tanh %354 : vector<2x128xf32>
    %356 = vector.extract_strided_slice %341 {offsets = [0, 384], sizes = [2, 128], strides = [1, 1]} : vector<2x512xf32> to vector<2x128xf32>
    %357 = arith.negf %356 : vector<2x128xf32>
    %358 = math.exp %357 : vector<2x128xf32>
    %cst_68 = arith.constant 1.000000e+00 : f32
    %359 = vector.broadcast %cst_68 : f32 to vector<2x128xf32>
    %360 = arith.addf %359, %358 : vector<2x128xf32>
    %361 = arith.divf %359, %360 : vector<2x128xf32>
    %362 = arith.mulf %353, %306 : vector<2x128xf32>
    %363 = arith.mulf %347, %355 : vector<2x128xf32>
    %364 = arith.addf %362, %363 : vector<2x128xf32>
    %365 = math.tanh %364 : vector<2x128xf32>
    %366 = arith.mulf %361, %365 : vector<2x128xf32>
    %367 = vector.extract_strided_slice %9 {offsets = [12, 0], sizes = [2, 512], strides = [1, 1]} : vector<16x512xf32> to vector<2x512xf32>
    %368 = arith.truncf %337 : vector<2x128xf32> to vector<2x128xbf16>
    %cst_69 = arith.constant dense<0.000000e+00> : vector<2x512xf32>
    %369 = tpu.matmul %368, %10, %cst_69 {dimension_numbers = #tpu.dot_dimension_numbers<[1], [0], [0], [1], [0, 0, 1, 1], [], []>} : vector<2x128xbf16>, vector<128x512xbf16>, vector<2x512xf32> -> vector<2x512xf32>
    %370 = arith.addf %367, %369 : vector<2x512xf32>
    %371 = vector.extract_strided_slice %370 {offsets = [0, 0], sizes = [2, 128], strides = [1, 1]} : vector<2x512xf32> to vector<2x128xf32>
    %372 = arith.negf %371 : vector<2x128xf32>
    %373 = math.exp %372 : vector<2x128xf32>
    %cst_70 = arith.constant 1.000000e+00 : f32
    %374 = vector.broadcast %cst_70 : f32 to vector<2x128xf32>
    %375 = arith.addf %374, %373 : vector<2x128xf32>
    %376 = arith.divf %374, %375 : vector<2x128xf32>
    %377 = vector.extract_strided_slice %370 {offsets = [0, 128], sizes = [2, 128], strides = [1, 1]} : vector<2x512xf32> to vector<2x128xf32>
    %378 = arith.negf %377 : vector<2x128xf32>
    %379 = math.exp %378 : vector<2x128xf32>
    %cst_71 = arith.constant 1.000000e+00 : f32
    %380 = vector.broadcast %cst_71 : f32 to vector<2x128xf32>
    %381 = arith.addf %380, %379 : vector<2x128xf32>
    %382 = arith.divf %380, %381 : vector<2x128xf32>
    %383 = vector.extract_strided_slice %370 {offsets = [0, 256], sizes = [2, 128], strides = [1, 1]} : vector<2x512xf32> to vector<2x128xf32>
    %384 = math.tanh %383 : vector<2x128xf32>
    %385 = vector.extract_strided_slice %370 {offsets = [0, 384], sizes = [2, 128], strides = [1, 1]} : vector<2x512xf32> to vector<2x128xf32>
    %386 = arith.negf %385 : vector<2x128xf32>
    %387 = math.exp %386 : vector<2x128xf32>
    %cst_72 = arith.constant 1.000000e+00 : f32
    %388 = vector.broadcast %cst_72 : f32 to vector<2x128xf32>
    %389 = arith.addf %388, %387 : vector<2x128xf32>
    %390 = arith.divf %388, %389 : vector<2x128xf32>
    %391 = arith.mulf %382, %335 : vector<2x128xf32>
    %392 = arith.mulf %376, %384 : vector<2x128xf32>
    %393 = arith.addf %391, %392 : vector<2x128xf32>
    %394 = math.tanh %393 : vector<2x128xf32>
    %395 = arith.mulf %390, %394 : vector<2x128xf32>
    %396 = tpu.concatenate %395, %366 in 1 : vector<2x128xf32>, vector<2x128xf32> -> vector<2x256xf32>
    %397 = arith.truncf %396 : vector<2x256xf32> to vector<2x256xbf16>
    %cst_73 = arith.constant dense<0.000000e+00> : vector<2x512xf32>
    %398 = tpu.matmul %397, %11, %cst_73 {dimension_numbers = #tpu.dot_dimension_numbers<[1], [0], [0], [1], [0, 0, 1, 1], [], []>} : vector<2x256xbf16>, vector<256x512xbf16>, vector<2x512xf32> -> vector<2x512xf32>
    %399 = arith.addf %398, %14 : vector<2x512xf32>
    %400 = vector.extract_strided_slice %399 {offsets = [0, 0], sizes = [2, 128], strides = [1, 1]} : vector<2x512xf32> to vector<2x128xf32>
    %401 = arith.negf %400 : vector<2x128xf32>
    %402 = math.exp %401 : vector<2x128xf32>
    %cst_74 = arith.constant 1.000000e+00 : f32
    %403 = vector.broadcast %cst_74 : f32 to vector<2x128xf32>
    %404 = arith.addf %403, %402 : vector<2x128xf32>
    %405 = arith.divf %403, %404 : vector<2x128xf32>
    %406 = vector.extract_strided_slice %399 {offsets = [0, 128], sizes = [2, 128], strides = [1, 1]} : vector<2x512xf32> to vector<2x128xf32>
    %407 = arith.negf %406 : vector<2x128xf32>
    %408 = math.exp %407 : vector<2x128xf32>
    %cst_75 = arith.constant 1.000000e+00 : f32
    %409 = vector.broadcast %cst_75 : f32 to vector<2x128xf32>
    %410 = arith.addf %409, %408 : vector<2x128xf32>
    %411 = arith.divf %409, %410 : vector<2x128xf32>
    %412 = vector.extract_strided_slice %399 {offsets = [0, 256], sizes = [2, 128], strides = [1, 1]} : vector<2x512xf32> to vector<2x128xf32>
    %413 = math.tanh %412 : vector<2x128xf32>
    %414 = vector.extract_strided_slice %399 {offsets = [0, 384], sizes = [2, 128], strides = [1, 1]} : vector<2x512xf32> to vector<2x128xf32>
    %415 = arith.negf %414 : vector<2x128xf32>
    %416 = math.exp %415 : vector<2x128xf32>
    %cst_76 = arith.constant 1.000000e+00 : f32
    %417 = vector.broadcast %cst_76 : f32 to vector<2x128xf32>
    %418 = arith.addf %417, %416 : vector<2x128xf32>
    %419 = arith.divf %417, %418 : vector<2x128xf32>
    %420 = arith.mulf %411, %364 : vector<2x128xf32>
    %421 = arith.mulf %405, %413 : vector<2x128xf32>
    %422 = arith.addf %420, %421 : vector<2x128xf32>
    %423 = math.tanh %422 : vector<2x128xf32>
    %424 = arith.mulf %419, %423 : vector<2x128xf32>
    %425 = vector.extract_strided_slice %9 {offsets = [14, 0], sizes = [2, 512], strides = [1, 1]} : vector<16x512xf32> to vector<2x512xf32>
    %426 = arith.truncf %395 : vector<2x128xf32> to vector<2x128xbf16>
    %cst_77 = arith.constant dense<0.000000e+00> : vector<2x512xf32>
    %427 = tpu.matmul %426, %10, %cst_77 {dimension_numbers = #tpu.dot_dimension_numbers<[1], [0], [0], [1], [0, 0, 1, 1], [], []>} : vector<2x128xbf16>, vector<128x512xbf16>, vector<2x512xf32> -> vector<2x512xf32>
    %428 = arith.addf %425, %427 : vector<2x512xf32>
    %429 = vector.extract_strided_slice %428 {offsets = [0, 0], sizes = [2, 128], strides = [1, 1]} : vector<2x512xf32> to vector<2x128xf32>
    %430 = arith.negf %429 : vector<2x128xf32>
    %431 = math.exp %430 : vector<2x128xf32>
    %cst_78 = arith.constant 1.000000e+00 : f32
    %432 = vector.broadcast %cst_78 : f32 to vector<2x128xf32>
    %433 = arith.addf %432, %431 : vector<2x128xf32>
    %434 = arith.divf %432, %433 : vector<2x128xf32>
    %435 = vector.extract_strided_slice %428 {offsets = [0, 128], sizes = [2, 128], strides = [1, 1]} : vector<2x512xf32> to vector<2x128xf32>
    %436 = arith.negf %435 : vector<2x128xf32>
    %437 = math.exp %436 : vector<2x128xf32>
    %cst_79 = arith.constant 1.000000e+00 : f32
    %438 = vector.broadcast %cst_79 : f32 to vector<2x128xf32>
    %439 = arith.addf %438, %437 : vector<2x128xf32>
    %440 = arith.divf %438, %439 : vector<2x128xf32>
    %441 = vector.extract_strided_slice %428 {offsets = [0, 256], sizes = [2, 128], strides = [1, 1]} : vector<2x512xf32> to vector<2x128xf32>
    %442 = math.tanh %441 : vector<2x128xf32>
    %443 = vector.extract_strided_slice %428 {offsets = [0, 384], sizes = [2, 128], strides = [1, 1]} : vector<2x512xf32> to vector<2x128xf32>
    %444 = arith.negf %443 : vector<2x128xf32>
    %445 = math.exp %444 : vector<2x128xf32>
    %cst_80 = arith.constant 1.000000e+00 : f32
    %446 = vector.broadcast %cst_80 : f32 to vector<2x128xf32>
    %447 = arith.addf %446, %445 : vector<2x128xf32>
    %448 = arith.divf %446, %447 : vector<2x128xf32>
    %449 = arith.mulf %440, %393 : vector<2x128xf32>
    %450 = arith.mulf %434, %442 : vector<2x128xf32>
    %451 = arith.addf %449, %450 : vector<2x128xf32>
    %452 = math.tanh %451 : vector<2x128xf32>
    %453 = arith.mulf %448, %452 : vector<2x128xf32>
    %454 = tpu.concatenate %453, %424 in 1 : vector<2x128xf32>, vector<2x128xf32> -> vector<2x256xf32>
    %455 = arith.truncf %454 : vector<2x256xf32> to vector<2x256xbf16>
    %cst_81 = arith.constant dense<0.000000e+00> : vector<2x512xf32>
    %456 = tpu.matmul %455, %11, %cst_81 {dimension_numbers = #tpu.dot_dimension_numbers<[1], [0], [0], [1], [0, 0, 1, 1], [], []>} : vector<2x256xbf16>, vector<256x512xbf16>, vector<2x512xf32> -> vector<2x512xf32>
    %457 = arith.addf %456, %14 : vector<2x512xf32>
    %458 = vector.extract_strided_slice %457 {offsets = [0, 0], sizes = [2, 128], strides = [1, 1]} : vector<2x512xf32> to vector<2x128xf32>
    %459 = arith.negf %458 : vector<2x128xf32>
    %460 = math.exp %459 : vector<2x128xf32>
    %cst_82 = arith.constant 1.000000e+00 : f32
    %461 = vector.broadcast %cst_82 : f32 to vector<2x128xf32>
    %462 = arith.addf %461, %460 : vector<2x128xf32>
    %463 = arith.divf %461, %462 : vector<2x128xf32>
    %464 = vector.extract_strided_slice %457 {offsets = [0, 128], sizes = [2, 128], strides = [1, 1]} : vector<2x512xf32> to vector<2x128xf32>
    %465 = arith.negf %464 : vector<2x128xf32>
    %466 = math.exp %465 : vector<2x128xf32>
    %cst_83 = arith.constant 1.000000e+00 : f32
    %467 = vector.broadcast %cst_83 : f32 to vector<2x128xf32>
    %468 = arith.addf %467, %466 : vector<2x128xf32>
    %469 = arith.divf %467, %468 : vector<2x128xf32>
    %470 = vector.extract_strided_slice %457 {offsets = [0, 256], sizes = [2, 128], strides = [1, 1]} : vector<2x512xf32> to vector<2x128xf32>
    %471 = math.tanh %470 : vector<2x128xf32>
    %472 = vector.extract_strided_slice %457 {offsets = [0, 384], sizes = [2, 128], strides = [1, 1]} : vector<2x512xf32> to vector<2x128xf32>
    %473 = arith.negf %472 : vector<2x128xf32>
    %474 = math.exp %473 : vector<2x128xf32>
    %cst_84 = arith.constant 1.000000e+00 : f32
    %475 = vector.broadcast %cst_84 : f32 to vector<2x128xf32>
    %476 = arith.addf %475, %474 : vector<2x128xf32>
    %477 = arith.divf %475, %476 : vector<2x128xf32>
    %478 = arith.mulf %469, %422 : vector<2x128xf32>
    %479 = arith.mulf %463, %471 : vector<2x128xf32>
    %480 = arith.addf %478, %479 : vector<2x128xf32>
    %481 = math.tanh %480 : vector<2x128xf32>
    %482 = arith.mulf %477, %481 : vector<2x128xf32>
    %c0_85 = arith.constant 0 : index
    %c0_86 = arith.constant 0 : index
    %483 = vector.load %arg10[%c0_85, %c0_86] : memref<2x128xf32, #tpu.memory_space<vmem>>, vector<2x128xf32>
    tpu.vector_store %arg10[%c0_85, %c0_86], %453 {strides = array<i32>} : memref<2x128xf32, #tpu.memory_space<vmem>>, vector<2x128xf32>,
    %c0_87 = arith.constant 0 : index
    %c0_88 = arith.constant 0 : index
    %484 = vector.load %arg11[%c0_87, %c0_88] : memref<2x128xf32, #tpu.memory_space<vmem>>, vector<2x128xf32>
    tpu.vector_store %arg11[%c0_87, %c0_88], %451 {strides = array<i32>} : memref<2x128xf32, #tpu.memory_space<vmem>>, vector<2x128xf32>,
    %c0_89 = arith.constant 0 : index
    %c0_90 = arith.constant 0 : index
    %485 = vector.load %arg12[%c0_89, %c0_90] : memref<2x128xf32, #tpu.memory_space<vmem>>, vector<2x128xf32>
    tpu.vector_store %arg12[%c0_89, %c0_90], %482 {strides = array<i32>} : memref<2x128xf32, #tpu.memory_space<vmem>>, vector<2x128xf32>,
    %c0_91 = arith.constant 0 : index
    %c0_92 = arith.constant 0 : index
    %486 = vector.load %arg13[%c0_91, %c0_92] : memref<2x128xf32, #tpu.memory_space<vmem>>, vector<2x128xf32>
    tpu.vector_store %arg13[%c0_91, %c0_92], %480 {strides = array<i32>} : memref<2x128xf32, #tpu.memory_space<vmem>>, vector<2x128xf32>,
    %c0_i32_93 = arith.constant 0 : i32
    %487 = arith.cmpi eq, %arg0, %c0_i32_93 : i32
    %488 = arith.extui %487 : i1 to i32
    %c0_i32_94 = arith.constant 0 : i32
    %489 = arith.cmpi ne, %488, %c0_i32_94 : i32
    scf.if %489 {
      %c0_95 = arith.constant 0 : index
      %c0_96 = arith.constant 0 : index
      %490 = vector.load %arg7[%c0_95, %c0_96] : memref<128x128xf32, #tpu.memory_space<vmem>>, vector<128x128xf32>
      %cst_97 = arith.constant dense<0.000000e+00> : vector<2x128xf32>
      %491 = tpu.matmul %482, %490, %cst_97 {dimension_numbers = #tpu.dot_dimension_numbers<[1], [0], [0], [1], [0, 0, 1, 1], [], []>} : vector<2x128xf32>, vector<128x128xf32>, vector<2x128xf32> -> vector<2x128xf32>
      %c0_98 = arith.constant 0 : index
      %c0_99 = arith.constant 0 : index
      %492 = vector.load %arg8[%c0_98, %c0_99] : memref<1x128xf32, #tpu.memory_space<vmem>>, vector<1x128xf32>
      %493 = vector.broadcast %492 : vector<1x128xf32> to vector<2x128xf32>
      %494 = arith.addf %491, %493 : vector<2x128xf32>
      %c0_100 = arith.constant 0 : index
      %c0_101 = arith.constant 0 : index
      %495 = vector.load %arg9[%c0_100, %c0_101] : memref<2x128xf32, #tpu.memory_space<vmem>>, vector<2x128xf32>
      tpu.vector_store %arg9[%c0_100, %c0_101], %494 {strides = array<i32>} : memref<2x128xf32, #tpu.memory_space<vmem>>, vector<2x128xf32>,
    } else {
    }
    return
  }
  func.func @transform_0(%arg0: i32) -> (i32, i32, i32) {
    %c0_i32 = arith.constant 0 : i32
    %c0_i32_0 = arith.constant 0 : i32
    %c0_i32_1 = arith.constant 0 : i32
    return %arg0, %c0_i32, %c0_i32_0 : i32, i32, i32
  }
  func.func @transform_1(%arg0: i32) -> (i32, i32) {
    %c0_i32 = arith.constant 0 : i32
    %c0_i32_0 = arith.constant 0 : i32
    %c0_i32_1 = arith.constant 0 : i32
    return %c0_i32, %c0_i32_0 : i32, i32
  }
  func.func @transform_2(%arg0: i32) -> (i32, i32) {
    %c0_i32 = arith.constant 0 : i32
    %c0_i32_0 = arith.constant 0 : i32
    %c0_i32_1 = arith.constant 0 : i32
    return %c0_i32, %c0_i32_0 : i32, i32
  }
  func.func @transform_3(%arg0: i32) -> (i32, i32) {
    %c0_i32 = arith.constant 0 : i32
    %c0_i32_0 = arith.constant 0 : i32
    %c0_i32_1 = arith.constant 0 : i32
    return %c0_i32, %c0_i32_0 : i32, i32
  }
  func.func @transform_4(%arg0: i32) -> (i32, i32) {
    %c0_i32 = arith.constant 0 : i32
    %c0_i32_0 = arith.constant 0 : i32
    %c0_i32_1 = arith.constant 0 : i32
    return %c0_i32, %c0_i32_0 : i32, i32
  }
  func.func @transform_5(%arg0: i32) -> (i32, i32) {
    %c0_i32 = arith.constant 0 : i32
    %c0_i32_0 = arith.constant 0 : i32
    %c0_i32_1 = arith.constant 0 : i32
    return %c0_i32, %c0_i32_0 : i32, i32
  }
  func.func @transform_6(%arg0: i32) -> (i32, i32) {
    %c0_i32 = arith.constant 0 : i32
    %c0_i32_0 = arith.constant 0 : i32
    %c0_i32_1 = arith.constant 0 : i32
    return %c0_i32, %c0_i32_0 : i32, i32
  }
  func.func @transform_7(%arg0: i32) -> (i32, i32) {
    %c0_i32 = arith.constant 0 : i32
    %c0_i32_0 = arith.constant 0 : i32
    %c0_i32_1 = arith.constant 0 : i32
    return %c0_i32, %c0_i32_0 : i32, i32
  }
  func.func @transform_8(%arg0: i32) -> (i32, i32) {
    %c0_i32 = arith.constant 0 : i32
    %c0_i32_0 = arith.constant 0 : i32
    %c0_i32_1 = arith.constant 0 : i32
    return %c0_i32, %c0_i32_0 : i32, i32
  }
}

</mosaic_0001>

<bundles_post_ra>
// kernel: tpu_custom_call.1
= control target key start
LH: loop header
LB: loop body
LE: loop exit
PB: predicated region body
PF: predicated region fallthrough
CT: control target
= control target key end

     0   :  { %13 = vsyncpa [#allocation7], 0  ;;  %s5539_s0 = inlined_call_operand.hbm [shape: f32[1,16,16], index: 0, kind: input, shape index: {}]   ;;  %s5540_s1 = inlined_call_operand.hbm [shape: f32[16,512], index: 1, kind: input, shape index: {}]   ;;  %s5541_s2 = inlined_call_operand.hbm [shape: f32[1,512], index: 2, kind: input, shape index: {}]   ;;  %s5542_s3 = inlined_call_operand.hbm [shape: bf16[128,512], index: 3, kind: input, shape index: {}]   ;;  %s5543_s4 = inlined_call_operand.hbm [shape: bf16[256,512], index: 4, kind: input, shape index: {}]   ;;  %s5544_s5 = inlined_call_operand.vmem [shape: f32[1,512], index: 5, kind: input, shape index: {}]   ;;  %s5545_s6 = inlined_call_operand.hbm [shape: f32[128,128], index: 6, kind: input, shape index: {}]   ;;  %s5546_s7 = inlined_call_operand.vmem [shape: f32[1,128], index: 7, kind: input, shape index: {}]   ;;  %s5547_s8 = inlined_call_operand.hbm [shape: f32[2,128], index: 8, kind: output, shape index: {}]  }
   0x1   :  { %14 = vsyncpa [#allocation10], 0 }
   0x2   :  { %15 = vsyncpa [#allocation13], 0 }
   0x3   :  { %16 = vsyncpa [#allocation16], 0 }
   0x4   :  { %17 = vsyncpa [#allocation8], 0  ;;  %s3884_s27 = smov [#allocation9]  }
   0x5   :  { %s35_s28 = sshll.u32 %s3884_s27, 4  ;;  %s36_s28 = int_to_ptr.vmem [resolvable:$true] %s35_s28 }
   0x6   :  { %s3742_s29 = scalar_lea.vmem %s36_s28, 1024  ;;  %p3747_p1 = scmp.lt.s32.totalorder %s36_s28, %s36_s28 }
   0x7   :  { %p3743_p0 = scmp.ne.s32.totalorder %s36_s28, %s3742_s29  ;;  %p3748_p2 = scmp.lt.s32.totalorder %s3742_s29, %s3742_s29 }
   0x9   :  { %p3749_p3 = por %p3748_p2, %p3747_p1 }
   0xb   :  { %p3750_p4 = pnand %p3749_p3, %p3743_p0 }
   0xd   :  { %3753 = shalt.err (!%p3750_p4)
}
   0xe   :  { %s3885_s30 = smov 512   ;;  %s3886_s9 = smov 32  }
   0xf   :  { %41 = dma.hbm_to_vmem [thread:$0]  %s5540_s1, 1024, %s36_s28, [#allocation10], %s3885_s30, %s3885_s30, %s3886_s9  }
  0x10   :  { %s3887_s12 = smov [#allocation12]  }
  0x11   :  { %s57_s13 = sshll.u32 %s3887_s12, 4  ;;  %s58_s13 = int_to_ptr.vmem [resolvable:$true] %s57_s13 }
  0x12   :  { %s3762_s14 = scalar_lea.vmem %s58_s13, 4096  ;;  %p3767_p6 = scmp.lt.s32.totalorder %s58_s13, %s58_s13 }
  0x13   :  { %p3763_p5 = scmp.ne.s32.totalorder %s58_s13, %s3762_s14  ;;  %p3768_p7 = scmp.lt.s32.totalorder %s3762_s14, %s3762_s14 }
  0x15   :  { %p3769_p8 = por %p3768_p7, %p3767_p6 }
  0x17   :  { %p3770_p9 = pnand %p3769_p8, %p3763_p5 }
  0x19   :  { %3773 = shalt.err (!%p3770_p9)
}
  0x1a   :  { %s3888_s15 = smov 256   ;;  %s3889_s16 = smov 16  }
  0x1b   :  { %63 = dma.hbm_to_vmem [thread:$0]  %s5542_s3, 4096, %s58_s13, [#allocation13], %s3888_s15, %s3888_s15, %s3889_s16  }
  0x1c   :  { %s3890_s1 = smov [#allocation6]  }
  0x1d   :  { %s23_s19 = sshll.u32 %s3890_s1, 4  ;;  %s24_s19 = int_to_ptr.vmem [resolvable:$true] %s23_s19 }
  0x1e   :  { %s3782_s20 = scalar_lea.vmem %s24_s19, 256  ;;  %p3787_p11 = scmp.lt.s32.totalorder %s24_s19, %s24_s19 }
  0x1f   :  { %p3783_p10 = scmp.ne.s32.totalorder %s24_s19, %s3782_s20  ;;  %p3788_p12 = scmp.lt.s32.totalorder %s3782_s20, %s3782_s20 }
  0x21   :  { %p3789_p13 = por %p3788_p12, %p3787_p11 }
  0x23   :  { %p3790_p0 = pnand %p3789_p13, %p3783_p10 }
  0x25   :  { %3793 = shalt.err (!%p3790_p0)
}
  0x26   :  { %s3891_s21 = smov 128   ;;  %s3892_s22 = smov 8  }
  0x27   :  { %29 = dma.hbm_to_vmem [thread:$0]  %s5539_s0, 256, %s24_s19, [#allocation7], %s3891_s21, %s3891_s21, %s3892_s22  }
  0x28   :  { %s3893_s3 = smov [#allocation11]   ;;  %s3894_s26 = smov [#allocation14]  }
  0x29   :  { %s48_s25 = sshll.u32 %s3893_s3, 4  ;;  %s69_s27 = sshll.u32 %s3894_s26, 4  ;;  %s49_s25 = int_to_ptr.vmem [resolvable:$true] %s48_s25  ;;  %s70_s27 = int_to_ptr.vmem [resolvable:$true] %s69_s27 }
  0x2a   :  { %s3802_s28 = scalar_lea.vmem %s49_s25, 64  ;;  %p3807_p2 = scmp.lt.s32.totalorder %s49_s25, %s49_s25 }
  0x2b   :  { %p3803_p1 = scmp.ne.s32.totalorder %s49_s25, %s3802_s28  ;;  %p3808_p3 = scmp.lt.s32.totalorder %s3802_s28, %s3802_s28 }
  0x2d   :  { %p3809_p4 = por %p3808_p3, %p3807_p2 }
  0x2f   :  { %p3810_p5 = pnand %p3809_p4, %p3803_p1 }
  0x31   :  { %3813 = shalt.err (!%p3810_p5)
}
  0x32   :  { %51 = dma.hbm_to_vmem [thread:$0]  %s5541_s2, 64, %s49_s25, [#allocation10]  }
  0x33   :  { %s3822_s9 = scalar_lea.vmem %s70_s27, 8192  ;;  %p3827_p7 = scmp.lt.s32.totalorder %s70_s27, %s70_s27 }
  0x34   :  { %p3823_p6 = scmp.ne.s32.totalorder %s70_s27, %s3822_s9  ;;  %p3828_p8 = scmp.lt.s32.totalorder %s3822_s9, %s3822_s9 }
  0x36   :  { %p3829_p9 = por %p3828_p8, %p3827_p7 }
  0x38   :  { %p3830_p10 = pnand %p3829_p9, %p3823_p6 }
  0x3a   :  { %3833 = shalt.err (!%p3830_p10)
}
  0x3b   :  { %75 = dma.hbm_to_vmem [thread:$0]  %s5543_s4, 8192, %s70_s27, [#allocation13], %s3888_s15, %s3888_s15, %s3889_s16  }
  0x3c   :  { %s3895_s11 = smov [#allocation15]  }
  0x3d   :  { %s83_s12 = sshll.u32 %s3895_s11, 4  ;;  %s84_s12 = int_to_ptr.vmem [resolvable:$true] %s83_s12 }
  0x3e   :  { %s3842_s13 = scalar_lea.vmem %s84_s12, 2048  ;;  %p3847_p12 = scmp.lt.s32.totalorder %s84_s12, %s84_s12 }
  0x3f   :  { %p3843_p11 = scmp.ne.s32.totalorder %s84_s12, %s3842_s13  ;;  %p3848_p13 = scmp.lt.s32.totalorder %s3842_s13, %s3842_s13 }
  0x41   :  { %p3849_p0 = por %p3848_p13, %p3847_p12 }
  0x43   :  { %p3850_p1 = pnand %p3849_p0, %p3843_p11 }
  0x45   :  { %3853 = shalt.err (!%p3850_p1)
}
  0x46   :  { %89 = dma.hbm_to_vmem [thread:$0]  %s5545_s6, 2048, %s84_s12, [#allocation16], %s3891_s21, %s3891_s21, %s3892_s22  }
  0x47   :  { %3874 = dma.done.wait [#allocation7], 256  }
  0x48   :  { %3875 = vsyncadd [#allocation7], 4294967040 }
  0x49   :  { %3876 = dma.done.wait [#allocation10], 1088  }
  0x4a   :  { %3877 = vsyncadd [#allocation10], 4294966208 }
  0x4b   :  { %3878 = dma.done.wait [#allocation13], 12288  }
  0x4c   :  { %3879 = vsyncadd [#allocation13], 4294955008 }
  0x4d   :  { %3880 = dma.done.wait [#allocation16], 2048  }
  0x4e   :  { %3881 = vsyncadd [#allocation16], 4294965248  ;;  %v5548_v0 = vmov 0.0   ;;  %v5550_v1 = vmov 0   ;;  %v126_v2 = vld [vmem:[#allocation9 + $0x28] sm:$0xff]  ;;  %v125_v3 = vld [vmem:[#allocation9 + $0x20] sm:$0xff] }
  0x4f   :  { %222 = vmatprep.mubr.f32.mxu1 %v5548_v0  ;;  %115 = vst [vmem:[#allocation2] sm:$0x3] %v5548_v0  ;;  %116 = vst [vmem:[#allocation3] sm:$0x3] %v5548_v0  ;;  %627 = vmatprep.mubr.bf16.mxu0 %v5550_v1  ;;  %v122_v4 = vld [vmem:[#allocation9 + $0x8] sm:$0xff]  ;;  %v121_v6 = vld [vmem:[#allocation9] sm:$0xff] }
  0x50   :  { %117 = vst [vmem:[#allocation4] sm:$0x3] %v5548_v0  ;;  %118 = vst [vmem:[#allocation5] sm:$0x3] %v5548_v0  ;;  %186 = vmatprep.subr.mxu1 %v126_v2  ;;  %v3981_v5 = vld [vmem:[#allocation12 + $0xe4] ss:$16 sps:$4 sm:$0xff]  }
  0x51   :  { %5864 = vst [vmem:[#allocation23_spill] sm:$0xff] %v3981_v5  ;;  %187 = vmatpush1.msra.mxu1 %v125_v3  ;;  %v3983_v7 = vld [vmem:[#allocation12 + $0xe0] ss:$16 sps:$4 sm:$0xff]   ;;  %vm151_vm0 = vcmask 130048   ;;  %595 = vmatprep.subr.bf16.mxu0 %v3981_v5  ;;  %v3986_v9 = vld [vmem:[#allocation12 + $0xc4] ss:$16 sps:$4 sm:$0xff]  }
  0x52   :  { %v119_v8 = vld [vmem:[#allocation6] sm:$0xff]  ;;  %188 = vmatprep.subr.mxu1 %v122_v4  ;;  %596 = vmatpush1.bf16.msra.mxu0 %v3983_v7  ;;  %v128_v10 = vld [vmem:[#allocation9 + $0x38] sm:$0xff]  ;;  %vm3898_vm1 = vmmov 0   ;;  %s3899_s16 = smov [#allocation17]  }
  0x53   :  { %189 = vmatpush1.msra.mxu1 %v121_v6  ;;  %v3989_v11 = vld [vmem:[#allocation12 + $0xc0] ss:$16 sps:$4 sm:$0xff]   ;;  %597 = vmatprep.subr.bf16.mxu0 %v3986_v9  ;;  %v120_v12 = vld [vmem:[#allocation6 + $0x8] sm:$0xff]  ;;  %v3999_v18 = vld [vmem:[#allocation12 + $0xec] ss:$16 sps:$4 sm:$0xff]   ;;  %s2913_s17 = sshll.u32 %s3899_s16, 4  ;;  %s2914_s17 = int_to_ptr.vmem [resolvable:$true] %s2913_s17 }
  0x54   :  { %2925 = vmatmul.mubr.msk.f32.vlgmr.msra.gmra.mxu1 %vm151_vm0, %v119_v8  ;;  %v127_v13 = vld [vmem:[#allocation9 + $0x30] sm:$0xff]  ;;  %v124_v14 = vld [vmem:[#allocation9 + $0x18] sm:$0xff]  ;;  %263 = vmatprep.subr.mxu1 %v128_v10  ;;  %5865 = vst [vmem:[#allocation24_spill] sm:$0xff] %v3999_v18  ;;  %s3854_s18 = scalar_lea.vmem %s2914_s17, 32  ;;  %p3859_p3 = scmp.lt.s32.totalorder %s2914_s17, %s2914_s17 }
  0x55   :  { %228 = vmatprep.mubr.f32.mxu1 %v5548_v0  ;;  %v3994_v15 = vld [vmem:[#allocation12 + $0xa4] ss:$16 sps:$4 sm:$0xff]   ;;  %264 = vmatpush1.msra.mxu1 %v127_v13  ;;  %v123_v16 = vld [vmem:[#allocation9 + $0x10] sm:$0xff]  ;;  %v4006_v20 = vld [vmem:[#allocation12 + $0xe8] ss:$16 sps:$4 sm:$0xff]   ;;  %p3855_p2 = scmp.ne.s32.totalorder %s2914_s17, %s3854_s18  ;;  %p3860_p4 = scmp.lt.s32.totalorder %s3854_s18, %s3854_s18 }
  0x56   :  { %598 = vmatpush1.bf16.msra.mxu0 %v3989_v11  ;;  %265 = vmatprep.subr.mxu1 %v124_v14  ;;  %v3997_v17 = vld [vmem:[#allocation12 + $0xa0] ss:$16 sps:$4 sm:$0xff]   ;;  %v4003_v19 = vld [vmem:[#allocation12 + $0x84] ss:$16 sps:$4 sm:$0xff]   ;;  %v4009_v21 = vld [vmem:[#allocation12 + $0xcc] ss:$16 sps:$4 sm:$0xff]  }
  0x57   :  { %599 = vmatprep.subr.bf16.mxu0 %v3994_v15  ;;  %266 = vmatpush1.msra.mxu1 %v123_v16  ;;  %v4012_v22 = vld [vmem:[#allocation12 + $0x80] ss:$16 sps:$4 sm:$0xff]   ;;  %v4016_v23 = vld [vmem:[#allocation12 + $0x64] ss:$16 sps:$4 sm:$0xff]   ;;  %v4019_v24 = vld [vmem:[#allocation12 + $0xc8] ss:$16 sps:$4 sm:$0xff]   ;;  %p3861_p5 = por %p3860_p4, %p3859_p3 }
  0x58   :  { %2926 = vmatmul.mubr.msk.f32.gmra.mxu1 %vm151_vm0, %v120_v12  ;;  %636 = vmatprep.subr.bf16.mxu1 %v3999_v18  ;;  %v4023_v25 = vld [vmem:[#allocation12 + $0xac] ss:$16 sps:$4 sm:$0xff]   ;;  %v4026_v26 = vld [vmem:[#allocation12 + $0x60] ss:$16 sps:$4 sm:$0xff]   ;;  %v4029_v27 = vld [vmem:[#allocation12 + $0x44] ss:$16 sps:$4 sm:$0xff]  }
  0x59   :  { %299 = vmatprep.mubr.f32.mxu1 %v5548_v0  ;;  %v4033_v28 = vld [vmem:[#allocation12 + $0xa8] ss:$16 sps:$4 sm:$0xff]   ;;  %v4037_v29 = vld [vmem:[#allocation12 + $0x8c] ss:$16 sps:$4 sm:$0xff]   ;;  %v4040_v30 = vld [vmem:[#allocation12 + $0x40] ss:$16 sps:$4 sm:$0xff]   ;;  %p3862_p6 = pnand %p3861_p5, %p3855_p2 }
  0x5a   :  { %600 = vmatpush1.bf16.msra.mxu0 %v3997_v17  ;;  %v4043_v31 = vld [vmem:[#allocation12 + $0x24] ss:$16 sps:$4 sm:$0xff]   ;;  %v4046_v32 = vld [vmem:[#allocation12 + $0x88] ss:$16 sps:$4 sm:$0xff]   ;;  %v4049_v33 = vld [vmem:[#allocation12 + $0x20] ss:$16 sps:$4 sm:$0xff]  }
  0x5b   :  { %601 = vmatprep.subr.bf16.mxu0 %v4003_v19  ;;  %v4051_v34 = vld [vmem:[#allocation12 + $0x6c] ss:$16 sps:$4 sm:$0xff]   ;;  %v4054_v35 = vld [vmem:[#allocation12 + $0x68] ss:$16 sps:$4 sm:$0xff]   ;;  %v4056_v36 = vld [vmem:[#allocation12 + $0x4] ss:$16 sps:$4 sm:$0xff]  }
  0x5c   :  { %2927 = vmatmul.mubr.msk.f32.vlgmr.msra.gmra.mxu1 %vm151_vm0, %v119_v8  ;;  %v4059_v37 = vld [vmem:[#allocation12 + $0x4c] ss:$16 sps:$4 sm:$0xff]   ;;  %v4062_v38 = vld [vmem:[#allocation12] ss:$16 sps:$4 sm:$0xff]   ;;  %v430_v39 = vld [vmem:[#allocation2] sm:$0x3] }
  0x5d   :  { %637 = vmatpush1.bf16.msra.mxu1 %v4006_v20  ;;  %305 = vmatprep.mubr.f32.mxu1 %v5548_v0  ;;  %v4066_v40 = vld [vmem:[#allocation12 + $0x48] ss:$16 sps:$4 sm:$0xff]   ;;  %v4069_v41 = vld [vmem:[#allocation12 + $0x2c] ss:$16 sps:$4 sm:$0xff]   ;;  %v434_v42 = vpack.c.bf16 %v430_v39, %v430_v39  ;;  %v4085_v46 = vld [vmem:[#allocation14 + $0xe4] ss:$16 sps:$4 sm:$0xff]  }
  0x5e   :  { %638 = vmatprep.subr.bf16.mxu1 %v4009_v21  ;;  %602 = vmatpush1.bf16.msra.mxu0 %v4012_v22  ;;  %v4074_v43 = vld [vmem:[#allocation12 + $0x28] ss:$16 sps:$4 sm:$0xff]   ;;  %v4076_v44 = vld [vmem:[#allocation12 + $0xc] ss:$16 sps:$4 sm:$0xff]   ;;  %v4089_v48 = vld [vmem:[#allocation14 + $0xe0] ss:$16 sps:$4 sm:$0xff]  }
  0x5f   :  { %603 = vmatprep.subr.bf16.mxu0 %v4016_v23  ;;  %v4080_v45 = vld [vmem:[#allocation12 + $0x8] ss:$16 sps:$4 sm:$0xff]   ;;  %v4087_v47 = vld [vmem:[#allocation14 + $0xec] ss:$16 sps:$4 sm:$0xff]   ;;  %v4093_v50 = vld [vmem:[#allocation14 + $0xc4] ss:$16 sps:$4 sm:$0xff]  }
  0x60   :  { %2928 = vmatmul.mubr.msk.f32.gmra.mxu1 %vm151_vm0, %v120_v12  ;;  %v4091_v49 = vld [vmem:[#allocation14 + $0xe8] ss:$16 sps:$4 sm:$0xff]   ;;  %v4095_v51 = vld [vmem:[#allocation14 + $0xcc] ss:$16 sps:$4 sm:$0xff]   ;;  %v4101_v52 = vld [vmem:[#allocation14 + $0xc0] ss:$16 sps:$4 sm:$0xff]  }
  0x61   :  { %639 = vmatpush1.bf16.msra.mxu1 %v4019_v24  ;;  %668 = vmatprep.mubr.bf16.mxu1 %v5550_v1  ;;  %v4103_v53 = vld [vmem:[#allocation14 + $0xc8] ss:$16 sps:$4 sm:$0xff]   ;;  %v4109_v54 = vld [vmem:[#allocation14 + $0xa4] ss:$16 sps:$4 sm:$0xff]   ;;  %v4111_v55 = vld [vmem:[#allocation14 + $0xac] ss:$16 sps:$4 sm:$0xff]  }
  0x62   :  { %640 = vmatprep.subr.bf16.mxu1 %v4023_v25  ;;  %604 = vmatpush1.bf16.msra.mxu0 %v4026_v26  ;;  %v4113_v56 = vld [vmem:[#allocation14 + $0xa0] ss:$16 sps:$4 sm:$0xff]   ;;  %v4115_v57 = vld [vmem:[#allocation14 + $0xa8] ss:$16 sps:$4 sm:$0xff]   ;;  %v4121_v58 = vld [vmem:[#allocation14 + $0x84] ss:$16 sps:$4 sm:$0xff]  }
  0x63   :  { %605 = vmatprep.subr.bf16.mxu0 %v4029_v27  ;;  %5866 = vst [vmem:[#allocation25_spill] sm:$0xff] %v4115_v57  ;;  %5867 = vst [vmem:[#allocation26_spill] sm:$0xff] %v4121_v58  ;;  %v4123_v59 = vld [vmem:[#allocation14 + $0x8c] ss:$16 sps:$4 sm:$0xff]   ;;  %v4125_v60 = vld [vmem:[#allocation14 + $0x80] ss:$16 sps:$4 sm:$0xff]  }
  0x64   :  { %5868 = vst [vmem:[#allocation27_spill] sm:$0xff] %v4123_v59  ;;  %5869 = vst [vmem:[#allocation28_spill] sm:$0xff] %v4125_v60  ;;  %v4127_v61 = vld [vmem:[#allocation14 + $0x88] ss:$16 sps:$4 sm:$0xff]   ;;  %v4133_v62 = vld [vmem:[#allocation14 + $0x64] ss:$16 sps:$4 sm:$0xff]  }
  0x65   :  { %641 = vmatpush1.bf16.msra.mxu1 %v4033_v28  ;;  %5870 = vst [vmem:[#allocation29_spill] sm:$0xff] %v4127_v61  ;;  %5871 = vst [vmem:[#allocation30_spill] sm:$0xff] %v4133_v62  ;;  %v4135_v63 = vld [vmem:[#allocation14 + $0x6c] ss:$16 sps:$4 sm:$0xff]   ;;  %v4137_v2 = vld [vmem:[#allocation14 + $0x60] ss:$16 sps:$4 sm:$0xff]  }
  0x66   :  { %642 = vmatprep.subr.bf16.mxu1 %v4037_v29  ;;  %606 = vmatpush1.bf16.msra.mxu0 %v4040_v30  ;;  %5872 = vst [vmem:[#allocation31_spill] sm:$0xff] %v4135_v63  ;;  %5873 = vst [vmem:[#allocation32_spill] sm:$0xff] %v4137_v2  ;;  %v4139_v3 = vld [vmem:[#allocation14 + $0x68] ss:$16 sps:$4 sm:$0xff]   ;;  %v4145_v4 = vld [vmem:[#allocation14 + $0x44] ss:$16 sps:$4 sm:$0xff]  }
  0x67   :  { %607 = vmatprep.subr.bf16.mxu0 %v4043_v31  ;;  %5874 = vst [vmem:[#allocation33_spill] sm:$0xff] %v4139_v3  ;;  %5875 = vst [vmem:[#allocation34_spill] sm:$0xff] %v4145_v4  ;;  %v4147_v6 = vld [vmem:[#allocation14 + $0x4c] ss:$16 sps:$4 sm:$0xff]   ;;  %v4149_v8 = vld [vmem:[#allocation14 + $0x40] ss:$16 sps:$4 sm:$0xff]  }
  0x68   :  { %5876 = vst [vmem:[#allocation35_spill] sm:$0xff] %v4147_v6  ;;  %5877 = vst [vmem:[#allocation36_spill] sm:$0xff] %v4149_v8  ;;  %v4151_v10 = vld [vmem:[#allocation14 + $0x48] ss:$16 sps:$4 sm:$0xff]   ;;  %v4157_v12 = vld [vmem:[#allocation14 + $0x24] ss:$16 sps:$4 sm:$0xff]  }
  0x69   :  { %643 = vmatpush1.bf16.msra.mxu1 %v4046_v32  ;;  %5878 = vst [vmem:[#allocation37_spill] sm:$0xff] %v4151_v10  ;;  %5879 = vst [vmem:[#allocation38_spill] sm:$0xff] %v4157_v12  ;;  %v4159_v13 = vld [vmem:[#allocation14 + $0x2c] ss:$16 sps:$4 sm:$0xff]   ;;  %v4161_v14 = vld [vmem:[#allocation14 + $0x20] ss:$16 sps:$4 sm:$0xff]  }
  0x6a   :  { %644 = vmatprep.subr.bf16.mxu1 %v4051_v34  ;;  %608 = vmatpush1.bf16.msra.mxu0 %v4049_v33  ;;  %5880 = vst [vmem:[#allocation39_spill] sm:$0xff] %v4159_v13  ;;  %5881 = vst [vmem:[#allocation40_spill] sm:$0xff] %v4161_v14  ;;  %v4163_v16 = vld [vmem:[#allocation14 + $0x28] ss:$16 sps:$4 sm:$0xff]   ;;  %v4169_v39 = vld [vmem:[#allocation14 + $0x4] ss:$16 sps:$4 sm:$0xff]  }
  0x6b   :  { %609 = vmatprep.subr.bf16.mxu0 %v4056_v36  ;;  %5882 = vst [vmem:[#allocation41_spill] sm:$0xff] %v4163_v16  ;;  %5883 = vst [vmem:[#allocation42_spill] sm:$0xff] %v4169_v39  ;;  %v4173_v0 = vld [vmem:[#allocation14] ss:$16 sps:$4 sm:$0xff]   ;;  %v4175_v1 = vld [vmem:[#allocation14 + $0x8] ss:$16 sps:$4 sm:$0xff]  }
  0x6c   :  { %5885 = vst [vmem:[#allocation44_spill] sm:$0xff] %v4173_v0  ;;  %5886 = vst [vmem:[#allocation45_spill] sm:$0xff] %v4175_v1 }
  0x6d   :  { %645 = vmatpush1.bf16.msra.mxu1 %v4054_v35 }
  0x6e   :  { %646 = vmatprep.subr.bf16.mxu1 %v4059_v37  ;;  %610 = vmatpush1.bf16.msra.mxu0 %v4062_v38 }
  0x6f   :  { %1027 = vmatprep.subr.bf16.mxu0 %v4085_v46 }
  0x71   :  { %647 = vmatpush1.bf16.msra.mxu1 %v4066_v40  ;;  %628 = vmatmul.mubr.bf16.vlgmr.msra.gmra.mxu0 %v434_v42 }
  0x72   :  { %648 = vmatprep.subr.bf16.mxu1 %v4069_v41  ;;  %1028 = vmatpush1.bf16.msra.mxu0 %v4089_v48 }
  0x73   :  { %1029 = vmatprep.subr.bf16.mxu0 %v4093_v50 }
  0x75   :  { %649 = vmatpush1.bf16.msra.mxu1 %v4074_v43 }
  0x76   :  { %650 = vmatprep.subr.bf16.mxu1 %v4076_v44  ;;  %1030 = vmatpush1.bf16.msra.mxu0 %v4101_v52 }
  0x77   :  { %1031 = vmatprep.subr.bf16.mxu0 %v4109_v54 }
  0x79   :  { %651 = vmatpush1.bf16.msra.mxu1 %v4080_v45 }
  0x7a   :  { %1068 = vmatprep.subr.bf16.mxu1 %v4087_v47  ;;  %1032 = vmatpush1.bf16.msra.mxu0 %v4113_v56 }
  0x7b   :  { %1033 = vmatprep.subr.bf16.mxu0 %v4121_v58 }
  0x7c   :  { %669 = vmatmul.mubr.bf16.vlgmr.msra.gmra.mxu1 %v434_v42  ;;  %v4171_v42 = vld [vmem:[#allocation14 + $0xc] ss:$16 sps:$4 sm:$0xff]  }
  0x7d   :  { %1069 = vmatpush1.bf16.msra.mxu1 %v4091_v49  ;;  %5884 = vst [vmem:[#allocation43_spill] sm:$0xff] %v4171_v42 }
  0x7e   :  { %1070 = vmatprep.subr.bf16.mxu1 %v4095_v51  ;;  %1034 = vmatpush1.bf16.msra.mxu0 %v4125_v60 }
  0x7f   :  { %1035 = vmatprep.subr.bf16.mxu0 %v4133_v62 }
  0x81   :  { %1071 = vmatpush1.bf16.msra.mxu1 %v4103_v53 }
  0x82   :  { %1072 = vmatprep.subr.bf16.mxu1 %v4111_v55  ;;  %1036 = vmatpush1.bf16.msra.mxu0 %v4137_v2 }
  0x83   :  { %1037 = vmatprep.subr.bf16.mxu0 %v4145_v4 }
  0x85   :  { %1073 = vmatpush1.bf16.msra.mxu1 %v4115_v57 }
  0x86   :  { %1074 = vmatprep.subr.bf16.mxu1 %v4123_v59  ;;  %1038 = vmatpush1.bf16.msra.mxu0 %v4149_v8  ;;  %v4253_v8 = vld [vmem:[#allocation14 + $0x12c] ss:$16 sps:$4 sm:$0xff]  }
  0x87   :  { %1039 = vmatprep.subr.bf16.mxu0 %v4157_v12  ;;  %v4187_v12 = vld [vmem:[#allocation14 + $0x1e8] ss:$16 sps:$4 sm:$0xff]   ;;  %5912 = vst [vmem:[#allocation71_spill] sm:$0xff] %v4253_v8 }
  0x88   :  { %5890 = vst [vmem:[#allocation49_spill] sm:$0xff] %v4187_v12 }
  0x89   :  { %1075 = vmatpush1.bf16.msra.mxu1 %v4127_v61 }
  0x8a   :  { %1076 = vmatprep.subr.bf16.mxu1 %v4135_v63  ;;  %1040 = vmatpush1.bf16.msra.mxu0 %v4161_v14  ;;  %v4183_v14 = vld [vmem:[#allocation14 + $0x1ec] ss:$16 sps:$4 sm:$0xff]  }
  0x8b   :  { %1041 = vmatprep.subr.bf16.mxu0 %v4169_v39  ;;  %5888 = vst [vmem:[#allocation47_spill] sm:$0xff] %v4183_v14  ;;  %v4199_v39 = vld [vmem:[#allocation14 + $0x1c8] ss:$16 sps:$4 sm:$0xff]  }
  0x8c   :  { %5894 = vst [vmem:[#allocation53_spill] sm:$0xff] %v4199_v39 }
  0x8d   :  { %1077 = vmatpush1.bf16.msra.mxu1 %v4139_v3 }
  0x8e   :  { %1078 = vmatprep.subr.bf16.mxu1 %v4147_v6  ;;  %1042 = vmatpush1.bf16.msra.mxu0 %v4173_v0  ;;  %v4195_v0 = vld [vmem:[#allocation14 + $0x1cc] ss:$16 sps:$4 sm:$0xff]  }
  0x8f   :  { %5892 = vst [vmem:[#allocation51_spill] sm:$0xff] %v4195_v0 }
  0x91   :  { %1079 = vmatpush1.bf16.msra.mxu1 %v4151_v10  ;;  %v4237_v10 = vld [vmem:[#allocation14 + $0x144] ss:$16 sps:$4 sm:$0xff]  }
  0x92   :  { %1080 = vmatprep.subr.bf16.mxu1 %v4159_v13  ;;  %v4181_v13 = vld [vmem:[#allocation14 + $0x1e4] ss:$16 sps:$4 sm:$0xff]   ;;  %5907 = vst [vmem:[#allocation66_spill] sm:$0xff] %v4237_v10 }
  0x93   :  { %5887 = vst [vmem:[#allocation46_spill] sm:$0xff] %v4181_v13  ;;  %1043 = vmatprep.subr.bf16.mxu0 %v4181_v13  ;;  %v4211_v13 = vld [vmem:[#allocation14 + $0x1a8] ss:$16 sps:$4 sm:$0xff]  }
  0x94   :  { %5898 = vst [vmem:[#allocation57_spill] sm:$0xff] %v4211_v13 }
  0x95   :  { %1081 = vmatpush1.bf16.msra.mxu1 %v4163_v16  ;;  %v4185_v16 = vld [vmem:[#allocation14 + $0x1e0] ss:$16 sps:$4 sm:$0xff]  }
  0x96   :  { %1082 = vmatprep.subr.bf16.mxu1 %v4171_v42  ;;  %5889 = vst [vmem:[#allocation48_spill] sm:$0xff] %v4185_v16  ;;  %1044 = vmatpush2.bf16.msra.mxu0 %v4185_v16  ;;  %v4193_v42 = vld [vmem:[#allocation14 + $0x1c4] ss:$16 sps:$4 sm:$0xff]   ;;  %v4207_v16 = vld [vmem:[#allocation14 + $0x1ac] ss:$16 sps:$4 sm:$0xff]  }
  0x97   :  { %5891 = vst [vmem:[#allocation50_spill] sm:$0xff] %v4193_v42  ;;  %1045 = vmatprep.subr.bf16.mxu0 %v4193_v42  ;;  %5896 = vst [vmem:[#allocation55_spill] sm:$0xff] %v4207_v16  ;;  %v4223_v42 = vld [vmem:[#allocation14 + $0x188] ss:$16 sps:$4 sm:$0xff]  }
  0x98   :  { %5902 = vst [vmem:[#allocation61_spill] sm:$0xff] %v4223_v42 }
  0x99   :  { %1083 = vmatpush1.bf16.msra.mxu1 %v4175_v1  ;;  %v4197_v1 = vld [vmem:[#allocation14 + $0x1c0] ss:$16 sps:$4 sm:$0xff]  }
  0x9a   :  { %1084 = vmatprep.subr.bf16.mxu1 %v4183_v14  ;;  %5893 = vst [vmem:[#allocation52_spill] sm:$0xff] %v4197_v1  ;;  %1046 = vmatpush2.bf16.msra.mxu0 %v4197_v1  ;;  %v4205_v14 = vld [vmem:[#allocation14 + $0x1a4] ss:$16 sps:$4 sm:$0xff]   ;;  %v4219_v1 = vld [vmem:[#allocation14 + $0x18c] ss:$16 sps:$4 sm:$0xff]  }
  0x9b   :  { %5895 = vst [vmem:[#allocation54_spill] sm:$0xff] %v4205_v14  ;;  %1047 = vmatprep.subr.bf16.mxu0 %v4205_v14  ;;  %5900 = vst [vmem:[#allocation59_spill] sm:$0xff] %v4219_v1  ;;  %v4235_v14 = vld [vmem:[#allocation14 + $0x168] ss:$16 sps:$4 sm:$0xff]  }
  0x9c   :  { %5906 = vst [vmem:[#allocation65_spill] sm:$0xff] %v4235_v14 }
  0x9d   :  { %1085 = vmatpush2.bf16.msra.mxu1 %v4187_v12  ;;  %v4209_v12 = vld [vmem:[#allocation14 + $0x1a0] ss:$16 sps:$4 sm:$0xff]  }
  0x9e   :  { %1086 = vmatprep.subr.bf16.mxu1 %v4195_v0  ;;  %5897 = vst [vmem:[#allocation56_spill] sm:$0xff] %v4209_v12  ;;  %1048 = vmatpush2.bf16.msra.mxu0 %v4209_v12  ;;  %v4217_v0 = vld [vmem:[#allocation14 + $0x184] ss:$16 sps:$4 sm:$0xff]   ;;  %v4231_v12 = vld [vmem:[#allocation14 + $0x16c] ss:$16 sps:$4 sm:$0xff]  }
  0x9f   :  { %5899 = vst [vmem:[#allocation58_spill] sm:$0xff] %v4217_v0  ;;  %1049 = vmatprep.subr.bf16.mxu0 %v4217_v0  ;;  %5904 = vst [vmem:[#allocation63_spill] sm:$0xff] %v4231_v12  ;;  %v4241_v0 = vld [vmem:[#allocation14 + $0x14c] ss:$16 sps:$4 sm:$0xff]  }
  0xa0   :  { %5908 = vst [vmem:[#allocation67_spill] sm:$0xff] %v4241_v0 }
  0xa1   :  { %1087 = vmatpush2.bf16.msra.mxu1 %v4199_v39  ;;  %v4221_v39 = vld [vmem:[#allocation14 + $0x180] ss:$16 sps:$4 sm:$0xff]  }
  0xa2   :  { %1088 = vmatprep.subr.bf16.mxu1 %v4207_v16  ;;  %5901 = vst [vmem:[#allocation60_spill] sm:$0xff] %v4221_v39  ;;  %1050 = vmatpush2.bf16.msra.mxu0 %v4221_v39  ;;  %v4229_v16 = vld [vmem:[#allocation14 + $0x164] ss:$16 sps:$4 sm:$0xff]   ;;  %v4247_v39 = vld [vmem:[#allocation14 + $0x148] ss:$16 sps:$4 sm:$0xff]  }
  0xa3   :  { %5903 = vst [vmem:[#allocation62_spill] sm:$0xff] %v4229_v16  ;;  %1051 = vmatprep.subr.bf16.mxu0 %v4229_v16  ;;  %5910 = vst [vmem:[#allocation69_spill] sm:$0xff] %v4247_v39  ;;  %v432_v16 = vld [vmem:[#allocation4] sm:$0x3] }
  0xa5   :  { %1089 = vmatpush2.bf16.msra.mxu1 %v4211_v13  ;;  %v4233_v13 = vld [vmem:[#allocation14 + $0x160] ss:$16 sps:$4 sm:$0xff]  }
  0xa6   :  { %1090 = vmatprep.subr.bf16.mxu1 %v4219_v1  ;;  %5905 = vst [vmem:[#allocation64_spill] sm:$0xff] %v4233_v13  ;;  %1052 = vmatpush2.bf16.msra.mxu0 %v4233_v13  ;;  %v4251_v1 = vld [vmem:[#allocation14 + $0x124] ss:$16 sps:$4 sm:$0xff]   ;;  %v4257_v13 = vld [vmem:[#allocation14 + $0x120] ss:$16 sps:$4 sm:$0xff]  }
  0xa7   :  { %1053 = vmatprep.subr.bf16.mxu0 %v4237_v10  ;;  %5911 = vst [vmem:[#allocation70_spill] sm:$0xff] %v4251_v1  ;;  %5913 = vst [vmem:[#allocation72_spill] sm:$0xff] %v4257_v13  ;;  %v4263_v10 = vld [vmem:[#allocation14 + $0x104] ss:$16 sps:$4 sm:$0xff]  }
  0xa8   :  { %5915 = vst [vmem:[#allocation74_spill] sm:$0xff] %v4263_v10 }
  0xa9   :  { %1091 = vmatpush2.bf16.msra.mxu1 %v4223_v42  ;;  %v4245_v42 = vld [vmem:[#allocation14 + $0x140] ss:$16 sps:$4 sm:$0xff]  }
  0xaa   :  { %1092 = vmatprep.subr.bf16.mxu1 %v4231_v12  ;;  %5909 = vst [vmem:[#allocation68_spill] sm:$0xff] %v4245_v42  ;;  %v706_v12 = vpack.c.bf16 %v432_v16, %v432_v16  ;;  %1054 = vmatpush2.bf16.msra.mxu0 %v4245_v42  ;;  %v4269_v16 = vld [vmem:[#allocation14 + $0x100] ss:$16 sps:$4 sm:$0xff]  }
  0xab   :  { %1055 = vmatprep.subr.bf16.mxu0 %v4251_v1  ;;  %5917 = vst [vmem:[#allocation76_spill] sm:$0xff] %v4269_v16 }
  0xac   :  { %1059 = vmatprep.mubr.bf16.mxu0 %v706_v12  ;;  %1100 = vmatprep.mubr.bf16.mxu1 %v706_v12  ;;  %v131_v12 = vlaneseq }
  0xad   :  { %1093 = vmatpush2.bf16.msra.mxu1 %v4235_v14  ;;  %v4259_v14 = vld [vmem:[#allocation14 + $0x128] ss:$16 sps:$4 sm:$0xff]  }
  0xae   :  { %1094 = vmatprep.subr.bf16.mxu1 %v4241_v0  ;;  %5914 = vst [vmem:[#allocation73_spill] sm:$0xff] %v4259_v14  ;;  %v4265_v0 = vld [vmem:[#allocation14 + $0x10c] ss:$16 sps:$4 sm:$0xff]   ;;  %1056 = vmatpush2.bf16.msra.mxu0 %v4257_v13  ;;  %v4279_v13 = vshrl.u32 %v131_v12, 7 }
  0xaf   :  { %5916 = vst [vmem:[#allocation75_spill] sm:$0xff] %v4265_v0  ;;  %1057 = vmatprep.subr.bf16.mxu0 %v4263_v10 }
  0xb0   :  { %5919 = vst [vmem:[#allocation78_spill] sm:$0xff] %v4279_v13  ;;  %v5653_v42 = vsub.s32 1, %v4279_v13  ;;  %v5662_v12 = vsub.s32 2, %v4279_v13  ;;  %v5667_v3 = vsub.s32 3, %v4279_v13 }
  0xb1   :  { %1095 = vmatpush2.bf16.msra.mxu1 %v4247_v39  ;;  %v4271_v39 = vld [vmem:[#allocation14 + $0x108] ss:$16 sps:$4 sm:$0xff]  }
  0xb2   :  { %1096 = vmatprep.subr.bf16.mxu1 %v4253_v8  ;;  %5918 = vst [vmem:[#allocation77_spill] sm:$0xff] %v4271_v39  ;;  %1058 = vmatpush2.bf16.msra.mxu0 %v4269_v16  ;;  %v129_v8 = vld [vmem:[#allocation11] sm:$0xf] }
  0xb3   :  { %1133 = vmatprep.subr.bf16.mxu0 %v3981_v5  ;;  %v142_v63 = vrot.slane %v129_v8, %v5662_v12 }
  0xb5   :  { %1097 = vmatpush2.bf16.msra.mxu1 %v4259_v14  ;;  %v5650_v14 = vsub.s32 0, %v4279_v13 }
  0xb6   :  { %1098 = vmatprep.subr.bf16.mxu1 %v4265_v0 }
  0xb7   :  { %v134_v0 = vrot.slane %v129_v8, %v5650_v14  ;;  %v146_v14 = vrot.slane %v129_v8, %v5667_v3 }
  0xb9   :  { %1099 = vmatpush2.bf16.msra.mxu1 %v4271_v39  ;;  %v138_v39 = vrot.slane %v129_v8, %v5653_v42 }
  0xba   :  { %1174 = vmatprep.subr.bf16.mxu1 %v3999_v18 }
 0x114   :  { %v224_v1 = vpop.f32.mrf.mxu1 }
 0x116   :  { %v226_v10 = vpop.f32.mrf.mxu1 }
 0x118   :  { %v230_v16 = vpop.f32.mrf.mxu1 }
 0x119   :  { %v4287_v5 = vadd.f32 %v230_v16, %v134_v0 }
 0x11a   :  { %v232_v18 = vpop.f32.mrf.mxu1 }
 0x11b   :  { %5920 = vst [vmem:[#allocation79_spill] sm:$0xff] %v4287_v5  ;;  %v4289_v6 = vadd.f32 %v232_v18, %v138_v39  ;;  %v4301_v18 = vadd.f32 %v224_v1, %v134_v0  ;;  %v4303_v5 = vadd.f32 %v226_v10, %v138_v39 }
 0x11c   :  { %v301_v4 = vpop.f32.mrf.mxu1 }
 0x11d   :  { %5921 = vst [vmem:[#allocation80_spill] sm:$0xff] %v4289_v6  ;;  %v4310_v10 = vadd.f32 %v301_v4, %v142_v63 }
 0x11e   :  { %v303_v2 = vpop.f32.mrf.mxu1 }
 0x11f   :  { %v4307_v3 = vadd.f32 %v303_v2, %v146_v14 }
 0x120   :  { %v307_v62 = vpop.f32.mrf.mxu1 }
 0x121   :  { %v4297_v61 = vadd.f32 %v307_v62, %v142_v63 }
 0x122   :  { %v309_v16 = vpop.f32.mrf.mxu1 }
 0x123   :  { %5922 = vst [vmem:[#allocation81_spill] sm:$0xff] %v4297_v61  ;;  %v4299_v42 = vadd.f32 %v309_v16, %v146_v14  ;;  %v431_v14 = vld [vmem:[#allocation3] sm:$0x3] }
 0x125   :  { %5923 = vst [vmem:[#allocation82_spill] sm:$0xff] %v4299_v42  ;;  %v5963_v42 = vld [vmem:[#allocation63_spill] sm:$0xff] }
 0x131   :  { %v629_v6 = vpop.f32.mrf.mxu0 }
 0x132   :  { %v677_v60 = vadd.f32 %v629_v6, %v4301_v18 }
 0x133   :  { %v631_v59 = vpop.f32.mrf.mxu0 }
 0x134   :  { %v2961_v58 = vmul.f32 -1.442695, %v677_v60  ;;  %v678_v12 = vadd.f32 %v631_v59, %v4303_v5 }
 0x135   :  { %v633_v57 = vpop.f32.mrf.mxu0 }
 0x136   :  { %3286 = vpow2.f32 %v2961_v58  ;;  %v2962_v13 = vmul.f32 -1.442695, %v678_v12 }
 0x137   :  { %v634_v8 = vpop.f32.mrf.mxu0 }
 0x138   :  { %3288 = vpow2.f32 %v2962_v13 }
 0x13c   :  { %v670_v62 = vpop.f32.mrf.mxu1 }
 0x13d   :  { %v679_v60 = vadd.f32 %v670_v62, %v4310_v10 }
 0x13e   :  { %v672_v16 = vpop.f32.mrf.mxu1 }
 0x13f   :  { %v680_v0 = vadd.f32 %v672_v16, %v4307_v3 }
 0x140   :  { %v674_v1 = vpop.f32.mrf.mxu1 }
 0x141   :  { %v2963_v39 = vmul.f32 -1.442695, %v680_v0 }
 0x142   :  { %v675_v6 = vpop.f32.mrf.mxu1 }
 0x143   :  { %v3287_v61 = vpop.eup %3286  ;;  %3290 = vpow2.f32 %v2963_v39  ;;  %v5924_v6 = vmov 0  }
 0x144   :  { %v684_v59 = vadd.f32 1.0, %v3287_v61 }
 0x145   :  { %v3289_v57 = vpop.eup %3288 }
 0x146   :  { %3292 = vrcp.f32 %v684_v59  ;;  %v690_v58 = vadd.f32 1.0, %v3289_v57  ;;  %v5948_v59 = vld [vmem:[#allocation48_spill] sm:$0xff]  ;;  %v5949_v57 = vld [vmem:[#allocation49_spill] sm:$0xff] }
 0x147   :  { %3294 = vtanh.f32 %v679_v60  ;;  %v5947_v60 = vld [vmem:[#allocation47_spill] sm:$0xff] }
 0x148   :  { %3296 = vrcp.f32 %v690_v58  ;;  %v5950_v58 = vld [vmem:[#allocation50_spill] sm:$0xff] }
 0x150   :  { %v3291_v2 = vpop.eup %3290 }
 0x151   :  { %v697_v16 = vadd.f32 1.0, %v3291_v2  ;;  %v5951_v2 = vld [vmem:[#allocation51_spill] sm:$0xff] }
 0x153   :  { %v3293_v13 = vpop.eup %3292  ;;  %3298 = vrcp.f32 %v697_v16  ;;  %v5956_v16 = vld [vmem:[#allocation56_spill] sm:$0xff] }
 0x154   :  { %v3295_v12 = vpop.eup %3294 }
 0x155   :  { %v3297_v8 = vpop.eup %3296  ;;  %v701_v4 = vmul.f32 %v3295_v12, %v3293_v13  ;;  %v5952_v13 = vld [vmem:[#allocation52_spill] sm:$0xff]  ;;  %v5954_v12 = vld [vmem:[#allocation54_spill] sm:$0xff] }
 0x156   :  { %v700_v63 = vmul.f32 %v3297_v8, %v431_v14  ;;  %v5953_v14 = vld [vmem:[#allocation53_spill] sm:$0xff]  ;;  %v5955_v8 = vld [vmem:[#allocation55_spill] sm:$0xff] }
 0x158   :  { %v4313_v0 = vadd.f32 %v701_v4, %v700_v63  ;;  %v5957_v63 = vld [vmem:[#allocation57_spill] sm:$0xff]  ;;  %v5958_v4 = vld [vmem:[#allocation58_spill] sm:$0xff] }
 0x15a   :  { %3300 = vtanh.f32 %v4313_v0 }
 0x160   :  { %v3299_v61 = vpop.eup %3298 }
 0x167   :  { %v3301_v62 = vpop.eup %3300 }
 0x168   :  { %v704_v1 = vmul.f32 %v3301_v62, %v3299_v61  ;;  %v5959_v61 = vld [vmem:[#allocation59_spill] sm:$0xff]  ;;  %v5960_v62 = vld [vmem:[#allocation60_spill] sm:$0xff] }
 0x16a   :  { %v705_v39 = vpack.c.bf16 %v704_v1, %v704_v1  ;;  %v5961_v1 = vld [vmem:[#allocation61_spill] sm:$0xff] }
 0x16c   :  { %1060 = vmatmul.mubr.bf16.vlgmr.msra.gmra.mxu0 %v705_v39  ;;  %1101 = vmatmul.mubr.bf16.vlgmr.msra.gmra.mxu1 %v705_v39 }
 0x16d   :  { %1134 = vmatpush1.bf16.msra.mxu0 %v3983_v7  ;;  %1175 = vmatpush1.bf16.msra.mxu1 %v4006_v20  ;;  %v5925_v7 = vld [vmem:[#allocation25_spill] sm:$0xff]  ;;  %v5931_v20 = vld [vmem:[#allocation31_spill] sm:$0xff] }
 0x16e   :  { %1135 = vmatprep.subr.bf16.mxu0 %v3986_v9  ;;  %1176 = vmatprep.subr.bf16.mxu1 %v4009_v21  ;;  %v5926_v9 = vld [vmem:[#allocation26_spill] sm:$0xff]  ;;  %v5932_v21 = vld [vmem:[#allocation32_spill] sm:$0xff] }
 0x16f   :  { %1165 = vmatprep.mubr.bf16.mxu0 %v5924_v6  ;;  %1206 = vmatprep.mubr.bf16.mxu1 %v5924_v6 }
 0x171   :  { %1136 = vmatpush1.bf16.msra.mxu0 %v3989_v11  ;;  %1177 = vmatpush1.bf16.msra.mxu1 %v4019_v24  ;;  %v5927_v11 = vld [vmem:[#allocation27_spill] sm:$0xff] }
 0x172   :  { %1137 = vmatprep.subr.bf16.mxu0 %v3994_v15  ;;  %1178 = vmatprep.subr.bf16.mxu1 %v4023_v25  ;;  %v5928_v15 = vld [vmem:[#allocation28_spill] sm:$0xff]  ;;  %v5935_v24 = vld [vmem:[#allocation35_spill] sm:$0xff] }
 0x173   :  { %v5936_v25 = vld [vmem:[#allocation36_spill] sm:$0xff] }
 0x175   :  { %1138 = vmatpush1.bf16.msra.mxu0 %v3997_v17  ;;  %1179 = vmatpush1.bf16.msra.mxu1 %v4033_v28  ;;  %v5929_v17 = vld [vmem:[#allocation29_spill] sm:$0xff]  ;;  %v5939_v28 = vld [vmem:[#allocation39_spill] sm:$0xff] }
 0x176   :  { %1139 = vmatprep.subr.bf16.mxu0 %v4003_v19  ;;  %1180 = vmatprep.subr.bf16.mxu1 %v4037_v29  ;;  %v5930_v19 = vld [vmem:[#allocation30_spill] sm:$0xff]  ;;  %v5940_v29 = vld [vmem:[#allocation40_spill] sm:$0xff] }
 0x179   :  { %1140 = vmatpush1.bf16.msra.mxu0 %v4012_v22  ;;  %1181 = vmatpush1.bf16.msra.mxu1 %v4046_v32  ;;  %v5933_v22 = vld [vmem:[#allocation33_spill] sm:$0xff]  ;;  %v5943_v32 = vld [vmem:[#allocation43_spill] sm:$0xff] }
 0x17a   :  { %1141 = vmatprep.subr.bf16.mxu0 %v4016_v23  ;;  %1182 = vmatprep.subr.bf16.mxu1 %v4051_v34  ;;  %v5934_v23 = vld [vmem:[#allocation34_spill] sm:$0xff] }
 0x17d   :  { %1142 = vmatpush1.bf16.msra.mxu0 %v4026_v26  ;;  %1183 = vmatpush1.bf16.msra.mxu1 %v4054_v35  ;;  %v5937_v26 = vld [vmem:[#allocation37_spill] sm:$0xff] }
 0x17e   :  { %1143 = vmatprep.subr.bf16.mxu0 %v4029_v27  ;;  %1184 = vmatprep.subr.bf16.mxu1 %v4059_v37  ;;  %v5938_v27 = vld [vmem:[#allocation38_spill] sm:$0xff] }
 0x181   :  { %1144 = vmatpush1.bf16.msra.mxu0 %v4040_v30  ;;  %1185 = vmatpush1.bf16.msra.mxu1 %v4066_v40  ;;  %v5941_v30 = vld [vmem:[#allocation41_spill] sm:$0xff] }
 0x182   :  { %1145 = vmatprep.subr.bf16.mxu0 %v4043_v31  ;;  %1186 = vmatprep.subr.bf16.mxu1 %v4069_v41  ;;  %v5942_v31 = vld [vmem:[#allocation42_spill] sm:$0xff] }
 0x185   :  { %1146 = vmatpush1.bf16.msra.mxu0 %v4049_v33  ;;  %1187 = vmatpush1.bf16.msra.mxu1 %v4074_v43  ;;  %v5944_v33 = vld [vmem:[#allocation44_spill] sm:$0xff] }
 0x186   :  { %1147 = vmatprep.subr.bf16.mxu0 %v4056_v36  ;;  %1188 = vmatprep.subr.bf16.mxu1 %v4076_v44  ;;  %v5945_v36 = vld [vmem:[#allocation45_spill] sm:$0xff] }
 0x189   :  { %1148 = vmatpush1.bf16.msra.mxu0 %v4062_v38  ;;  %1189 = vmatpush1.bf16.msra.mxu1 %v4080_v45  ;;  %v5946_v38 = vld [vmem:[#allocation46_spill] sm:$0xff] }
 0x18a   :  { %1269 = vmatprep.subr.bf16.mxu0 %v4085_v46  ;;  %1310 = vmatprep.subr.bf16.mxu1 %v4087_v47 }
 0x18c   :  { %1166 = vmatmul.mubr.bf16.vlgmr.msra.gmra.mxu0 %v705_v39  ;;  %1207 = vmatmul.mubr.bf16.vlgmr.msra.gmra.mxu1 %v705_v39  ;;  %v5962_v39 = vld [vmem:[#allocation62_spill] sm:$0xff] }
 0x18d   :  { %1270 = vmatpush1.bf16.msra.mxu0 %v4089_v48  ;;  %1311 = vmatpush1.bf16.msra.mxu1 %v4091_v49 }
 0x18e   :  { %1271 = vmatprep.subr.bf16.mxu0 %v4093_v50  ;;  %1312 = vmatprep.subr.bf16.mxu1 %v4095_v51 }
 0x191   :  { %1272 = vmatpush1.bf16.msra.mxu0 %v4101_v52  ;;  %1313 = vmatpush1.bf16.msra.mxu1 %v4103_v53 }
 0x192   :  { %1273 = vmatprep.subr.bf16.mxu0 %v4109_v54  ;;  %1314 = vmatprep.subr.bf16.mxu1 %v4111_v55 }
 0x195   :  { %1274 = vmatpush1.bf16.msra.mxu0 %v4113_v56  ;;  %1315 = vmatpush1.bf16.msra.mxu1 %v5925_v7 }
 0x196   :  { %1275 = vmatprep.subr.bf16.mxu0 %v5926_v9  ;;  %1316 = vmatprep.subr.bf16.mxu1 %v5927_v11 }
 0x199   :  { %1276 = vmatpush1.bf16.msra.mxu0 %v5928_v15  ;;  %1317 = vmatpush1.bf16.msra.mxu1 %v5929_v17 }
 0x19a   :  { %1277 = vmatprep.subr.bf16.mxu0 %v5930_v19  ;;  %1318 = vmatprep.subr.bf16.mxu1 %v5931_v20 }
 0x19d   :  { %1278 = vmatpush1.bf16.msra.mxu0 %v5932_v21  ;;  %1319 = vmatpush1.bf16.msra.mxu1 %v5933_v22 }
 0x19e   :  { %1279 = vmatprep.subr.bf16.mxu0 %v5934_v23  ;;  %1320 = vmatprep.subr.bf16.mxu1 %v5935_v24 }
 0x1a1   :  { %1280 = vmatpush1.bf16.msra.mxu0 %v5936_v25  ;;  %1321 = vmatpush1.bf16.msra.mxu1 %v5937_v26 }
 0x1a2   :  { %1281 = vmatprep.subr.bf16.mxu0 %v5938_v27  ;;  %1322 = vmatprep.subr.bf16.mxu1 %v5939_v28 }
 0x1a5   :  { %1282 = vmatpush1.bf16.msra.mxu0 %v5940_v29  ;;  %1323 = vmatpush1.bf16.msra.mxu1 %v5941_v30 }
 0x1a6   :  { %1283 = vmatprep.subr.bf16.mxu0 %v5942_v31  ;;  %1324 = vmatprep.subr.bf16.mxu1 %v5943_v32 }
 0x1a9   :  { %1284 = vmatpush1.bf16.msra.mxu0 %v5944_v33  ;;  %1325 = vmatpush1.bf16.msra.mxu1 %v5945_v36 }
 0x1aa   :  { %1285 = vmatprep.subr.bf16.mxu0 %v5946_v38  ;;  %1326 = vmatprep.subr.bf16.mxu1 %v5947_v60 }
 0x1ad   :  { %1286 = vmatpush2.bf16.msra.mxu0 %v5948_v59  ;;  %1327 = vmatpush2.bf16.msra.mxu1 %v5949_v57 }
 0x1ae   :  { %1287 = vmatprep.subr.bf16.mxu0 %v5950_v58  ;;  %1328 = vmatprep.subr.bf16.mxu1 %v5951_v2 }
 0x1b1   :  { %1288 = vmatpush2.bf16.msra.mxu0 %v5952_v13  ;;  %1329 = vmatpush2.bf16.msra.mxu1 %v5953_v14  ;;  %v5964_v14 = vld [vmem:[#allocation64_spill] sm:$0xff] }
 0x1b2   :  { %1289 = vmatprep.subr.bf16.mxu0 %v5954_v12  ;;  %1330 = vmatprep.subr.bf16.mxu1 %v5955_v8  ;;  %v5965_v12 = vld [vmem:[#allocation65_spill] sm:$0xff]  ;;  %v5966_v8 = vld [vmem:[#allocation66_spill] sm:$0xff] }
 0x1b5   :  { %1290 = vmatpush2.bf16.msra.mxu0 %v5956_v16  ;;  %1331 = vmatpush2.bf16.msra.mxu1 %v5957_v63  ;;  %v5967_v16 = vld [vmem:[#allocation67_spill] sm:$0xff]  ;;  %v5968_v63 = vld [vmem:[#allocation68_spill] sm:$0xff] }
 0x1b6   :  { %1291 = vmatprep.subr.bf16.mxu0 %v5958_v4  ;;  %1332 = vmatprep.subr.bf16.mxu1 %v5959_v61  ;;  %v5969_v4 = vld [vmem:[#allocation69_spill] sm:$0xff]  ;;  %v5970_v61 = vld [vmem:[#allocation70_spill] sm:$0xff] }
 0x1b9   :  { %1292 = vmatpush2.bf16.msra.mxu0 %v5960_v62  ;;  %1333 = vmatpush2.bf16.msra.mxu1 %v5961_v1  ;;  %v5971_v62 = vld [vmem:[#allocation71_spill] sm:$0xff]  ;;  %v5972_v1 = vld [vmem:[#allocation72_spill] sm:$0xff] }
 0x1ba   :  { %1293 = vmatprep.subr.bf16.mxu0 %v5962_v39  ;;  %1334 = vmatprep.subr.bf16.mxu1 %v5963_v42  ;;  %v5973_v39 = vld [vmem:[#allocation73_spill] sm:$0xff]  ;;  %v5974_v42 = vld [vmem:[#allocation74_spill] sm:$0xff] }
 0x1bd   :  { %1294 = vmatpush2.bf16.msra.mxu0 %v5964_v14  ;;  %1335 = vmatpush2.bf16.msra.mxu1 %v5965_v12  ;;  %v5975_v14 = vld [vmem:[#allocation75_spill] sm:$0xff]  ;;  %v5976_v12 = vld [vmem:[#allocation76_spill] sm:$0xff] }
 0x1be   :  { %1295 = vmatprep.subr.bf16.mxu0 %v5966_v8  ;;  %1336 = vmatprep.subr.bf16.mxu1 %v5967_v16  ;;  %v5977_v8 = vld [vmem:[#allocation77_spill] sm:$0xff]  ;;  %v5978_v16 = vld [vmem:[#allocation23_spill] sm:$0xff] }
 0x1c1   :  { %1296 = vmatpush2.bf16.msra.mxu0 %v5968_v63  ;;  %1337 = vmatpush2.bf16.msra.mxu1 %v5969_v4  ;;  %v5979_v63 = vld [vmem:[#allocation24_spill] sm:$0xff] }
 0x1c2   :  { %1297 = vmatprep.subr.bf16.mxu0 %v5970_v61  ;;  %1338 = vmatprep.subr.bf16.mxu1 %v5971_v62  ;;  %v408_v62 = vld [vmem:[%s5544_s5] sm:$0xf]  ;;  %v5980_v61 = vld [vmem:[#allocation78_spill] sm:$0xff] }
 0x1c3   :  { %v5985_v38 = vsub.s32 3, %v5980_v61  ;;  %v5987_v36 = vsub.s32 2, %v5980_v61 }
 0x1c5   :  { %1298 = vmatpush2.bf16.msra.mxu0 %v5972_v1  ;;  %1339 = vmatpush2.bf16.msra.mxu1 %v5973_v39  ;;  %v5981_v1 = vsub.s32 0, %v5980_v61  ;;  %v4433_v33 = vrot.slane %v408_v62, %v5987_v36  ;;  %v433_v36 = vld [vmem:[#allocation5] sm:$0x3] }
 0x1c6   :  { %1299 = vmatprep.subr.bf16.mxu0 %v5974_v42  ;;  %1340 = vmatprep.subr.bf16.mxu1 %v5975_v14  ;;  %v5983_v42 = vsub.s32 1, %v5980_v61 }
 0x1c7   :  { %v4419_v4 = vrot.slane %v408_v62, %v5981_v1  ;;  %5988 = vst [vmem:[#allocation28_spill] sm:$0xff] %v4433_v33 }
 0x1c8   :  { %v4423_v39 = vrot.slane %v408_v62, %v5983_v42  ;;  %v4429_v42 = vrot.slane %v408_v62, %v5985_v38 }
 0x1c9   :  { %1300 = vmatpush2.bf16.msra.mxu0 %v5976_v12  ;;  %1341 = vmatpush2.bf16.msra.mxu1 %v5977_v8  ;;  %5982 = vst [vmem:[#allocation25_spill] sm:$0xff] %v4419_v4 }
 0x1ca   :  { %1375 = vmatprep.subr.bf16.mxu0 %v5978_v16  ;;  %1416 = vmatprep.subr.bf16.mxu1 %v5979_v63  ;;  %5984 = vst [vmem:[#allocation26_spill] sm:$0xff] %v4423_v39  ;;  %5986 = vst [vmem:[#allocation27_spill] sm:$0xff] %v4429_v42 }
 0x22c   :  { %v1061_v14 = vpop.f32.mrf.mxu0  ;;  %v1102_v12 = vpop.f32.mrf.mxu1 }
 0x22d   :  { %v1062_v8 = vadd.f32 %v1061_v14, %v4419_v4 }
 0x22e   :  { %v1063_v13 = vpop.f32.mrf.mxu0  ;;  %v1104_v16 = vpop.f32.mrf.mxu1 }
 0x22f   :  { %v3028_v2 = vmul.f32 -1.442695, %v1062_v8  ;;  %v1064_v63 = vadd.f32 %v1063_v13, %v4423_v39  ;;  %v1105_v14 = vadd.f32 %v1104_v16, %v4429_v42  ;;  %v1103_v8 = vadd.f32 %v1102_v12, %v4433_v33 }
 0x230   :  { %v1065_v58 = vpop.f32.mrf.mxu0  ;;  %v1106_v57 = vpop.f32.mrf.mxu1 }
 0x231   :  { %3302 = vpow2.f32 %v3028_v2  ;;  %v3029_v59 = vmul.f32 -1.442695, %v1064_v63  ;;  %v3030_v58 = vmul.f32 -1.442695, %v1105_v14 }
 0x232   :  { %v1066_v60 = vpop.f32.mrf.mxu0  ;;  %v1107_v1 = vpop.f32.mrf.mxu1 }
 0x233   :  { %3304 = vpow2.f32 %v3029_v59 }
 0x234   :  { %3306 = vtanh.f32 %v1103_v8 }
 0x23e   :  { %v3303_v13 = vpop.eup %3302 }
 0x23f   :  { %v1112_v57 = vadd.f32 1.0, %v3303_v13 }
 0x240   :  { %v3305_v2 = vpop.eup %3304 }
 0x241   :  { %3308 = vrcp.f32 %v1112_v57  ;;  %v1118_v60 = vadd.f32 1.0, %v3305_v2  ;;  %v3307_v63 = vpop.eup %3306 }
 0x242   :  { %3310 = vpow2.f32 %v3030_v58 }
 0x243   :  { %3312 = vrcp.f32 %v1118_v60 }
 0x24c   :  { %v1167_v59 = vpop.f32.mrf.mxu0  ;;  %v1208_v38 = vpop.f32.mrf.mxu1 }
 0x24d   :  { %v1219_v1 = vrot.slane %v1167_v59, 6 }
 0x24e   :  { %v3309_v61 = vpop.eup %3308  ;;  %v1169_v62 = vpop.f32.mrf.mxu0 }
 0x24f   :  { %v1210_v39 = vpop.f32.mrf.mxu1  ;;  %v3311_v16 = vpop.eup %3310  ;;  %v1227_v12 = vadd.f32 %v1219_v1, %v4301_v18  ;;  %v1220_v33 = vrot.slane %v1169_v62, 6  ;;  %v1129_v8 = vmul.f32 %v3309_v61, %v3307_v63 }
 0x250   :  { %v3313_v14 = vpop.eup %3312  ;;  %v1171_v13 = vpop.f32.mrf.mxu0  ;;  %v1125_v60 = vadd.f32 1.0, %v3311_v16  ;;  %v1222_v30 = vrot.slane %v1210_v39, 6 }
 0x251   :  { %v1212_v42 = vpop.f32.mrf.mxu1  ;;  %v1128_v57 = vmul.f32 %v3313_v14, %v433_v36  ;;  %v3031_v2 = vmul.f32 -1.442695, %v1227_v12  ;;  %v1228_v58 = vadd.f32 %v1220_v33, %v4303_v5 }
 0x252   :  { %v1172_v4 = vpop.f32.mrf.mxu0  ;;  %v1230_v1 = vadd.f32 %v1222_v30, %v4307_v3  ;;  %v1221_v42 = vrot.slane %v1208_v38, 6 }
 0x253   :  { %v1213_v32 = vpop.f32.mrf.mxu1  ;;  %3314 = vpow2.f32 %v3031_v2  ;;  %v3032_v59 = vmul.f32 -1.442695, %v1228_v58  ;;  %v4439_v31 = vadd.f32 %v1129_v8, %v1128_v57  ;;  %v1251_v57 = vrot.slane %v4313_v0, 6  ;;  %v4451_v0 = vld [vmem:[#allocation12 + $0xe8] ss:$16 sps:$4 sm:$0xff]  }
 0x254   :  { %v3033_v63 = vmul.f32 -1.442695, %v1230_v1  ;;  %v1229_v36 = vadd.f32 %v1221_v42, %v4310_v10 }
 0x255   :  { %3316 = vpow2.f32 %v3032_v59 }
 0x256   :  { %3318 = vrcp.f32 %v1125_v60 }
 0x257   :  { %3320 = vtanh.f32 %v4439_v31 }
 0x258   :  { %3322 = vpow2.f32 %v3033_v63 }
 0x260   :  { %v3315_v61 = vpop.eup %3314 }
 0x261   :  { %v1234_v33 = vadd.f32 1.0, %v3315_v61 }
 0x262   :  { %v3317_v62 = vpop.eup %3316 }
 0x263   :  { %v3319_v32 = vpop.eup %3318  ;;  %3324 = vrcp.f32 %v1234_v33  ;;  %v1240_v4 = vadd.f32 1.0, %v3317_v62  ;;  %v4448_v62 = vld [vmem:[#allocation12 + $0xe0] ss:$16 sps:$4 sm:$0xff]  }
 0x264   :  { %v3321_v16 = vpop.eup %3320  ;;  %3326 = vtanh.f32 %v1229_v36 }
 0x265   :  { %3328 = vrcp.f32 %v1240_v4  ;;  %v1132_v12 = vmul.f32 %v3321_v16, %v3319_v32  ;;  %v3323_v30 = vpop.eup %3322  ;;  %v4454_v32 = vld [vmem:[#allocation12 + $0xc4] ss:$16 sps:$4 sm:$0xff]   ;;  %v4457_v4 = vld [vmem:[#allocation12 + $0xcc] ss:$16 sps:$4 sm:$0xff]   ;;  %v4462_v16 = vld [vmem:[#allocation12 + $0xc0] ss:$16 sps:$4 sm:$0xff]  }
 0x266   :  { %v1247_v58 = vadd.f32 1.0, %v3323_v30  ;;  %v4477_v30 = vld [vmem:[#allocation12 + $0xa8] ss:$16 sps:$4 sm:$0xff]  }
 0x267   :  { %v1259_v39 = vrot.slane %v1132_v12, 6  ;;  %v4465_v12 = vld [vmem:[#allocation12 + $0xc8] ss:$16 sps:$4 sm:$0xff]  }
 0x268   :  { %3330 = vrcp.f32 %v1247_v58  ;;  %v4492_v58 = vld [vmem:[#allocation12 + $0x64] ss:$16 sps:$4 sm:$0xff]  }
 0x269   :  { %v1262_v14 = vpack.c.bf16 %v1259_v39, %v1259_v39  ;;  %v4468_v39 = vld [vmem:[#allocation12 + $0xa4] ss:$16 sps:$4 sm:$0xff]  }
 0x26b   :  { %v1266_v13 = vrot.slane %v1262_v14, 1  ;;  %v4471_v14 = vld [vmem:[#allocation12 + $0xac] ss:$16 sps:$4 sm:$0xff]  }
 0x26d   :  { %1301 = vmatprep.mubr.bf16.mxu0 %v1266_v13  ;;  %1342 = vmatprep.mubr.bf16.mxu1 %v1266_v13  ;;  %v4474_v13 = vld [vmem:[#allocation12 + $0xa0] ss:$16 sps:$4 sm:$0xff]  }
 0x270   :  { %v3325_v38 = vpop.eup %3324 }
 0x271   :  { %v3327_v8 = vpop.eup %3326 }
 0x272   :  { %v3329_v2 = vpop.eup %3328  ;;  %v1254_v60 = vmul.f32 %v3327_v8, %v3325_v38  ;;  %v4480_v38 = vld [vmem:[#allocation12 + $0x84] ss:$16 sps:$4 sm:$0xff]   ;;  %v4483_v8 = vld [vmem:[#allocation12 + $0x8c] ss:$16 sps:$4 sm:$0xff]  }
 0x273   :  { %v1253_v59 = vmul.f32 %v3329_v2, %v1251_v57  ;;  %v4486_v57 = vld [vmem:[#allocation12 + $0x80] ss:$16 sps:$4 sm:$0xff]   ;;  %v4489_v2 = vld [vmem:[#allocation12 + $0x88] ss:$16 sps:$4 sm:$0xff]  }
 0x275   :  { %v4445_v1 = vadd.f32 %v1254_v60, %v1253_v59  ;;  %v3331_v42 = vpop.eup %3330  ;;  %v4496_v60 = vld [vmem:[#allocation12 + $0x60] ss:$16 sps:$4 sm:$0xff]   ;;  %v4500_v59 = vld [vmem:[#allocation12 + $0x44] ss:$16 sps:$4 sm:$0xff]  }
 0x277   :  { %3332 = vtanh.f32 %v4445_v1 }
 0x284   :  { %v3333_v63 = vpop.eup %3332 }
 0x285   :  { %v1257_v61 = vmul.f32 %v3333_v63, %v3331_v42  ;;  %v4504_v42 = vld [vmem:[#allocation12 + $0x40] ss:$16 sps:$4 sm:$0xff]   ;;  %v4508_v63 = vld [vmem:[#allocation12 + $0x24] ss:$16 sps:$4 sm:$0xff]  }
 0x287   :  { %v1261_v36 = vpack.c.bf16 %v1257_v61, %v1257_v61  ;;  %v6021_v61 = vld [vmem:[#allocation73_spill] sm:$0xff] }
 0x289   :  { %v1265_v33 = vrot.slane %v1261_v36, 1  ;;  %v6022_v36 = vld [vmem:[#allocation74_spill] sm:$0xff] }
 0x28b   :  { %1302 = vmatmul.mubr.bf16.vlgmr.msra.gmra.mxu0 %v1265_v33  ;;  %1343 = vmatmul.mubr.bf16.vlgmr.msra.gmra.mxu1 %v1265_v33 }
 0x28c   :  { %1376 = vmatpush1.bf16.msra.mxu0 %v4448_v62  ;;  %1417 = vmatpush1.bf16.msra.mxu1 %v4451_v0 }
 0x28d   :  { %1377 = vmatprep.subr.bf16.mxu0 %v4454_v32  ;;  %1418 = vmatprep.subr.bf16.mxu1 %v4457_v4 }
 0x28e   :  { %1407 = vmatprep.mubr.bf16.mxu0 %v5924_v6  ;;  %1448 = vmatprep.mubr.bf16.mxu1 %v5924_v6 }
 0x290   :  { %1378 = vmatpush1.bf16.msra.mxu0 %v4462_v16  ;;  %1419 = vmatpush1.bf16.msra.mxu1 %v4465_v12 }
 0x291   :  { %1379 = vmatprep.subr.bf16.mxu0 %v4468_v39  ;;  %1420 = vmatprep.subr.bf16.mxu1 %v4471_v14 }
 0x294   :  { %1380 = vmatpush1.bf16.msra.mxu0 %v4474_v13  ;;  %1421 = vmatpush1.bf16.msra.mxu1 %v4477_v30 }
 0x295   :  { %1381 = vmatprep.subr.bf16.mxu0 %v4480_v38  ;;  %1422 = vmatprep.subr.bf16.mxu1 %v4483_v8 }
 0x298   :  { %1382 = vmatpush1.bf16.msra.mxu0 %v4486_v57  ;;  %1423 = vmatpush1.bf16.msra.mxu1 %v4489_v2 }
 0x299   :  { %1383 = vmatprep.subr.bf16.mxu0 %v4492_v58  ;;  %1424 = vmatprep.subr.bf16.mxu1 %v4051_v34  ;;  %v4512_v34 = vld [vmem:[#allocation12 + $0x20] ss:$16 sps:$4 sm:$0xff]  }
 0x29c   :  { %1384 = vmatpush1.bf16.msra.mxu0 %v4496_v60  ;;  %1425 = vmatpush1.bf16.msra.mxu1 %v4054_v35  ;;  %v4516_v35 = vld [vmem:[#allocation12 + $0x4] ss:$16 sps:$4 sm:$0xff]  }
 0x29d   :  { %1385 = vmatprep.subr.bf16.mxu0 %v4500_v59  ;;  %1426 = vmatprep.subr.bf16.mxu1 %v4059_v37  ;;  %v4520_v37 = vld [vmem:[#allocation12] ss:$16 sps:$4 sm:$0xff]  }
 0x2a0   :  { %1386 = vmatpush1.bf16.msra.mxu0 %v4504_v42  ;;  %1427 = vmatpush1.bf16.msra.mxu1 %v4066_v40  ;;  %v5989_v40 = vld [vmem:[#allocation41_spill] sm:$0xff] }
 0x2a1   :  { %1387 = vmatprep.subr.bf16.mxu0 %v4508_v63  ;;  %1428 = vmatprep.subr.bf16.mxu1 %v4069_v41  ;;  %v5990_v41 = vld [vmem:[#allocation42_spill] sm:$0xff] }
 0x2a4   :  { %1388 = vmatpush1.bf16.msra.mxu0 %v4512_v34  ;;  %1429 = vmatpush1.bf16.msra.mxu1 %v4074_v43  ;;  %v5991_v43 = vld [vmem:[#allocation43_spill] sm:$0xff] }
 0x2a5   :  { %1389 = vmatprep.subr.bf16.mxu0 %v4516_v35  ;;  %1430 = vmatprep.subr.bf16.mxu1 %v4076_v44  ;;  %v5992_v44 = vld [vmem:[#allocation44_spill] sm:$0xff] }
 0x2a8   :  { %1390 = vmatpush1.bf16.msra.mxu0 %v4520_v37  ;;  %1431 = vmatpush1.bf16.msra.mxu1 %v4080_v45  ;;  %v5993_v45 = vld [vmem:[#allocation45_spill] sm:$0xff] }
 0x2a9   :  { %1511 = vmatprep.subr.bf16.mxu0 %v4085_v46  ;;  %1552 = vmatprep.subr.bf16.mxu1 %v4087_v47  ;;  %v5994_v46 = vld [vmem:[#allocation46_spill] sm:$0xff]  ;;  %v5995_v47 = vld [vmem:[#allocation47_spill] sm:$0xff] }
 0x2ab   :  { %1408 = vmatmul.mubr.bf16.vlgmr.msra.gmra.mxu0 %v1265_v33  ;;  %1449 = vmatmul.mubr.bf16.vlgmr.msra.gmra.mxu1 %v1265_v33  ;;  %v6023_v33 = vld [vmem:[#allocation75_spill] sm:$0xff] }
 0x2ac   :  { %1512 = vmatpush1.bf16.msra.mxu0 %v4089_v48  ;;  %1553 = vmatpush1.bf16.msra.mxu1 %v4091_v49  ;;  %v5996_v48 = vld [vmem:[#allocation48_spill] sm:$0xff]  ;;  %v5997_v49 = vld [vmem:[#allocation49_spill] sm:$0xff] }
 0x2ad   :  { %1513 = vmatprep.subr.bf16.mxu0 %v4093_v50  ;;  %1554 = vmatprep.subr.bf16.mxu1 %v4095_v51  ;;  %v5998_v50 = vld [vmem:[#allocation50_spill] sm:$0xff]  ;;  %v5999_v51 = vld [vmem:[#allocation51_spill] sm:$0xff] }
 0x2b0   :  { %1514 = vmatpush1.bf16.msra.mxu0 %v4101_v52  ;;  %1555 = vmatpush1.bf16.msra.mxu1 %v4103_v53  ;;  %v6000_v52 = vld [vmem:[#allocation52_spill] sm:$0xff]  ;;  %v6001_v53 = vld [vmem:[#allocation53_spill] sm:$0xff] }
 0x2b1   :  { %1515 = vmatprep.subr.bf16.mxu0 %v4109_v54  ;;  %1556 = vmatprep.subr.bf16.mxu1 %v4111_v55  ;;  %v6002_v54 = vld [vmem:[#allocation54_spill] sm:$0xff]  ;;  %v6003_v55 = vld [vmem:[#allocation55_spill] sm:$0xff] }
 0x2b4   :  { %1516 = vmatpush1.bf16.msra.mxu0 %v4113_v56  ;;  %1557 = vmatpush1.bf16.msra.mxu1 %v5925_v7  ;;  %v6004_v56 = vld [vmem:[#allocation56_spill] sm:$0xff]  ;;  %v6005_v7 = vld [vmem:[#allocation57_spill] sm:$0xff] }
 0x2b5   :  { %1517 = vmatprep.subr.bf16.mxu0 %v5926_v9  ;;  %1558 = vmatprep.subr.bf16.mxu1 %v5927_v11  ;;  %v6006_v9 = vld [vmem:[#allocation58_spill] sm:$0xff]  ;;  %v6007_v11 = vld [vmem:[#allocation59_spill] sm:$0xff] }
 0x2b8   :  { %1518 = vmatpush1.bf16.msra.mxu0 %v5928_v15  ;;  %1559 = vmatpush1.bf16.msra.mxu1 %v5929_v17  ;;  %v6008_v15 = vld [vmem:[#allocation60_spill] sm:$0xff]  ;;  %v6009_v17 = vld [vmem:[#allocation61_spill] sm:$0xff] }
 0x2b9   :  { %1519 = vmatprep.subr.bf16.mxu0 %v5930_v19  ;;  %1560 = vmatprep.subr.bf16.mxu1 %v5931_v20  ;;  %v6010_v19 = vld [vmem:[#allocation62_spill] sm:$0xff]  ;;  %v6011_v20 = vld [vmem:[#allocation63_spill] sm:$0xff] }
 0x2bc   :  { %1520 = vmatpush1.bf16.msra.mxu0 %v5932_v21  ;;  %1561 = vmatpush1.bf16.msra.mxu1 %v5933_v22  ;;  %v6012_v21 = vld [vmem:[#allocation64_spill] sm:$0xff]  ;;  %v6013_v22 = vld [vmem:[#allocation65_spill] sm:$0xff] }
 0x2bd   :  { %1521 = vmatprep.subr.bf16.mxu0 %v5934_v23  ;;  %1562 = vmatprep.subr.bf16.mxu1 %v5935_v24  ;;  %v6014_v23 = vld [vmem:[#allocation66_spill] sm:$0xff]  ;;  %v6015_v24 = vld [vmem:[#allocation67_spill] sm:$0xff] }
 0x2c0   :  { %1522 = vmatpush1.bf16.msra.mxu0 %v5936_v25  ;;  %1563 = vmatpush1.bf16.msra.mxu1 %v5937_v26  ;;  %v6016_v25 = vld [vmem:[#allocation68_spill] sm:$0xff]  ;;  %v6017_v26 = vld [vmem:[#allocation69_spill] sm:$0xff] }
 0x2c1   :  { %1523 = vmatprep.subr.bf16.mxu0 %v5938_v27  ;;  %1564 = vmatprep.subr.bf16.mxu1 %v5939_v28  ;;  %v6018_v27 = vld [vmem:[#allocation70_spill] sm:$0xff]  ;;  %v6019_v28 = vld [vmem:[#allocation71_spill] sm:$0xff] }
 0x2c4   :  { %1524 = vmatpush1.bf16.msra.mxu0 %v5940_v29  ;;  %1565 = vmatpush1.bf16.msra.mxu1 %v5989_v40  ;;  %v6020_v29 = vld [vmem:[#allocation72_spill] sm:$0xff] }
 0x2c5   :  { %1525 = vmatprep.subr.bf16.mxu0 %v5990_v41  ;;  %1566 = vmatprep.subr.bf16.mxu1 %v5991_v43  ;;  %v6024_v40 = vld [vmem:[#allocation76_spill] sm:$0xff]  ;;  %v6025_v41 = vld [vmem:[#allocation77_spill] sm:$0xff] }
 0x2c6   :  { %v4588_v43 = vld [vmem:[#allocation12 + $0xe4] ss:$16 sps:$4 sm:$0xff]  }
 0x2c7   :  { %6026 = vst [vmem:[#allocation29_spill] sm:$0xff] %v4588_v43 }
 0x2c8   :  { %1526 = vmatpush1.bf16.msra.mxu0 %v5992_v44  ;;  %1567 = vmatpush1.bf16.msra.mxu1 %v5993_v45  ;;  %v4591_v44 = vld [vmem:[#allocation12 + $0xec] ss:$16 sps:$4 sm:$0xff]  }
 0x2c9   :  { %1527 = vmatprep.subr.bf16.mxu0 %v5994_v46  ;;  %1568 = vmatprep.subr.bf16.mxu1 %v5995_v47  ;;  %6027 = vst [vmem:[#allocation30_spill] sm:$0xff] %v4591_v44  ;;  %v6028_v47 = vld [vmem:[#allocation25_spill] sm:$0xff] }
 0x2cc   :  { %1528 = vmatpush2.bf16.msra.mxu0 %v5996_v48  ;;  %1569 = vmatpush2.bf16.msra.mxu1 %v5997_v49 }
 0x2cd   :  { %1529 = vmatprep.subr.bf16.mxu0 %v5998_v50  ;;  %1570 = vmatprep.subr.bf16.mxu1 %v5999_v51 }
 0x2d0   :  { %1530 = vmatpush2.bf16.msra.mxu0 %v6000_v52  ;;  %1571 = vmatpush2.bf16.msra.mxu1 %v6001_v53  ;;  %v6029_v52 = vld [vmem:[#allocation26_spill] sm:$0xff] }
 0x2d1   :  { %1531 = vmatprep.subr.bf16.mxu0 %v6002_v54  ;;  %1572 = vmatprep.subr.bf16.mxu1 %v6003_v55 }
 0x2d4   :  { %1532 = vmatpush2.bf16.msra.mxu0 %v6004_v56  ;;  %1573 = vmatpush2.bf16.msra.mxu1 %v6005_v7 }
 0x2d5   :  { %1533 = vmatprep.subr.bf16.mxu0 %v6006_v9  ;;  %1574 = vmatprep.subr.bf16.mxu1 %v6007_v11  ;;  %v6030_v11 = vld [vmem:[#allocation27_spill] sm:$0xff] }
 0x2d8   :  { %1534 = vmatpush2.bf16.msra.mxu0 %v6008_v15  ;;  %1575 = vmatpush2.bf16.msra.mxu1 %v6009_v17  ;;  %v6031_v17 = vld [vmem:[#allocation28_spill] sm:$0xff] }
 0x2d9   :  { %1535 = vmatprep.subr.bf16.mxu0 %v6010_v19  ;;  %1576 = vmatprep.subr.bf16.mxu1 %v6011_v20 }
 0x2dc   :  { %1536 = vmatpush2.bf16.msra.mxu0 %v6012_v21  ;;  %1577 = vmatpush2.bf16.msra.mxu1 %v6013_v22 }
 0x2dd   :  { %1537 = vmatprep.subr.bf16.mxu0 %v6014_v23  ;;  %1578 = vmatprep.subr.bf16.mxu1 %v6015_v24 }
 0x2e0   :  { %1538 = vmatpush2.bf16.msra.mxu0 %v6016_v25  ;;  %1579 = vmatpush2.bf16.msra.mxu1 %v6017_v26 }
 0x2e1   :  { %1539 = vmatprep.subr.bf16.mxu0 %v6018_v27  ;;  %1580 = vmatprep.subr.bf16.mxu1 %v6019_v28 }
 0x2e4   :  { %1540 = vmatpush2.bf16.msra.mxu0 %v6020_v29  ;;  %1581 = vmatpush2.bf16.msra.mxu1 %v6021_v61 }
 0x2e5   :  { %1541 = vmatprep.subr.bf16.mxu0 %v6022_v36  ;;  %1582 = vmatprep.subr.bf16.mxu1 %v6023_v33 }
 0x2e8   :  { %1542 = vmatpush2.bf16.msra.mxu0 %v6024_v40  ;;  %1583 = vmatpush2.bf16.msra.mxu1 %v6025_v41 }
 0x2e9   :  { %1617 = vmatprep.subr.bf16.mxu0 %v4588_v43  ;;  %1658 = vmatprep.subr.bf16.mxu1 %v4591_v44 }
 0x34b   :  { %v1303_v45 = vpop.f32.mrf.mxu0  ;;  %v1344_v46 = vpop.f32.mrf.mxu1 }
 0x34c   :  { %v1304_v48 = vadd.f32 %v1303_v45, %v6028_v47  ;;  %v1345_v19 = vadd.f32 %v1344_v46, %v6031_v17 }
 0x34d   :  { %v1305_v49 = vpop.f32.mrf.mxu0  ;;  %v1346_v50 = vpop.f32.mrf.mxu1 }
 0x34e   :  { %v3034_v51 = vmul.f32 -1.442695, %v1304_v48  ;;  %v1306_v53 = vadd.f32 %v1305_v49, %v6029_v52  ;;  %v1347_v15 = vadd.f32 %v1346_v50, %v6030_v11 }
 0x34f   :  { %v1307_v54 = vpop.f32.mrf.mxu0  ;;  %v1348_v55 = vpop.f32.mrf.mxu1 }
 0x350   :  { %3334 = vpow2.f32 %v3034_v51  ;;  %v3035_v56 = vmul.f32 -1.442695, %v1306_v53  ;;  %v3036_v21 = vmul.f32 -1.442695, %v1347_v15 }
 0x351   :  { %v1308_v7 = vpop.f32.mrf.mxu0  ;;  %v1349_v9 = vpop.f32.mrf.mxu1 }
 0x352   :  { %3336 = vpow2.f32 %v3035_v56 }
 0x353   :  { %3338 = vtanh.f32 %v1345_v19 }
 0x35d   :  { %v3335_v20 = vpop.eup %3334 }
 0x35e   :  { %v1354_v22 = vadd.f32 1.0, %v3335_v20 }
 0x35f   :  { %v3337_v23 = vpop.eup %3336 }
 0x360   :  { %3340 = vrcp.f32 %v1354_v22  ;;  %v1360_v24 = vadd.f32 1.0, %v3337_v23  ;;  %v3339_v27 = vpop.eup %3338 }
 0x361   :  { %3342 = vpow2.f32 %v3036_v21 }
 0x362   :  { %3344 = vrcp.f32 %v1360_v24 }
 0x36b   :  { %v1409_v25 = vpop.f32.mrf.mxu0  ;;  %v1450_v26 = vpop.f32.mrf.mxu1 }
 0x36c   :  { %v1461_v28 = vrot.slane %v1409_v25, 4  ;;  %v1463_v20 = vrot.slane %v1450_v26, 4 }
 0x36d   :  { %v3341_v29 = vpop.eup %3340  ;;  %v1411_v61 = vpop.f32.mrf.mxu0 }
 0x36e   :  { %v1452_v36 = vpop.f32.mrf.mxu1  ;;  %v3343_v33 = vpop.eup %3342  ;;  %v1469_v40 = vadd.f32 %v1461_v28, %v4301_v18  ;;  %v1462_v41 = vrot.slane %v1411_v61, 4  ;;  %v1371_v49 = vmul.f32 %v3341_v29, %v3339_v27  ;;  %v1471_v22 = vadd.f32 %v1463_v20, %v4310_v10  ;;  %v4639_v20 = vld [vmem:[#allocation12 + $0x48] ss:$16 sps:$4 sm:$0xff]  }
 0x36f   :  { %v3345_v45 = vpop.eup %3344  ;;  %v1413_v46 = vpop.f32.mrf.mxu0  ;;  %v1367_v54 = vadd.f32 1.0, %v3343_v33  ;;  %v1464_v15 = vrot.slane %v1452_v36, 4 }
 0x370   :  { %v1454_v48 = vpop.f32.mrf.mxu1  ;;  %v1370_v50 = vmul.f32 %v3345_v45, %v4439_v31  ;;  %v3037_v51 = vmul.f32 -1.442695, %v1469_v40  ;;  %v1470_v53 = vadd.f32 %v1462_v41, %v4303_v5  ;;  %v1493_v45 = vrot.slane %v4445_v1, 6  ;;  %v4627_v1 = vld [vmem:[#allocation12 + $0x6c] ss:$16 sps:$4 sm:$0xff]  }
 0x371   :  { %v1414_v55 = vpop.f32.mrf.mxu0  ;;  %v1472_v19 = vadd.f32 %v1464_v15, %v4307_v3  ;;  %v4631_v15 = vld [vmem:[#allocation12 + $0x68] ss:$16 sps:$4 sm:$0xff]  }
 0x372   :  { %v1455_v56 = vpop.f32.mrf.mxu1  ;;  %3346 = vpow2.f32 %v3037_v51  ;;  %v3038_v7 = vmul.f32 -1.442695, %v1470_v53  ;;  %v4601_v9 = vadd.f32 %v1371_v49, %v1370_v50 }
 0x373   :  { %v3039_v21 = vmul.f32 -1.442695, %v1472_v19  ;;  %v4635_v19 = vld [vmem:[#allocation12 + $0x4c] ss:$16 sps:$4 sm:$0xff]  }
 0x374   :  { %3348 = vpow2.f32 %v3038_v7 }
 0x375   :  { %3350 = vrcp.f32 %v1367_v54 }
 0x376   :  { %3352 = vtanh.f32 %v4601_v9 }
 0x377   :  { %3354 = vpow2.f32 %v3039_v21  ;;  %v4643_v21 = vld [vmem:[#allocation12 + $0x2c] ss:$16 sps:$4 sm:$0xff]  }
 0x37f   :  { %v3347_v31 = vpop.eup %3346 }
 0x380   :  { %v1476_v23 = vadd.f32 1.0, %v3347_v31  ;;  %v4647_v31 = vld [vmem:[#allocation12 + $0x28] ss:$16 sps:$4 sm:$0xff]  }
 0x381   :  { %v3349_v24 = vpop.eup %3348 }
 0x382   :  { %v3351_v25 = vpop.eup %3350  ;;  %3356 = vrcp.f32 %v1476_v23  ;;  %v1482_v27 = vadd.f32 1.0, %v3349_v24  ;;  %v4655_v23 = vld [vmem:[#allocation12 + $0x8] ss:$16 sps:$4 sm:$0xff]   ;;  %v4658_v24 = vld [vmem:[#allocation14 + $0xe4] ss:$16 sps:$4 sm:$0xff]  }
 0x383   :  { %v3353_v28 = vpop.eup %3352  ;;  %3358 = vtanh.f32 %v1471_v22  ;;  %v4651_v22 = vld [vmem:[#allocation12 + $0xc] ss:$16 sps:$4 sm:$0xff]  }
 0x384   :  { %3360 = vrcp.f32 %v1482_v27  ;;  %v1374_v29 = vmul.f32 %v3353_v28, %v3351_v25  ;;  %v3355_v26 = vpop.eup %3354  ;;  %v4661_v25 = vld [vmem:[#allocation14 + $0xec] ss:$16 sps:$4 sm:$0xff]   ;;  %v4664_v27 = vld [vmem:[#allocation14 + $0xe0] ss:$16 sps:$4 sm:$0xff]   ;;  %v4667_v28 = vld [vmem:[#allocation14 + $0xe8] ss:$16 sps:$4 sm:$0xff]  }
 0x385   :  { %v1489_v48 = vadd.f32 1.0, %v3355_v26  ;;  %v4682_v26 = vld [vmem:[#allocation14 + $0xa4] ss:$16 sps:$4 sm:$0xff]  }
 0x386   :  { %v1501_v61 = vrot.slane %v1374_v29, 4  ;;  %v4670_v29 = vld [vmem:[#allocation14 + $0xc4] ss:$16 sps:$4 sm:$0xff]   ;;  %6034 = vst [vmem:[#allocation33_spill] sm:$0xff] %v4682_v26 }
 0x387   :  { %3362 = vrcp.f32 %v1489_v48  ;;  %v4697_v48 = vld [vmem:[#allocation14 + $0x8c] ss:$16 sps:$4 sm:$0xff]  }
 0x388   :  { %v1504_v36 = vpack.c.bf16 %v1501_v61, %v1501_v61  ;;  %v4673_v61 = vld [vmem:[#allocation14 + $0xcc] ss:$16 sps:$4 sm:$0xff]   ;;  %6039 = vst [vmem:[#allocation38_spill] sm:$0xff] %v4697_v48 }
 0x38a   :  { %v1508_v33 = vrot.slane %v1504_v36, 2  ;;  %v4676_v36 = vld [vmem:[#allocation14 + $0xc0] ss:$16 sps:$4 sm:$0xff]  }
 0x38b   :  { %6032 = vst [vmem:[#allocation31_spill] sm:$0xff] %v4676_v36 }
 0x38c   :  { %1543 = vmatprep.mubr.bf16.mxu0 %v1508_v33  ;;  %1584 = vmatprep.mubr.bf16.mxu1 %v1508_v33  ;;  %v4679_v33 = vld [vmem:[#allocation14 + $0xc8] ss:$16 sps:$4 sm:$0xff]  }
 0x38d   :  { %6033 = vst [vmem:[#allocation32_spill] sm:$0xff] %v4679_v33 }
 0x38f   :  { %v3357_v40 = vpop.eup %3356 }
 0x390   :  { %v3359_v41 = vpop.eup %3358 }
 0x391   :  { %v3361_v46 = vpop.eup %3360  ;;  %v1496_v49 = vmul.f32 %v3359_v41, %v3357_v40  ;;  %v4685_v40 = vld [vmem:[#allocation14 + $0xac] ss:$16 sps:$4 sm:$0xff]   ;;  %v4688_v41 = vld [vmem:[#allocation14 + $0xa0] ss:$16 sps:$4 sm:$0xff]  }
 0x392   :  { %v1495_v50 = vmul.f32 %v3361_v46, %v1493_v45  ;;  %6035 = vst [vmem:[#allocation34_spill] sm:$0xff] %v4685_v40  ;;  %6036 = vst [vmem:[#allocation35_spill] sm:$0xff] %v4688_v41  ;;  %v4691_v45 = vld [vmem:[#allocation14 + $0xa8] ss:$16 sps:$4 sm:$0xff]   ;;  %v4694_v46 = vld [vmem:[#allocation14 + $0x84] ss:$16 sps:$4 sm:$0xff]  }
 0x393   :  { %6037 = vst [vmem:[#allocation36_spill] sm:$0xff] %v4691_v45  ;;  %6038 = vst [vmem:[#allocation37_spill] sm:$0xff] %v4694_v46 }
 0x394   :  { %v4607_v51 = vadd.f32 %v1496_v49, %v1495_v50  ;;  %v3363_v53 = vpop.eup %3362  ;;  %v4700_v49 = vld [vmem:[#allocation14 + $0x80] ss:$16 sps:$4 sm:$0xff]   ;;  %v4703_v50 = vld [vmem:[#allocation14 + $0x88] ss:$16 sps:$4 sm:$0xff]  }
 0x395   :  { %6040 = vst [vmem:[#allocation39_spill] sm:$0xff] %v4700_v49  ;;  %6041 = vst [vmem:[#allocation40_spill] sm:$0xff] %v4703_v50 }
 0x396   :  { %3364 = vtanh.f32 %v4607_v51 }
 0x3a3   :  { %v3365_v54 = vpop.eup %3364 }
 0x3a4   :  { %v1499_v55 = vmul.f32 %v3365_v54, %v3363_v53  ;;  %v4706_v53 = vld [vmem:[#allocation14 + $0x64] ss:$16 sps:$4 sm:$0xff]   ;;  %v4709_v54 = vld [vmem:[#allocation14 + $0x6c] ss:$16 sps:$4 sm:$0xff]  }
 0x3a5   :  { %6042 = vst [vmem:[#allocation23_spill] sm:$0xff] %v4706_v53  ;;  %6043 = vst [vmem:[#allocation24_spill] sm:$0xff] %v4709_v54 }
 0x3a6   :  { %v1503_v56 = vpack.c.bf16 %v1499_v55, %v1499_v55  ;;  %v4712_v55 = vld [vmem:[#allocation14 + $0x60] ss:$16 sps:$4 sm:$0xff]  }
 0x3a7   :  { %6044 = vst [vmem:[#allocation78_spill] sm:$0xff] %v4712_v55 }
 0x3a8   :  { %v1507_v7 = vrot.slane %v1503_v56, 2  ;;  %v4715_v56 = vld [vmem:[#allocation14 + $0x68] ss:$16 sps:$4 sm:$0xff]  }
 0x3a9   :  { %6045 = vst [vmem:[#allocation41_spill] sm:$0xff] %v4715_v56 }
 0x3aa   :  { %1544 = vmatmul.mubr.bf16.vlgmr.msra.gmra.mxu0 %v1507_v7  ;;  %1585 = vmatmul.mubr.bf16.vlgmr.msra.gmra.mxu1 %v1507_v7 }
 0x3ab   :  { %1618 = vmatpush1.bf16.msra.mxu0 %v4448_v62  ;;  %1659 = vmatpush1.bf16.msra.mxu1 %v4451_v0 }
 0x3ac   :  { %1619 = vmatprep.subr.bf16.mxu0 %v4454_v32  ;;  %1660 = vmatprep.subr.bf16.mxu1 %v4457_v4 }
 0x3ad   :  { %1649 = vmatprep.mubr.bf16.mxu0 %v5924_v6  ;;  %1690 = vmatprep.mubr.bf16.mxu1 %v5924_v6 }
 0x3af   :  { %1620 = vmatpush1.bf16.msra.mxu0 %v4462_v16  ;;  %1661 = vmatpush1.bf16.msra.mxu1 %v4465_v12 }
 0x3b0   :  { %1621 = vmatprep.subr.bf16.mxu0 %v4468_v39  ;;  %1662 = vmatprep.subr.bf16.mxu1 %v4471_v14 }
 0x3b3   :  { %1622 = vmatpush1.bf16.msra.mxu0 %v4474_v13  ;;  %1663 = vmatpush1.bf16.msra.mxu1 %v4477_v30 }
 0x3b4   :  { %1623 = vmatprep.subr.bf16.mxu0 %v4480_v38  ;;  %1664 = vmatprep.subr.bf16.mxu1 %v4483_v8 }
 0x3b7   :  { %1624 = vmatpush1.bf16.msra.mxu0 %v4486_v57  ;;  %1665 = vmatpush1.bf16.msra.mxu1 %v4489_v2 }
 0x3b8   :  { %1625 = vmatprep.subr.bf16.mxu0 %v4492_v58  ;;  %1666 = vmatprep.subr.bf16.mxu1 %v4627_v1 }
 0x3bb   :  { %1626 = vmatpush1.bf16.msra.mxu0 %v4496_v60  ;;  %1667 = vmatpush1.bf16.msra.mxu1 %v4631_v15 }
 0x3bc   :  { %1627 = vmatprep.subr.bf16.mxu0 %v4500_v59  ;;  %1668 = vmatprep.subr.bf16.mxu1 %v4635_v19 }
 0x3bf   :  { %1628 = vmatpush1.bf16.msra.mxu0 %v4504_v42  ;;  %1669 = vmatpush1.bf16.msra.mxu1 %v4639_v20 }
 0x3c0   :  { %1629 = vmatprep.subr.bf16.mxu0 %v4508_v63  ;;  %1670 = vmatprep.subr.bf16.mxu1 %v4643_v21 }
 0x3c3   :  { %1630 = vmatpush1.bf16.msra.mxu0 %v4512_v34  ;;  %1671 = vmatpush1.bf16.msra.mxu1 %v4647_v31 }
 0x3c4   :  { %1631 = vmatprep.subr.bf16.mxu0 %v4516_v35  ;;  %1672 = vmatprep.subr.bf16.mxu1 %v4651_v22 }
 0x3c7   :  { %1632 = vmatpush1.bf16.msra.mxu0 %v4520_v37  ;;  %1673 = vmatpush1.bf16.msra.mxu1 %v4655_v23 }
 0x3c8   :  { %1753 = vmatprep.subr.bf16.mxu0 %v4658_v24  ;;  %1794 = vmatprep.subr.bf16.mxu1 %v4661_v25 }
 0x3ca   :  { %1650 = vmatmul.mubr.bf16.vlgmr.msra.gmra.mxu0 %v1507_v7  ;;  %1691 = vmatmul.mubr.bf16.vlgmr.msra.gmra.mxu1 %v1507_v7  ;;  %v4718_v7 = vld [vmem:[#allocation14 + $0x44] ss:$16 sps:$4 sm:$0xff]  }
 0x3cb   :  { %1754 = vmatpush1.bf16.msra.mxu0 %v4664_v27  ;;  %1795 = vmatpush1.bf16.msra.mxu1 %v4667_v28  ;;  %6046 = vst [vmem:[#allocation42_spill] sm:$0xff] %v4718_v7 }
 0x3cc   :  { %1755 = vmatprep.subr.bf16.mxu0 %v4670_v29  ;;  %1796 = vmatprep.subr.bf16.mxu1 %v4673_v61 }
 0x3cf   :  { %1756 = vmatpush1.bf16.msra.mxu0 %v4676_v36  ;;  %1797 = vmatpush1.bf16.msra.mxu1 %v4679_v33 }
 0x3d0   :  { %1757 = vmatprep.subr.bf16.mxu0 %v4682_v26  ;;  %1798 = vmatprep.subr.bf16.mxu1 %v4685_v40 }
 0x3d3   :  { %1758 = vmatpush1.bf16.msra.mxu0 %v4688_v41  ;;  %1799 = vmatpush1.bf16.msra.mxu1 %v4691_v45 }
 0x3d4   :  { %1759 = vmatprep.subr.bf16.mxu0 %v4694_v46  ;;  %1800 = vmatprep.subr.bf16.mxu1 %v4697_v48 }
 0x3d7   :  { %1760 = vmatpush1.bf16.msra.mxu0 %v4700_v49  ;;  %1801 = vmatpush1.bf16.msra.mxu1 %v4703_v50  ;;  %v4721_v50 = vld [vmem:[#allocation14 + $0x4c] ss:$16 sps:$4 sm:$0xff]  }
 0x3d8   :  { %1761 = vmatprep.subr.bf16.mxu0 %v4706_v53  ;;  %1802 = vmatprep.subr.bf16.mxu1 %v4709_v54  ;;  %6047 = vst [vmem:[#allocation43_spill] sm:$0xff] %v4721_v50  ;;  %v4724_v53 = vld [vmem:[#allocation14 + $0x40] ss:$16 sps:$4 sm:$0xff]   ;;  %v4727_v54 = vld [vmem:[#allocation14 + $0x48] ss:$16 sps:$4 sm:$0xff]  }
 0x3d9   :  { %6048 = vst [vmem:[#allocation44_spill] sm:$0xff] %v4724_v53  ;;  %6049 = vst [vmem:[#allocation45_spill] sm:$0xff] %v4727_v54 }
 0x3db   :  { %1762 = vmatpush1.bf16.msra.mxu0 %v4712_v55  ;;  %1803 = vmatpush1.bf16.msra.mxu1 %v4715_v56  ;;  %v4730_v55 = vld [vmem:[#allocation14 + $0x24] ss:$16 sps:$4 sm:$0xff]   ;;  %v4733_v56 = vld [vmem:[#allocation14 + $0x2c] ss:$16 sps:$4 sm:$0xff]  }
 0x3dc   :  { %1763 = vmatprep.subr.bf16.mxu0 %v4718_v7  ;;  %1804 = vmatprep.subr.bf16.mxu1 %v4721_v50  ;;  %6050 = vst [vmem:[#allocation46_spill] sm:$0xff] %v4730_v55  ;;  %6051 = vst [vmem:[#allocation47_spill] sm:$0xff] %v4733_v56  ;;  %v4736_v7 = vld [vmem:[#allocation14 + $0x20] ss:$16 sps:$4 sm:$0xff]   ;;  %v4739_v50 = vld [vmem:[#allocation14 + $0x28] ss:$16 sps:$4 sm:$0xff]  }
 0x3dd   :  { %6052 = vst [vmem:[#allocation48_spill] sm:$0xff] %v4736_v7  ;;  %6053 = vst [vmem:[#allocation49_spill] sm:$0xff] %v4739_v50 }
 0x3df   :  { %1764 = vmatpush1.bf16.msra.mxu0 %v4724_v53  ;;  %1805 = vmatpush1.bf16.msra.mxu1 %v4727_v54  ;;  %v4742_v53 = vld [vmem:[#allocation14 + $0x4] ss:$16 sps:$4 sm:$0xff]   ;;  %v4745_v54 = vld [vmem:[#allocation14 + $0xc] ss:$16 sps:$4 sm:$0xff]  }
 0x3e0   :  { %1765 = vmatprep.subr.bf16.mxu0 %v4730_v55  ;;  %1806 = vmatprep.subr.bf16.mxu1 %v4733_v56  ;;  %6054 = vst [vmem:[#allocation50_spill] sm:$0xff] %v4742_v53  ;;  %6055 = vst [vmem:[#allocation51_spill] sm:$0xff] %v4745_v54  ;;  %v4748_v55 = vld [vmem:[#allocation14] ss:$16 sps:$4 sm:$0xff]   ;;  %v4751_v56 = vld [vmem:[#allocation14 + $0x8] ss:$16 sps:$4 sm:$0xff]  }
 0x3e1   :  { %6056 = vst [vmem:[#allocation52_spill] sm:$0xff] %v4748_v55  ;;  %6057 = vst [vmem:[#allocation53_spill] sm:$0xff] %v4751_v56 }
 0x3e3   :  { %1766 = vmatpush1.bf16.msra.mxu0 %v4736_v7  ;;  %1807 = vmatpush1.bf16.msra.mxu1 %v4739_v50  ;;  %v4754_v7 = vld [vmem:[#allocation14 + $0x1e4] ss:$16 sps:$4 sm:$0xff]   ;;  %v4757_v50 = vld [vmem:[#allocation14 + $0x1ec] ss:$16 sps:$4 sm:$0xff]  }
 0x3e4   :  { %1767 = vmatprep.subr.bf16.mxu0 %v4742_v53  ;;  %1808 = vmatprep.subr.bf16.mxu1 %v4745_v54  ;;  %6058 = vst [vmem:[#allocation54_spill] sm:$0xff] %v4754_v7  ;;  %6059 = vst [vmem:[#allocation55_spill] sm:$0xff] %v4757_v50  ;;  %v4760_v53 = vld [vmem:[#allocation14 + $0x1e0] ss:$16 sps:$4 sm:$0xff]   ;;  %v4763_v54 = vld [vmem:[#allocation14 + $0x1e8] ss:$16 sps:$4 sm:$0xff]  }
 0x3e5   :  { %6060 = vst [vmem:[#allocation56_spill] sm:$0xff] %v4760_v53  ;;  %6061 = vst [vmem:[#allocation57_spill] sm:$0xff] %v4763_v54 }
 0x3e7   :  { %1768 = vmatpush1.bf16.msra.mxu0 %v4748_v55  ;;  %1809 = vmatpush1.bf16.msra.mxu1 %v4751_v56  ;;  %v4766_v55 = vld [vmem:[#allocation14 + $0x1c4] ss:$16 sps:$4 sm:$0xff]   ;;  %v4769_v56 = vld [vmem:[#allocation14 + $0x1cc] ss:$16 sps:$4 sm:$0xff]  }
 0x3e8   :  { %1769 = vmatprep.subr.bf16.mxu0 %v4754_v7  ;;  %1810 = vmatprep.subr.bf16.mxu1 %v4757_v50  ;;  %6062 = vst [vmem:[#allocation58_spill] sm:$0xff] %v4766_v55  ;;  %6063 = vst [vmem:[#allocation59_spill] sm:$0xff] %v4769_v56  ;;  %v4772_v7 = vld [vmem:[#allocation14 + $0x1c0] ss:$16 sps:$4 sm:$0xff]   ;;  %v4775_v50 = vld [vmem:[#allocation14 + $0x1c8] ss:$16 sps:$4 sm:$0xff]  }
 0x3e9   :  { %6064 = vst [vmem:[#allocation60_spill] sm:$0xff] %v4772_v7  ;;  %6065 = vst [vmem:[#allocation61_spill] sm:$0xff] %v4775_v50 }
 0x3eb   :  { %1770 = vmatpush2.bf16.msra.mxu0 %v4760_v53  ;;  %1811 = vmatpush2.bf16.msra.mxu1 %v4763_v54  ;;  %v4778_v53 = vld [vmem:[#allocation14 + $0x1a4] ss:$16 sps:$4 sm:$0xff]   ;;  %v4781_v54 = vld [vmem:[#allocation14 + $0x1ac] ss:$16 sps:$4 sm:$0xff]  }
 0x3ec   :  { %1771 = vmatprep.subr.bf16.mxu0 %v4766_v55  ;;  %1812 = vmatprep.subr.bf16.mxu1 %v4769_v56  ;;  %6066 = vst [vmem:[#allocation62_spill] sm:$0xff] %v4778_v53  ;;  %6067 = vst [vmem:[#allocation63_spill] sm:$0xff] %v4781_v54  ;;  %v4784_v55 = vld [vmem:[#allocation14 + $0x1a0] ss:$16 sps:$4 sm:$0xff]   ;;  %v4787_v56 = vld [vmem:[#allocation14 + $0x1a8] ss:$16 sps:$4 sm:$0xff]  }
 0x3ed   :  { %6068 = vst [vmem:[#allocation64_spill] sm:$0xff] %v4784_v55  ;;  %6069 = vst [vmem:[#allocation65_spill] sm:$0xff] %v4787_v56 }
 0x3ef   :  { %1772 = vmatpush2.bf16.msra.mxu0 %v4772_v7  ;;  %1813 = vmatpush2.bf16.msra.mxu1 %v4775_v50  ;;  %v4790_v7 = vld [vmem:[#allocation14 + $0x184] ss:$16 sps:$4 sm:$0xff]   ;;  %v4793_v50 = vld [vmem:[#allocation14 + $0x18c] ss:$16 sps:$4 sm:$0xff]  }
 0x3f0   :  { %1773 = vmatprep.subr.bf16.mxu0 %v4778_v53  ;;  %1814 = vmatprep.subr.bf16.mxu1 %v4781_v54  ;;  %6070 = vst [vmem:[#allocation66_spill] sm:$0xff] %v4790_v7  ;;  %6071 = vst [vmem:[#allocation67_spill] sm:$0xff] %v4793_v50  ;;  %v4796_v53 = vld [vmem:[#allocation14 + $0x180] ss:$16 sps:$4 sm:$0xff]   ;;  %v4799_v54 = vld [vmem:[#allocation14 + $0x188] ss:$16 sps:$4 sm:$0xff]  }
 0x3f1   :  { %6072 = vst [vmem:[#allocation68_spill] sm:$0xff] %v4796_v53  ;;  %6073 = vst [vmem:[#allocation69_spill] sm:$0xff] %v4799_v54 }
 0x3f3   :  { %1774 = vmatpush2.bf16.msra.mxu0 %v4784_v55  ;;  %1815 = vmatpush2.bf16.msra.mxu1 %v4787_v56  ;;  %v4802_v55 = vld [vmem:[#allocation14 + $0x164] ss:$16 sps:$4 sm:$0xff]   ;;  %v4805_v56 = vld [vmem:[#allocation14 + $0x16c] ss:$16 sps:$4 sm:$0xff]  }
 0x3f4   :  { %1775 = vmatprep.subr.bf16.mxu0 %v4790_v7  ;;  %1816 = vmatprep.subr.bf16.mxu1 %v4793_v50  ;;  %6074 = vst [vmem:[#allocation70_spill] sm:$0xff] %v4802_v55  ;;  %6075 = vst [vmem:[#allocation71_spill] sm:$0xff] %v4805_v56  ;;  %v4808_v7 = vld [vmem:[#allocation14 + $0x160] ss:$16 sps:$4 sm:$0xff]   ;;  %v4811_v50 = vld [vmem:[#allocation14 + $0x168] ss:$16 sps:$4 sm:$0xff]  }
 0x3f5   :  { %6076 = vst [vmem:[#allocation72_spill] sm:$0xff] %v4808_v7  ;;  %6077 = vst [vmem:[#allocation73_spill] sm:$0xff] %v4811_v50 }
 0x3f7   :  { %1776 = vmatpush2.bf16.msra.mxu0 %v4796_v53  ;;  %1817 = vmatpush2.bf16.msra.mxu1 %v4799_v54  ;;  %v4814_v53 = vld [vmem:[#allocation14 + $0x144] ss:$16 sps:$4 sm:$0xff]   ;;  %v4817_v54 = vld [vmem:[#allocation14 + $0x14c] ss:$16 sps:$4 sm:$0xff]  }
 0x3f8   :  { %1777 = vmatprep.subr.bf16.mxu0 %v4802_v55  ;;  %1818 = vmatprep.subr.bf16.mxu1 %v4805_v56  ;;  %6078 = vst [vmem:[#allocation74_spill] sm:$0xff] %v4814_v53  ;;  %6079 = vst [vmem:[#allocation75_spill] sm:$0xff] %v4817_v54  ;;  %v4820_v55 = vld [vmem:[#allocation14 + $0x140] ss:$16 sps:$4 sm:$0xff]   ;;  %v4823_v56 = vld [vmem:[#allocation14 + $0x148] ss:$16 sps:$4 sm:$0xff]  }
 0x3f9   :  { %6080 = vst [vmem:[#allocation76_spill] sm:$0xff] %v4820_v55  ;;  %6081 = vst [vmem:[#allocation77_spill] sm:$0xff] %v4823_v56 }
 0x3fb   :  { %1778 = vmatpush2.bf16.msra.mxu0 %v4808_v7  ;;  %1819 = vmatpush2.bf16.msra.mxu1 %v4811_v50  ;;  %v4826_v7 = vld [vmem:[#allocation14 + $0x124] ss:$16 sps:$4 sm:$0xff]   ;;  %v4829_v50 = vld [vmem:[#allocation14 + $0x12c] ss:$16 sps:$4 sm:$0xff]  }
 0x3fc   :  { %1779 = vmatprep.subr.bf16.mxu0 %v4814_v53  ;;  %1820 = vmatprep.subr.bf16.mxu1 %v4817_v54  ;;  %6082 = vst [vmem:[#allocation83_spill] sm:$0xff] %v4826_v7  ;;  %6083 = vst [vmem:[#allocation84_spill] sm:$0xff] %v4829_v50  ;;  %v4832_v53 = vld [vmem:[#allocation14 + $0x120] ss:$16 sps:$4 sm:$0xff]   ;;  %v4835_v54 = vld [vmem:[#allocation14 + $0x128] ss:$16 sps:$4 sm:$0xff]  }
 0x3fd   :  { %6084 = vst [vmem:[#allocation85_spill] sm:$0xff] %v4832_v53  ;;  %6085 = vst [vmem:[#allocation86_spill] sm:$0xff] %v4835_v54 }
 0x3ff   :  { %1780 = vmatpush2.bf16.msra.mxu0 %v4820_v55  ;;  %1821 = vmatpush2.bf16.msra.mxu1 %v4823_v56  ;;  %v4838_v55 = vld [vmem:[#allocation14 + $0x104] ss:$16 sps:$4 sm:$0xff]   ;;  %v4841_v56 = vld [vmem:[#allocation14 + $0x10c] ss:$16 sps:$4 sm:$0xff]  }
 0x400   :  { %1781 = vmatprep.subr.bf16.mxu0 %v4826_v7  ;;  %1822 = vmatprep.subr.bf16.mxu1 %v4829_v50  ;;  %6086 = vst [vmem:[#allocation87_spill] sm:$0xff] %v4838_v55  ;;  %6087 = vst [vmem:[#allocation88_spill] sm:$0xff] %v4841_v56  ;;  %v4844_v7 = vld [vmem:[#allocation14 + $0x100] ss:$16 sps:$4 sm:$0xff]   ;;  %v4847_v50 = vld [vmem:[#allocation14 + $0x108] ss:$16 sps:$4 sm:$0xff]  }
 0x401   :  { %6088 = vst [vmem:[#allocation89_spill] sm:$0xff] %v4844_v7  ;;  %6089 = vst [vmem:[#allocation90_spill] sm:$0xff] %v4847_v50 }
 0x403   :  { %1782 = vmatpush2.bf16.msra.mxu0 %v4832_v53  ;;  %1823 = vmatpush2.bf16.msra.mxu1 %v4835_v54 }
 0x404   :  { %1783 = vmatprep.subr.bf16.mxu0 %v4838_v55  ;;  %1824 = vmatprep.subr.bf16.mxu1 %v4841_v56 }
 0x407   :  { %1784 = vmatpush2.bf16.msra.mxu0 %v4844_v7  ;;  %1825 = vmatpush2.bf16.msra.mxu1 %v4847_v50 }
 0x408   :  { %1859 = vmatprep.subr.bf16.mxu0 %v4588_v43  ;;  %1900 = vmatprep.subr.bf16.mxu1 %v4591_v44 }
 0x46a   :  { %v1545_v54 = vpop.f32.mrf.mxu0  ;;  %v1586_v53 = vpop.f32.mrf.mxu1 }
 0x46b   :  { %v1546_v55 = vadd.f32 %v1545_v54, %v6028_v47  ;;  %v1587_v44 = vadd.f32 %v1586_v53, %v6031_v17 }
 0x46c   :  { %v1547_v49 = vpop.f32.mrf.mxu0  ;;  %v1588_v48 = vpop.f32.mrf.mxu1 }
 0x46d   :  { %v3040_v46 = vmul.f32 -1.442695, %v1546_v55  ;;  %v1548_v56 = vadd.f32 %v1547_v49, %v6029_v52  ;;  %v1589_v43 = vadd.f32 %v1588_v48, %v6030_v11 }
 0x46e   :  { %v1549_v45 = vpop.f32.mrf.mxu0  ;;  %v1590_v41 = vpop.f32.mrf.mxu1 }
 0x46f   :  { %3366 = vpow2.f32 %v3040_v46  ;;  %v3041_v7 = vmul.f32 -1.442695, %v1548_v56  ;;  %v3042_v33 = vmul.f32 -1.442695, %v1589_v43 }
 0x470   :  { %v1550_v40 = vpop.f32.mrf.mxu0  ;;  %v1591_v26 = vpop.f32.mrf.mxu1 }
 0x471   :  { %3368 = vpow2.f32 %v3041_v7 }
 0x472   :  { %3370 = vtanh.f32 %v1587_v44 }
 0x47c   :  { %v3367_v50 = vpop.eup %3366 }
 0x47d   :  { %v1596_v36 = vadd.f32 1.0, %v3367_v50 }
 0x47e   :  { %v3369_v54 = vpop.eup %3368 }
 0x47f   :  { %3372 = vrcp.f32 %v1596_v36  ;;  %v1602_v55 = vadd.f32 1.0, %v3369_v54  ;;  %v3371_v46 = vpop.eup %3370 }
 0x480   :  { %3374 = vpow2.f32 %v3042_v33 }
 0x481   :  { %3376 = vrcp.f32 %v1602_v55 }
 0x48a   :  { %v1651_v45 = vpop.f32.mrf.mxu0  ;;  %v1692_v41 = vpop.f32.mrf.mxu1 }
 0x48b   :  { %v1703_v49 = vrot.slane %v1651_v45, 2 }
 0x48c   :  { %v3373_v40 = vpop.eup %3372  ;;  %v1653_v26 = vpop.f32.mrf.mxu0 }
 0x48d   :  { %v1694_v56 = vpop.f32.mrf.mxu1  ;;  %v3375_v7 = vpop.eup %3374  ;;  %v1711_v48 = vadd.f32 %v1703_v49, %v4301_v18  ;;  %v1704_v53 = vrot.slane %v1653_v26, 2  ;;  %v1613_v11 = vmul.f32 %v3373_v40, %v3371_v46  ;;  %v1705_v46 = vrot.slane %v1692_v41, 2 }
 0x48e   :  { %v3377_v17 = vpop.eup %3376  ;;  %v1655_v43 = vpop.f32.mrf.mxu0  ;;  %v1609_v54 = vadd.f32 1.0, %v3375_v7  ;;  %v1706_v18 = vrot.slane %v1694_v56, 2 }
 0x48f   :  { %v1696_v50 = vpop.f32.mrf.mxu1  ;;  %v1612_v44 = vmul.f32 %v3377_v17, %v4601_v9  ;;  %v3043_v36 = vmul.f32 -1.442695, %v1711_v48  ;;  %v1712_v33 = vadd.f32 %v1704_v53, %v4303_v5  ;;  %v1713_v9 = vadd.f32 %v1705_v46, %v4310_v10 }
 0x490   :  { %v1656_v55 = vpop.f32.mrf.mxu0  ;;  %v1714_v49 = vadd.f32 %v1706_v18, %v4307_v3  ;;  %v1735_v10 = vrot.slane %v4607_v51, 6  ;;  %v6112_v51 = vld [vmem:[#allocation50_spill] sm:$0xff] }
 0x491   :  { %v1697_v52 = vpop.f32.mrf.mxu1  ;;  %3378 = vpow2.f32 %v3043_v36  ;;  %v3044_v45 = vmul.f32 -1.442695, %v1712_v33  ;;  %v4859_v47 = vadd.f32 %v1613_v11, %v1612_v44 }
 0x492   :  { %v3045_v40 = vmul.f32 -1.442695, %v1714_v49 }
 0x493   :  { %3380 = vpow2.f32 %v3044_v45 }
 0x494   :  { %3382 = vrcp.f32 %v1609_v54 }
 0x495   :  { %3384 = vtanh.f32 %v4859_v47 }
 0x496   :  { %3386 = vpow2.f32 %v3045_v40 }
 0x49e   :  { %v3379_v17 = vpop.eup %3378 }
 0x49f   :  { %v1718_v5 = vadd.f32 1.0, %v3379_v17  ;;  %v6113_v17 = vld [vmem:[#allocation51_spill] sm:$0xff] }
 0x4a0   :  { %v3381_v26 = vpop.eup %3380 }
 0x4a1   :  { %v3383_v52 = vpop.eup %3382  ;;  %3388 = vrcp.f32 %v1718_v5  ;;  %v1724_v7 = vadd.f32 1.0, %v3381_v26  ;;  %v6115_v5 = vld [vmem:[#allocation53_spill] sm:$0xff]  ;;  %v6116_v26 = vld [vmem:[#allocation54_spill] sm:$0xff] }
 0x4a2   :  { %v3385_v11 = vpop.eup %3384  ;;  %3390 = vtanh.f32 %v1713_v9  ;;  %v6114_v9 = vld [vmem:[#allocation52_spill] sm:$0xff] }
 0x4a3   :  { %3392 = vrcp.f32 %v1724_v7  ;;  %v1616_v48 = vmul.f32 %v3385_v11, %v3383_v52  ;;  %v3387_v3 = vpop.eup %3386  ;;  %v6117_v52 = vld [vmem:[#allocation55_spill] sm:$0xff]  ;;  %v6118_v7 = vld [vmem:[#allocation56_spill] sm:$0xff]  ;;  %v6119_v11 = vld [vmem:[#allocation57_spill] sm:$0xff] }
 0x4a4   :  { %v1731_v36 = vadd.f32 1.0, %v3387_v3  ;;  %v6124_v3 = vld [vmem:[#allocation62_spill] sm:$0xff] }
 0x4a5   :  { %v1743_v56 = vrot.slane %v1616_v48, 2  ;;  %v6120_v48 = vld [vmem:[#allocation58_spill] sm:$0xff] }
 0x4a6   :  { %3394 = vrcp.f32 %v1731_v36  ;;  %v6129_v36 = vld [vmem:[#allocation67_spill] sm:$0xff] }
 0x4a7   :  { %v1746_v53 = vpack.c.bf16 %v1743_v56, %v1743_v56  ;;  %v6121_v56 = vld [vmem:[#allocation59_spill] sm:$0xff] }
 0x4a9   :  { %v1750_v43 = vrot.slane %v1746_v53, 3  ;;  %v6122_v53 = vld [vmem:[#allocation60_spill] sm:$0xff] }
 0x4ab   :  { %1785 = vmatprep.mubr.bf16.mxu0 %v1750_v43  ;;  %1826 = vmatprep.mubr.bf16.mxu1 %v1750_v43  ;;  %v6123_v43 = vld [vmem:[#allocation61_spill] sm:$0xff] }
 0x4ae   :  { %v3389_v41 = vpop.eup %3388 }
 0x4af   :  { %v3391_v50 = vpop.eup %3390 }
 0x4b0   :  { %v3393_v44 = vpop.eup %3392  ;;  %v1738_v33 = vmul.f32 %v3391_v50, %v3389_v41  ;;  %v6125_v41 = vld [vmem:[#allocation63_spill] sm:$0xff]  ;;  %v6126_v50 = vld [vmem:[#allocation64_spill] sm:$0xff] }
 0x4b1   :  { %v1737_v54 = vmul.f32 %v3393_v44, %v1735_v10  ;;  %v6127_v10 = vld [vmem:[#allocation65_spill] sm:$0xff]  ;;  %v6128_v44 = vld [vmem:[#allocation66_spill] sm:$0xff] }
 0x4b3   :  { %v4865_v55 = vadd.f32 %v1738_v33, %v1737_v54  ;;  %v3395_v45 = vpop.eup %3394  ;;  %v6130_v33 = vld [vmem:[#allocation68_spill] sm:$0xff]  ;;  %v6131_v54 = vld [vmem:[#allocation69_spill] sm:$0xff] }
 0x4b5   :  { %3396 = vtanh.f32 %v4865_v55 }
 0x4c2   :  { %v3397_v18 = vpop.eup %3396 }
 0x4c3   :  { %v1741_v49 = vmul.f32 %v3397_v18, %v3395_v45  ;;  %v6132_v45 = vld [vmem:[#allocation70_spill] sm:$0xff]  ;;  %v6133_v18 = vld [vmem:[#allocation71_spill] sm:$0xff] }
 0x4c5   :  { %v1745_v46 = vpack.c.bf16 %v1741_v49, %v1741_v49  ;;  %v6134_v49 = vld [vmem:[#allocation72_spill] sm:$0xff] }
 0x4c7   :  { %v1749_v40 = vrot.slane %v1745_v46, 3  ;;  %v6135_v46 = vld [vmem:[#allocation73_spill] sm:$0xff] }
 0x4c9   :  { %1786 = vmatmul.mubr.bf16.vlgmr.msra.gmra.mxu0 %v1749_v40  ;;  %1827 = vmatmul.mubr.bf16.vlgmr.msra.gmra.mxu1 %v1749_v40 }
 0x4ca   :  { %1860 = vmatpush1.bf16.msra.mxu0 %v4448_v62  ;;  %1901 = vmatpush1.bf16.msra.mxu1 %v4451_v0  ;;  %v6090_v62 = vld [vmem:[#allocation31_spill] sm:$0xff]  ;;  %v6091_v0 = vld [vmem:[#allocation32_spill] sm:$0xff] }
 0x4cb   :  { %1861 = vmatprep.subr.bf16.mxu0 %v4454_v32  ;;  %1902 = vmatprep.subr.bf16.mxu1 %v4457_v4  ;;  %v6092_v32 = vld [vmem:[#allocation33_spill] sm:$0xff]  ;;  %v6093_v4 = vld [vmem:[#allocation34_spill] sm:$0xff] }
 0x4cc   :  { %1891 = vmatprep.mubr.bf16.mxu0 %v5924_v6  ;;  %1932 = vmatprep.mubr.bf16.mxu1 %v5924_v6 }
 0x4ce   :  { %1862 = vmatpush1.bf16.msra.mxu0 %v4462_v16  ;;  %1903 = vmatpush1.bf16.msra.mxu1 %v4465_v12  ;;  %v6094_v16 = vld [vmem:[#allocation35_spill] sm:$0xff]  ;;  %v6095_v12 = vld [vmem:[#allocation36_spill] sm:$0xff] }
 0x4cf   :  { %1863 = vmatprep.subr.bf16.mxu0 %v4468_v39  ;;  %1904 = vmatprep.subr.bf16.mxu1 %v4471_v14  ;;  %v6096_v39 = vld [vmem:[#allocation37_spill] sm:$0xff]  ;;  %v6097_v14 = vld [vmem:[#allocation38_spill] sm:$0xff] }
 0x4d2   :  { %1864 = vmatpush1.bf16.msra.mxu0 %v4474_v13  ;;  %1905 = vmatpush1.bf16.msra.mxu1 %v4477_v30  ;;  %v6098_v13 = vld [vmem:[#allocation39_spill] sm:$0xff]  ;;  %v6099_v30 = vld [vmem:[#allocation40_spill] sm:$0xff] }
 0x4d3   :  { %1865 = vmatprep.subr.bf16.mxu0 %v4480_v38  ;;  %1906 = vmatprep.subr.bf16.mxu1 %v4483_v8  ;;  %v6100_v38 = vld [vmem:[#allocation23_spill] sm:$0xff]  ;;  %v6101_v8 = vld [vmem:[#allocation24_spill] sm:$0xff] }
 0x4d6   :  { %1866 = vmatpush1.bf16.msra.mxu0 %v4486_v57  ;;  %1907 = vmatpush1.bf16.msra.mxu1 %v4489_v2  ;;  %v6102_v57 = vld [vmem:[#allocation78_spill] sm:$0xff]  ;;  %v6103_v2 = vld [vmem:[#allocation41_spill] sm:$0xff] }
 0x4d7   :  { %1867 = vmatprep.subr.bf16.mxu0 %v4492_v58  ;;  %1908 = vmatprep.subr.bf16.mxu1 %v4627_v1  ;;  %v6104_v58 = vld [vmem:[#allocation42_spill] sm:$0xff] }
 0x4da   :  { %1868 = vmatpush1.bf16.msra.mxu0 %v4496_v60  ;;  %1909 = vmatpush1.bf16.msra.mxu1 %v4631_v15  ;;  %v6105_v60 = vld [vmem:[#allocation43_spill] sm:$0xff] }
 0x4db   :  { %1869 = vmatprep.subr.bf16.mxu0 %v4500_v59  ;;  %1910 = vmatprep.subr.bf16.mxu1 %v4635_v19  ;;  %v6106_v59 = vld [vmem:[#allocation44_spill] sm:$0xff] }
 0x4de   :  { %1870 = vmatpush1.bf16.msra.mxu0 %v4504_v42  ;;  %1911 = vmatpush1.bf16.msra.mxu1 %v4639_v20  ;;  %v6107_v42 = vld [vmem:[#allocation45_spill] sm:$0xff] }
 0x4df   :  { %1871 = vmatprep.subr.bf16.mxu0 %v4508_v63  ;;  %1912 = vmatprep.subr.bf16.mxu1 %v4643_v21  ;;  %v6108_v63 = vld [vmem:[#allocation46_spill] sm:$0xff] }
 0x4e2   :  { %1872 = vmatpush1.bf16.msra.mxu0 %v4512_v34  ;;  %1913 = vmatpush1.bf16.msra.mxu1 %v4647_v31  ;;  %v6109_v34 = vld [vmem:[#allocation47_spill] sm:$0xff] }
 0x4e3   :  { %1873 = vmatprep.subr.bf16.mxu0 %v4516_v35  ;;  %1914 = vmatprep.subr.bf16.mxu1 %v4651_v22  ;;  %v6110_v35 = vld [vmem:[#allocation48_spill] sm:$0xff] }
 0x4e6   :  { %1874 = vmatpush1.bf16.msra.mxu0 %v4520_v37  ;;  %1915 = vmatpush1.bf16.msra.mxu1 %v4655_v23  ;;  %v6111_v37 = vld [vmem:[#allocation49_spill] sm:$0xff] }
 0x4e7   :  { %1974 = vmatprep.subr.bf16.mxu0 %v4658_v24  ;;  %2015 = vmatprep.subr.bf16.mxu1 %v4661_v25 }
 0x4e9   :  { %1892 = vmatmul.mubr.bf16.vlgmr.msra.gmra.mxu0 %v1749_v40  ;;  %1933 = vmatmul.mubr.bf16.vlgmr.msra.gmra.mxu1 %v1749_v40  ;;  %v6136_v40 = vld [vmem:[#allocation74_spill] sm:$0xff] }
 0x4ea   :  { %1975 = vmatpush1.bf16.msra.mxu0 %v4664_v27  ;;  %2016 = vmatpush1.bf16.msra.mxu1 %v4667_v28 }
 0x4eb   :  { %1976 = vmatprep.subr.bf16.mxu0 %v4670_v29  ;;  %2017 = vmatprep.subr.bf16.mxu1 %v4673_v61 }
 0x4ee   :  { %1977 = vmatpush1.bf16.msra.mxu0 %v6090_v62  ;;  %2018 = vmatpush1.bf16.msra.mxu1 %v6091_v0 }
 0x4ef   :  { %1978 = vmatprep.subr.bf16.mxu0 %v6092_v32  ;;  %2019 = vmatprep.subr.bf16.mxu1 %v6093_v4 }
 0x4f2   :  { %1979 = vmatpush1.bf16.msra.mxu0 %v6094_v16  ;;  %2020 = vmatpush1.bf16.msra.mxu1 %v6095_v12 }
 0x4f3   :  { %1980 = vmatprep.subr.bf16.mxu0 %v6096_v39  ;;  %2021 = vmatprep.subr.bf16.mxu1 %v6097_v14 }
 0x4f6   :  { %1981 = vmatpush1.bf16.msra.mxu0 %v6098_v13  ;;  %2022 = vmatpush1.bf16.msra.mxu1 %v6099_v30 }
 0x4f7   :  { %1982 = vmatprep.subr.bf16.mxu0 %v6100_v38  ;;  %2023 = vmatprep.subr.bf16.mxu1 %v6101_v8 }
 0x4fa   :  { %1983 = vmatpush1.bf16.msra.mxu0 %v6102_v57  ;;  %2024 = vmatpush1.bf16.msra.mxu1 %v6103_v2 }
 0x4fb   :  { %1984 = vmatprep.subr.bf16.mxu0 %v6104_v58  ;;  %2025 = vmatprep.subr.bf16.mxu1 %v6105_v60 }
 0x4fe   :  { %1985 = vmatpush1.bf16.msra.mxu0 %v6106_v59  ;;  %2026 = vmatpush1.bf16.msra.mxu1 %v6107_v42 }
 0x4ff   :  { %1986 = vmatprep.subr.bf16.mxu0 %v6108_v63  ;;  %2027 = vmatprep.subr.bf16.mxu1 %v6109_v34 }
 0x502   :  { %1987 = vmatpush1.bf16.msra.mxu0 %v6110_v35  ;;  %2028 = vmatpush1.bf16.msra.mxu1 %v6111_v37 }
 0x503   :  { %1988 = vmatprep.subr.bf16.mxu0 %v6112_v51  ;;  %2029 = vmatprep.subr.bf16.mxu1 %v6113_v17 }
 0x506   :  { %1989 = vmatpush1.bf16.msra.mxu0 %v6114_v9  ;;  %2030 = vmatpush1.bf16.msra.mxu1 %v6115_v5 }
 0x507   :  { %1990 = vmatprep.subr.bf16.mxu0 %v6116_v26  ;;  %2031 = vmatprep.subr.bf16.mxu1 %v6117_v52 }
 0x50a   :  { %1991 = vmatpush2.bf16.msra.mxu0 %v6118_v7  ;;  %2032 = vmatpush2.bf16.msra.mxu1 %v6119_v11  ;;  %v6153_v7 = vld [vmem:[#allocation28_spill] sm:$0xff] }
 0x50b   :  { %1992 = vmatprep.subr.bf16.mxu0 %v6120_v48  ;;  %2033 = vmatprep.subr.bf16.mxu1 %v6121_v56 }
 0x50e   :  { %1993 = vmatpush2.bf16.msra.mxu0 %v6122_v53  ;;  %2034 = vmatpush2.bf16.msra.mxu1 %v6123_v43 }
 0x50f   :  { %1994 = vmatprep.subr.bf16.mxu0 %v6124_v3  ;;  %2035 = vmatprep.subr.bf16.mxu1 %v6125_v41  ;;  %v6150_v41 = vld [vmem:[#allocation25_spill] sm:$0xff] }
 0x512   :  { %1995 = vmatpush2.bf16.msra.mxu0 %v6126_v50  ;;  %2036 = vmatpush2.bf16.msra.mxu1 %v6127_v10  ;;  %v6137_v50 = vld [vmem:[#allocation75_spill] sm:$0xff]  ;;  %v6138_v10 = vld [vmem:[#allocation76_spill] sm:$0xff] }
 0x513   :  { %1996 = vmatprep.subr.bf16.mxu0 %v6128_v44  ;;  %2037 = vmatprep.subr.bf16.mxu1 %v6129_v36  ;;  %v6139_v44 = vld [vmem:[#allocation77_spill] sm:$0xff]  ;;  %v6140_v36 = vld [vmem:[#allocation83_spill] sm:$0xff] }
 0x516   :  { %1997 = vmatpush2.bf16.msra.mxu0 %v6130_v33  ;;  %2038 = vmatpush2.bf16.msra.mxu1 %v6131_v54  ;;  %v6141_v33 = vld [vmem:[#allocation84_spill] sm:$0xff]  ;;  %v6142_v54 = vld [vmem:[#allocation85_spill] sm:$0xff] }
 0x517   :  { %1998 = vmatprep.subr.bf16.mxu0 %v6132_v45  ;;  %2039 = vmatprep.subr.bf16.mxu1 %v6133_v18  ;;  %v6143_v45 = vld [vmem:[#allocation86_spill] sm:$0xff]  ;;  %v6144_v18 = vld [vmem:[#allocation87_spill] sm:$0xff] }
 0x51a   :  { %1999 = vmatpush2.bf16.msra.mxu0 %v6134_v49  ;;  %2040 = vmatpush2.bf16.msra.mxu1 %v6135_v46  ;;  %v6145_v49 = vld [vmem:[#allocation88_spill] sm:$0xff]  ;;  %v6146_v46 = vld [vmem:[#allocation89_spill] sm:$0xff] }
 0x51b   :  { %2000 = vmatprep.subr.bf16.mxu0 %v6136_v40  ;;  %2041 = vmatprep.subr.bf16.mxu1 %v6137_v50  ;;  %v6147_v40 = vld [vmem:[#allocation90_spill] sm:$0xff]  ;;  %v6148_v50 = vld [vmem:[#allocation29_spill] sm:$0xff] }
 0x51e   :  { %2001 = vmatpush2.bf16.msra.mxu0 %v6138_v10  ;;  %2042 = vmatpush2.bf16.msra.mxu1 %v6139_v44  ;;  %v6149_v10 = vld [vmem:[#allocation30_spill] sm:$0xff] }
 0x51f   :  { %2002 = vmatprep.subr.bf16.mxu0 %v6140_v36  ;;  %2043 = vmatprep.subr.bf16.mxu1 %v6141_v33 }
 0x522   :  { %2003 = vmatpush2.bf16.msra.mxu0 %v6142_v54  ;;  %2044 = vmatpush2.bf16.msra.mxu1 %v6143_v45  ;;  %v6151_v45 = vld [vmem:[#allocation26_spill] sm:$0xff] }
 0x523   :  { %2004 = vmatprep.subr.bf16.mxu0 %v6144_v18  ;;  %2045 = vmatprep.subr.bf16.mxu1 %v6145_v49 }
 0x526   :  { %2005 = vmatpush2.bf16.msra.mxu0 %v6146_v46  ;;  %2046 = vmatpush2.bf16.msra.mxu1 %v6147_v40  ;;  %v6152_v40 = vld [vmem:[#allocation27_spill] sm:$0xff] }
 0x527   :  { %2080 = vmatprep.subr.bf16.mxu0 %v6148_v50  ;;  %2121 = vmatprep.subr.bf16.mxu1 %v6149_v10 }
 0x589   :  { %v1787_v44 = vpop.f32.mrf.mxu0  ;;  %v1828_v36 = vpop.f32.mrf.mxu1 }
 0x58a   :  { %v1788_v33 = vadd.f32 %v1787_v44, %v6150_v41  ;;  %v1829_v52 = vadd.f32 %v1828_v36, %v6153_v7 }
 0x58b   :  { %v1789_v3 = vpop.f32.mrf.mxu0  ;;  %v1830_v54 = vpop.f32.mrf.mxu1 }
 0x58c   :  { %v3046_v43 = vmul.f32 -1.442695, %v1788_v33  ;;  %v1790_v53 = vadd.f32 %v1789_v3, %v6151_v45  ;;  %v1831_v50 = vadd.f32 %v1830_v54, %v6152_v40  ;;  %v6155_v40 = vld [vmem:[#allocation80_spill] sm:$0xff] }
 0x58d   :  { %v1791_v18 = vpop.f32.mrf.mxu0  ;;  %v1832_v56 = vpop.f32.mrf.mxu1 }
 0x58e   :  { %3398 = vpow2.f32 %v3046_v43  ;;  %v3047_v49 = vmul.f32 -1.442695, %v1790_v53  ;;  %v3048_v11 = vmul.f32 -1.442695, %v1831_v50  ;;  %v6154_v53 = vld [vmem:[#allocation79_spill] sm:$0xff] }
 0x58f   :  { %v1792_v46 = vpop.f32.mrf.mxu0  ;;  %v1833_v48 = vpop.f32.mrf.mxu1 }
 0x590   :  { %3400 = vpow2.f32 %v3047_v49 }
 0x591   :  { %3402 = vpow2.f32 %v3048_v11 }
 0x59b   :  { %v3399_v10 = vpop.eup %3398 }
 0x59c   :  { %v1838_v26 = vadd.f32 1.0, %v3399_v10 }
 0x59d   :  { %v3401_v44 = vpop.eup %3400 }
 0x59e   :  { %3404 = vrcp.f32 %v1838_v26  ;;  %v1844_v33 = vadd.f32 1.0, %v3401_v44  ;;  %v3403_v43 = vpop.eup %3402 }
 0x59f   :  { %3406 = vtanh.f32 %v1829_v52  ;;  %v1851_v10 = vadd.f32 1.0, %v3403_v43  ;;  %v6157_v43 = vld [vmem:[#allocation81_spill] sm:$0xff] }
 0x5a0   :  { %3408 = vrcp.f32 %v1844_v33 }
 0x5a9   :  { %v1893_v3 = vpop.f32.mrf.mxu0  ;;  %v1934_v56 = vpop.f32.mrf.mxu1 }
 0x5aa   :  { %v1941_v18 = vadd.f32 %v1893_v3, %v6154_v53 }
 0x5ab   :  { %v3405_v48 = vpop.eup %3404  ;;  %v1895_v49 = vpop.f32.mrf.mxu0 }
 0x5ac   :  { %v1936_v46 = vpop.f32.mrf.mxu1  ;;  %v3407_v54 = vpop.eup %3406  ;;  %v3049_v50 = vmul.f32 -1.442695, %v1941_v18  ;;  %v1942_v45 = vadd.f32 %v1895_v49, %v6155_v40  ;;  %v6156_v18 = vld [vmem:[#allocation82_spill] sm:$0xff] }
 0x5ad   :  { %v3409_v36 = vpop.eup %3408  ;;  %v1897_v7 = vpop.f32.mrf.mxu0  ;;  %v1855_v26 = vmul.f32 %v3407_v54, %v3405_v48  ;;  %v1944_v53 = vadd.f32 %v1936_v46, %v6156_v18 }
 0x5ae   :  { %v1938_v11 = vpop.f32.mrf.mxu1  ;;  %v1854_v52 = vmul.f32 %v3409_v36, %v4859_v47  ;;  %3410 = vpow2.f32 %v3049_v50  ;;  %v3050_v44 = vmul.f32 -1.442695, %v1942_v45  ;;  %v1943_v7 = vadd.f32 %v1934_v56, %v6157_v43 }
 0x5af   :  { %v1898_v33 = vpop.f32.mrf.mxu0  ;;  %v3051_v49 = vmul.f32 -1.442695, %v1944_v53  ;;  %v1965_v53 = vrot.slane %v4865_v55, 6  ;;  %v4985_v55 = vld [vmem:[#allocation12 + $0xe8] ss:$16 sps:$4 sm:$0xff]  }
 0x5b0   :  { %v1939_v41 = vpop.f32.mrf.mxu1  ;;  %3412 = vpow2.f32 %v3050_v44  ;;  %v4973_v3 = vadd.f32 %v1855_v26, %v1854_v52 }
 0x5b1   :  { %3414 = vrcp.f32 %v1851_v10 }
 0x5b2   :  { %3416 = vtanh.f32 %v4973_v3 }
 0x5b3   :  { %3418 = vpow2.f32 %v3051_v49 }
 0x5bb   :  { %v3411_v40 = vpop.eup %3410 }
 0x5bc   :  { %v1948_v11 = vadd.f32 1.0, %v3411_v40 }
 0x5bd   :  { %v3413_v48 = vpop.eup %3412 }
 0x5be   :  { %v3415_v47 = vpop.eup %3414  ;;  %3420 = vrcp.f32 %v1948_v11  ;;  %v1954_v45 = vadd.f32 1.0, %v3413_v48  ;;  %v4982_v48 = vld [vmem:[#allocation12 + $0xe0] ss:$16 sps:$4 sm:$0xff]  }
 0x5bf   :  { %v3417_v54 = vpop.eup %3416  ;;  %3422 = vtanh.f32 %v1943_v7 }
 0x5c0   :  { %3424 = vrcp.f32 %v1954_v45  ;;  %v1858_v41 = vmul.f32 %v3417_v54, %v3415_v47  ;;  %v3419_v36 = vpop.eup %3418  ;;  %v4988_v47 = vld [vmem:[#allocation12 + $0xc4] ss:$16 sps:$4 sm:$0xff]   ;;  %v4991_v45 = vld [vmem:[#allocation12 + $0xcc] ss:$16 sps:$4 sm:$0xff]   ;;  %v4996_v54 = vld [vmem:[#allocation12 + $0xc0] ss:$16 sps:$4 sm:$0xff]  }
 0x5c1   :  { %v1961_v56 = vadd.f32 1.0, %v3419_v36  ;;  %v5005_v36 = vld [vmem:[#allocation12 + $0xac] ss:$16 sps:$4 sm:$0xff]  }
 0x5c2   :  { %v1973_v50 = vpack.c.bf16 %v1858_v41, %v1858_v41  ;;  %v4999_v41 = vld [vmem:[#allocation12 + $0xc8] ss:$16 sps:$4 sm:$0xff]  }
 0x5c3   :  { %3426 = vrcp.f32 %v1961_v56  ;;  %v5020_v56 = vld [vmem:[#allocation12 + $0x80] ss:$16 sps:$4 sm:$0xff]  }
 0x5c4   :  { %2006 = vmatprep.mubr.bf16.mxu0 %v1973_v50  ;;  %2047 = vmatprep.mubr.bf16.mxu1 %v1973_v50  ;;  %v5002_v50 = vld [vmem:[#allocation12 + $0xa4] ss:$16 sps:$4 sm:$0xff]  }
 0x5cb   :  { %v3421_v10 = vpop.eup %3420 }
 0x5cc   :  { %v3423_v46 = vpop.eup %3422 }
 0x5cd   :  { %v3425_v26 = vpop.eup %3424  ;;  %v1968_v40 = vmul.f32 %v3423_v46, %v3421_v10  ;;  %v5008_v10 = vld [vmem:[#allocation12 + $0xa0] ss:$16 sps:$4 sm:$0xff]   ;;  %v5011_v46 = vld [vmem:[#allocation12 + $0xa8] ss:$16 sps:$4 sm:$0xff]  }
 0x5ce   :  { %v1967_v52 = vmul.f32 %v3425_v26, %v1965_v53  ;;  %v5014_v53 = vld [vmem:[#allocation12 + $0x84] ss:$16 sps:$4 sm:$0xff]   ;;  %v5017_v26 = vld [vmem:[#allocation12 + $0x8c] ss:$16 sps:$4 sm:$0xff]  }
 0x5d0   :  { %v4979_v44 = vadd.f32 %v1968_v40, %v1967_v52  ;;  %v3427_v33 = vpop.eup %3426  ;;  %v5023_v40 = vld [vmem:[#allocation12 + $0x88] ss:$16 sps:$4 sm:$0xff]   ;;  %v5026_v52 = vld [vmem:[#allocation12 + $0x64] ss:$16 sps:$4 sm:$0xff]  }
 0x5d1   :  { %6158 = vst [vmem:[#allocation31_spill] sm:$0xff] %v5026_v52 }
 0x5d2   :  { %3428 = vtanh.f32 %v4979_v44 }
 0x5df   :  { %v3429_v49 = vpop.eup %3428 }
 0x5e0   :  { %v1971_v7 = vmul.f32 %v3429_v49, %v3427_v33  ;;  %v5030_v33 = vld [vmem:[#allocation12 + $0x60] ss:$16 sps:$4 sm:$0xff]   ;;  %v5034_v49 = vld [vmem:[#allocation12 + $0x44] ss:$16 sps:$4 sm:$0xff]  }
 0x5e2   :  { %v1972_v11 = vpack.c.bf16 %v1971_v7, %v1971_v7  ;;  %v5038_v7 = vld [vmem:[#allocation12 + $0x40] ss:$16 sps:$4 sm:$0xff]  }
 0x5e4   :  { %2007 = vmatmul.mubr.bf16.vlgmr.msra.gmra.mxu0 %v1972_v11  ;;  %2048 = vmatmul.mubr.bf16.vlgmr.msra.gmra.mxu1 %v1972_v11 }
 0x5e5   :  { %2081 = vmatpush1.bf16.msra.mxu0 %v4982_v48  ;;  %2122 = vmatpush1.bf16.msra.mxu1 %v4985_v55 }
 0x5e6   :  { %2082 = vmatprep.subr.bf16.mxu0 %v4988_v47  ;;  %2123 = vmatprep.subr.bf16.mxu1 %v4991_v45 }
 0x5e7   :  { %2112 = vmatprep.mubr.bf16.mxu0 %v5924_v6  ;;  %2153 = vmatprep.mubr.bf16.mxu1 %v5924_v6 }
 0x5e9   :  { %2083 = vmatpush1.bf16.msra.mxu0 %v4996_v54  ;;  %2124 = vmatpush1.bf16.msra.mxu1 %v4999_v41 }
 0x5ea   :  { %2084 = vmatprep.subr.bf16.mxu0 %v5002_v50  ;;  %2125 = vmatprep.subr.bf16.mxu1 %v5005_v36 }
 0x5ed   :  { %2085 = vmatpush1.bf16.msra.mxu0 %v5008_v10  ;;  %2126 = vmatpush1.bf16.msra.mxu1 %v5011_v46 }
 0x5ee   :  { %2086 = vmatprep.subr.bf16.mxu0 %v5014_v53  ;;  %2127 = vmatprep.subr.bf16.mxu1 %v5017_v26 }
 0x5f1   :  { %2087 = vmatpush1.bf16.msra.mxu0 %v5020_v56  ;;  %2128 = vmatpush1.bf16.msra.mxu1 %v5023_v40 }
 0x5f2   :  { %2088 = vmatprep.subr.bf16.mxu0 %v5026_v52  ;;  %2129 = vmatprep.subr.bf16.mxu1 %v4627_v1  ;;  %v5042_v52 = vld [vmem:[#allocation12 + $0x24] ss:$16 sps:$4 sm:$0xff]   ;;  %v5046_v1 = vld [vmem:[#allocation12 + $0x20] ss:$16 sps:$4 sm:$0xff]  }
 0x5f5   :  { %2089 = vmatpush1.bf16.msra.mxu0 %v5030_v33  ;;  %2130 = vmatpush1.bf16.msra.mxu1 %v4631_v15  ;;  %v5050_v15 = vld [vmem:[#allocation12 + $0x4] ss:$16 sps:$4 sm:$0xff]  }
 0x5f6   :  { %2090 = vmatprep.subr.bf16.mxu0 %v5034_v49  ;;  %2131 = vmatprep.subr.bf16.mxu1 %v4635_v19  ;;  %v5054_v19 = vld [vmem:[#allocation12] ss:$16 sps:$4 sm:$0xff]  }
 0x5f9   :  { %2091 = vmatpush1.bf16.msra.mxu0 %v5038_v7  ;;  %2132 = vmatpush1.bf16.msra.mxu1 %v4639_v20  ;;  %v6159_v20 = vld [vmem:[#allocation54_spill] sm:$0xff] }
 0x5fa   :  { %2092 = vmatprep.subr.bf16.mxu0 %v5042_v52  ;;  %2133 = vmatprep.subr.bf16.mxu1 %v4643_v21  ;;  %v6160_v21 = vld [vmem:[#allocation55_spill] sm:$0xff] }
 0x5fd   :  { %2093 = vmatpush1.bf16.msra.mxu0 %v5046_v1  ;;  %2134 = vmatpush1.bf16.msra.mxu1 %v4647_v31  ;;  %v6161_v31 = vld [vmem:[#allocation56_spill] sm:$0xff] }
 0x5fe   :  { %2094 = vmatprep.subr.bf16.mxu0 %v5050_v15  ;;  %2135 = vmatprep.subr.bf16.mxu1 %v4651_v22  ;;  %v6162_v22 = vld [vmem:[#allocation57_spill] sm:$0xff] }
 0x601   :  { %2095 = vmatpush1.bf16.msra.mxu0 %v5054_v19  ;;  %2136 = vmatpush1.bf16.msra.mxu1 %v4655_v23  ;;  %v6163_v23 = vld [vmem:[#allocation58_spill] sm:$0xff] }
 0x602   :  { %2216 = vmatprep.subr.bf16.mxu0 %v4658_v24  ;;  %2257 = vmatprep.subr.bf16.mxu1 %v4661_v25  ;;  %v6164_v24 = vld [vmem:[#allocation59_spill] sm:$0xff]  ;;  %v6165_v25 = vld [vmem:[#allocation60_spill] sm:$0xff] }
 0x604   :  { %2113 = vmatmul.mubr.bf16.vlgmr.msra.gmra.mxu0 %v1972_v11  ;;  %2154 = vmatmul.mubr.bf16.vlgmr.msra.gmra.mxu1 %v1972_v11 }
 0x605   :  { %2217 = vmatpush1.bf16.msra.mxu0 %v4664_v27  ;;  %2258 = vmatpush1.bf16.msra.mxu1 %v4667_v28  ;;  %v6166_v27 = vld [vmem:[#allocation61_spill] sm:$0xff]  ;;  %v6167_v28 = vld [vmem:[#allocation62_spill] sm:$0xff] }
 0x606   :  { %2218 = vmatprep.subr.bf16.mxu0 %v4670_v29  ;;  %2259 = vmatprep.subr.bf16.mxu1 %v4673_v61  ;;  %v6168_v29 = vld [vmem:[#allocation63_spill] sm:$0xff]  ;;  %v6169_v61 = vld [vmem:[#allocation64_spill] sm:$0xff] }
 0x609   :  { %2219 = vmatpush1.bf16.msra.mxu0 %v6090_v62  ;;  %2260 = vmatpush1.bf16.msra.mxu1 %v6091_v0  ;;  %v6170_v62 = vld [vmem:[#allocation65_spill] sm:$0xff]  ;;  %v6171_v0 = vld [vmem:[#allocation66_spill] sm:$0xff] }
 0x60a   :  { %2220 = vmatprep.subr.bf16.mxu0 %v6092_v32  ;;  %2261 = vmatprep.subr.bf16.mxu1 %v6093_v4  ;;  %v6172_v32 = vld [vmem:[#allocation67_spill] sm:$0xff]  ;;  %v6173_v4 = vld [vmem:[#allocation68_spill] sm:$0xff] }
 0x60d   :  { %2221 = vmatpush1.bf16.msra.mxu0 %v6094_v16  ;;  %2262 = vmatpush1.bf16.msra.mxu1 %v6095_v12  ;;  %v6174_v16 = vld [vmem:[#allocation69_spill] sm:$0xff]  ;;  %v6175_v12 = vld [vmem:[#allocation70_spill] sm:$0xff] }
 0x60e   :  { %2222 = vmatprep.subr.bf16.mxu0 %v6096_v39  ;;  %2263 = vmatprep.subr.bf16.mxu1 %v6097_v14  ;;  %v6176_v39 = vld [vmem:[#allocation71_spill] sm:$0xff]  ;;  %v6177_v14 = vld [vmem:[#allocation72_spill] sm:$0xff] }
 0x611   :  { %2223 = vmatpush1.bf16.msra.mxu0 %v6098_v13  ;;  %2264 = vmatpush1.bf16.msra.mxu1 %v6099_v30  ;;  %v6178_v13 = vld [vmem:[#allocation73_spill] sm:$0xff]  ;;  %v6179_v30 = vld [vmem:[#allocation74_spill] sm:$0xff] }
 0x612   :  { %2224 = vmatprep.subr.bf16.mxu0 %v6100_v38  ;;  %2265 = vmatprep.subr.bf16.mxu1 %v6101_v8  ;;  %v6180_v38 = vld [vmem:[#allocation75_spill] sm:$0xff]  ;;  %v6181_v8 = vld [vmem:[#allocation76_spill] sm:$0xff] }
 0x615   :  { %2225 = vmatpush1.bf16.msra.mxu0 %v6102_v57  ;;  %2266 = vmatpush1.bf16.msra.mxu1 %v6103_v2  ;;  %v6182_v57 = vld [vmem:[#allocation77_spill] sm:$0xff]  ;;  %v6183_v2 = vld [vmem:[#allocation83_spill] sm:$0xff] }
 0x616   :  { %2226 = vmatprep.subr.bf16.mxu0 %v6104_v58  ;;  %2267 = vmatprep.subr.bf16.mxu1 %v6105_v60  ;;  %v6184_v58 = vld [vmem:[#allocation84_spill] sm:$0xff]  ;;  %v6185_v60 = vld [vmem:[#allocation85_spill] sm:$0xff] }
 0x619   :  { %2227 = vmatpush1.bf16.msra.mxu0 %v6106_v59  ;;  %2268 = vmatpush1.bf16.msra.mxu1 %v6107_v42  ;;  %v6186_v59 = vld [vmem:[#allocation86_spill] sm:$0xff]  ;;  %v6187_v42 = vld [vmem:[#allocation87_spill] sm:$0xff] }
 0x61a   :  { %2228 = vmatprep.subr.bf16.mxu0 %v6108_v63  ;;  %2269 = vmatprep.subr.bf16.mxu1 %v6109_v34  ;;  %v6188_v63 = vld [vmem:[#allocation88_spill] sm:$0xff]  ;;  %v6189_v34 = vld [vmem:[#allocation89_spill] sm:$0xff] }
 0x61d   :  { %2229 = vmatpush1.bf16.msra.mxu0 %v6110_v35  ;;  %2270 = vmatpush1.bf16.msra.mxu1 %v6111_v37  ;;  %v6190_v35 = vld [vmem:[#allocation90_spill] sm:$0xff]  ;;  %v5122_v37 = vld [vmem:[#allocation12 + $0xe4] ss:$16 sps:$4 sm:$0xff]  }
 0x61e   :  { %2230 = vmatprep.subr.bf16.mxu0 %v6112_v51  ;;  %2271 = vmatprep.subr.bf16.mxu1 %v6113_v17  ;;  %v5125_v51 = vld [vmem:[#allocation12 + $0xec] ss:$16 sps:$4 sm:$0xff]  }
 0x621   :  { %2231 = vmatpush1.bf16.msra.mxu0 %v6114_v9  ;;  %2272 = vmatpush1.bf16.msra.mxu1 %v6115_v5  ;;  %v6191_v5 = vld [vmem:[#allocation25_spill] sm:$0xff] }
 0x622   :  { %2232 = vmatprep.subr.bf16.mxu0 %v6159_v20  ;;  %2273 = vmatprep.subr.bf16.mxu1 %v6160_v21 }
 0x625   :  { %2233 = vmatpush2.bf16.msra.mxu0 %v6161_v31  ;;  %2274 = vmatpush2.bf16.msra.mxu1 %v6162_v22  ;;  %v6192_v22 = vld [vmem:[#allocation26_spill] sm:$0xff] }
 0x626   :  { %2234 = vmatprep.subr.bf16.mxu0 %v6163_v23  ;;  %2275 = vmatprep.subr.bf16.mxu1 %v6164_v24 }
 0x629   :  { %2235 = vmatpush2.bf16.msra.mxu0 %v6165_v25  ;;  %2276 = vmatpush2.bf16.msra.mxu1 %v6166_v27 }
 0x62a   :  { %2236 = vmatprep.subr.bf16.mxu0 %v6167_v28  ;;  %2277 = vmatprep.subr.bf16.mxu1 %v6168_v29 }
 0x62d   :  { %2237 = vmatpush2.bf16.msra.mxu0 %v6169_v61  ;;  %2278 = vmatpush2.bf16.msra.mxu1 %v6170_v62  ;;  %v6193_v61 = vld [vmem:[#allocation27_spill] sm:$0xff] }
 0x62e   :  { %2238 = vmatprep.subr.bf16.mxu0 %v6171_v0  ;;  %2279 = vmatprep.subr.bf16.mxu1 %v6172_v32  ;;  %v6194_v0 = vld [vmem:[#allocation28_spill] sm:$0xff] }
 0x631   :  { %2239 = vmatpush2.bf16.msra.mxu0 %v6173_v4  ;;  %2280 = vmatpush2.bf16.msra.mxu1 %v6174_v16 }
 0x632   :  { %2240 = vmatprep.subr.bf16.mxu0 %v6175_v12  ;;  %2281 = vmatprep.subr.bf16.mxu1 %v6176_v39 }
 0x635   :  { %2241 = vmatpush2.bf16.msra.mxu0 %v6177_v14  ;;  %2282 = vmatpush2.bf16.msra.mxu1 %v6178_v13 }
 0x636   :  { %2242 = vmatprep.subr.bf16.mxu0 %v6179_v30  ;;  %2283 = vmatprep.subr.bf16.mxu1 %v6180_v38 }
 0x639   :  { %2243 = vmatpush2.bf16.msra.mxu0 %v6181_v8  ;;  %2284 = vmatpush2.bf16.msra.mxu1 %v6182_v57 }
 0x63a   :  { %2244 = vmatprep.subr.bf16.mxu0 %v6183_v2  ;;  %2285 = vmatprep.subr.bf16.mxu1 %v6184_v58 }
 0x63d   :  { %2245 = vmatpush2.bf16.msra.mxu0 %v6185_v60  ;;  %2286 = vmatpush2.bf16.msra.mxu1 %v6186_v59  ;;  %v6195_v59 = vld [vmem:[#allocation79_spill] sm:$0xff] }
 0x63e   :  { %2246 = vmatprep.subr.bf16.mxu0 %v6187_v42  ;;  %2287 = vmatprep.subr.bf16.mxu1 %v6188_v63 }
 0x641   :  { %2247 = vmatpush2.bf16.msra.mxu0 %v6189_v34  ;;  %2288 = vmatpush2.bf16.msra.mxu1 %v6190_v35 }
 0x642   :  { %2322 = vmatprep.subr.bf16.mxu0 %v5122_v37  ;;  %2363 = vmatprep.subr.bf16.mxu1 %v5125_v51 }
 0x6a4   :  { %v2008_v17 = vpop.f32.mrf.mxu0  ;;  %v2049_v9 = vpop.f32.mrf.mxu1 }
 0x6a5   :  { %v2009_v11 = vadd.f32 %v2008_v17, %v6191_v5  ;;  %v2050_v32 = vadd.f32 %v2049_v9, %v6194_v0 }
 0x6a6   :  { %v2010_v20 = vpop.f32.mrf.mxu0  ;;  %v2051_v21 = vpop.f32.mrf.mxu1 }
 0x6a7   :  { %v3052_v31 = vmul.f32 -1.442695, %v2009_v11  ;;  %v2011_v23 = vadd.f32 %v2010_v20, %v6192_v22  ;;  %v2052_v62 = vadd.f32 %v2051_v21, %v6193_v61  ;;  %v6196_v21 = vld [vmem:[#allocation80_spill] sm:$0xff] }
 0x6a8   :  { %v2012_v24 = vpop.f32.mrf.mxu0  ;;  %v2053_v25 = vpop.f32.mrf.mxu1 }
 0x6a9   :  { %3430 = vpow2.f32 %v3052_v31  ;;  %v3053_v27 = vmul.f32 -1.442695, %v2011_v23  ;;  %v3054_v16 = vmul.f32 -1.442695, %v2052_v62 }
 0x6aa   :  { %v2013_v28 = vpop.f32.mrf.mxu0  ;;  %v2054_v29 = vpop.f32.mrf.mxu1 }
 0x6ab   :  { %3432 = vpow2.f32 %v3053_v27 }
 0x6ac   :  { %3434 = vtanh.f32 %v2050_v32 }
 0x6b6   :  { %v3431_v4 = vpop.eup %3430 }
 0x6b7   :  { %v2059_v12 = vadd.f32 1.0, %v3431_v4 }
 0x6b8   :  { %v3433_v39 = vpop.eup %3432 }
 0x6b9   :  { %3436 = vrcp.f32 %v2059_v12  ;;  %v2065_v14 = vadd.f32 1.0, %v3433_v39  ;;  %v3435_v38 = vpop.eup %3434 }
 0x6ba   :  { %3438 = vpow2.f32 %v3054_v16 }
 0x6bb   :  { %3440 = vrcp.f32 %v2065_v14 }
 0x6c4   :  { %v2114_v13 = vpop.f32.mrf.mxu0  ;;  %v2155_v30 = vpop.f32.mrf.mxu1 }
 0x6c5   :  { %v2166_v8 = vrot.slane %v2114_v13, 6  ;;  %v2168_v32 = vrot.slane %v2155_v30, 6 }
 0x6c6   :  { %v3437_v57 = vpop.eup %3436  ;;  %v2116_v2 = vpop.f32.mrf.mxu0 }
 0x6c7   :  { %v2157_v58 = vpop.f32.mrf.mxu1  ;;  %v3439_v60 = vpop.eup %3438  ;;  %v2174_v42 = vadd.f32 %v2166_v8, %v6195_v59  ;;  %v2167_v63 = vrot.slane %v2116_v2, 6  ;;  %v2076_v9 = vmul.f32 %v3437_v57, %v3435_v38  ;;  %v2176_v16 = vadd.f32 %v2168_v32, %v6157_v43  ;;  %v5173_v32 = vld [vmem:[#allocation12 + $0x48] ss:$16 sps:$4 sm:$0xff]  }
 0x6c8   :  { %v3441_v34 = vpop.eup %3440  ;;  %v2118_v35 = vpop.f32.mrf.mxu0  ;;  %v2072_v23 = vadd.f32 1.0, %v3439_v60  ;;  %v2169_v29 = vrot.slane %v2157_v58, 6 }
 0x6c9   :  { %v2159_v17 = vpop.f32.mrf.mxu1  ;;  %v2075_v11 = vmul.f32 %v3441_v34, %v4973_v3  ;;  %v3055_v20 = vmul.f32 -1.442695, %v2174_v42  ;;  %v2175_v31 = vadd.f32 %v2167_v63, %v6196_v21  ;;  %v2198_v63 = vrot.slane %v4979_v44, 6  ;;  %v6197_v44 = vld [vmem:[#allocation31_spill] sm:$0xff] }
 0x6ca   :  { %v2119_v24 = vpop.f32.mrf.mxu0  ;;  %v2177_v62 = vadd.f32 %v2169_v29, %v6156_v18  ;;  %v5165_v29 = vld [vmem:[#allocation12 + $0x68] ss:$16 sps:$4 sm:$0xff]  }
 0x6cb   :  { %v2160_v25 = vpop.f32.mrf.mxu1  ;;  %3442 = vpow2.f32 %v3055_v20  ;;  %v3056_v27 = vmul.f32 -1.442695, %v2175_v31  ;;  %v5135_v28 = vadd.f32 %v2076_v9, %v2075_v11 }
 0x6cc   :  { %v3057_v4 = vmul.f32 -1.442695, %v2177_v62  ;;  %v5169_v62 = vld [vmem:[#allocation12 + $0x4c] ss:$16 sps:$4 sm:$0xff]  }
 0x6cd   :  { %3444 = vpow2.f32 %v3056_v27  ;;  %v5161_v27 = vld [vmem:[#allocation12 + $0x6c] ss:$16 sps:$4 sm:$0xff]  }
 0x6ce   :  { %3446 = vrcp.f32 %v2072_v23 }
 0x6cf   :  { %3448 = vtanh.f32 %v5135_v28 }
 0x6d0   :  { %3450 = vpow2.f32 %v3057_v4  ;;  %v5177_v4 = vld [vmem:[#allocation12 + $0x2c] ss:$16 sps:$4 sm:$0xff]  }
 0x6d8   :  { %v3443_v3 = vpop.eup %3442 }
 0x6d9   :  { %v2181_v12 = vadd.f32 1.0, %v3443_v3  ;;  %v5181_v3 = vld [vmem:[#allocation12 + $0x28] ss:$16 sps:$4 sm:$0xff]  }
 0x6da   :  { %v3445_v39 = vpop.eup %3444 }
 0x6db   :  { %v3447_v14 = vpop.eup %3446  ;;  %3452 = vrcp.f32 %v2181_v12  ;;  %v2187_v13 = vadd.f32 1.0, %v3445_v39  ;;  %v5189_v12 = vld [vmem:[#allocation12 + $0x8] ss:$16 sps:$4 sm:$0xff]   ;;  %v5192_v39 = vld [vmem:[#allocation14 + $0xe4] ss:$16 sps:$4 sm:$0xff]  }
 0x6dc   :  { %v3449_v38 = vpop.eup %3448  ;;  %3454 = vtanh.f32 %v2176_v16  ;;  %v5185_v16 = vld [vmem:[#allocation12 + $0xc] ss:$16 sps:$4 sm:$0xff]  }
 0x6dd   :  { %3456 = vrcp.f32 %v2187_v13  ;;  %v2079_v8 = vmul.f32 %v3449_v38, %v3447_v14  ;;  %v3451_v30 = vpop.eup %3450  ;;  %v5195_v14 = vld [vmem:[#allocation14 + $0xec] ss:$16 sps:$4 sm:$0xff]   ;;  %v5198_v13 = vld [vmem:[#allocation14 + $0xe0] ss:$16 sps:$4 sm:$0xff]   ;;  %v5201_v38 = vld [vmem:[#allocation14 + $0xe8] ss:$16 sps:$4 sm:$0xff]  }
 0x6de   :  { %v2194_v35 = vadd.f32 1.0, %v3451_v30  ;;  %v5216_v30 = vld [vmem:[#allocation14 + $0xa4] ss:$16 sps:$4 sm:$0xff]  }
 0x6df   :  { %v2206_v57 = vrot.slane %v2079_v8, 6  ;;  %v5204_v8 = vld [vmem:[#allocation14 + $0xc4] ss:$16 sps:$4 sm:$0xff]   ;;  %6200 = vst [vmem:[#allocation34_spill] sm:$0xff] %v5216_v30 }
 0x6e0   :  { %3458 = vrcp.f32 %v2194_v35  ;;  %v5231_v35 = vld [vmem:[#allocation14 + $0x8c] ss:$16 sps:$4 sm:$0xff]  }
 0x6e1   :  { %v2209_v2 = vpack.c.bf16 %v2206_v57, %v2206_v57  ;;  %v5207_v57 = vld [vmem:[#allocation14 + $0xcc] ss:$16 sps:$4 sm:$0xff]   ;;  %6205 = vst [vmem:[#allocation39_spill] sm:$0xff] %v5231_v35 }
 0x6e3   :  { %v2213_v58 = vrot.slane %v2209_v2, 1  ;;  %v5210_v2 = vld [vmem:[#allocation14 + $0xc0] ss:$16 sps:$4 sm:$0xff]  }
 0x6e4   :  { %6198 = vst [vmem:[#allocation32_spill] sm:$0xff] %v5210_v2 }
 0x6e5   :  { %2248 = vmatprep.mubr.bf16.mxu0 %v2213_v58  ;;  %2289 = vmatprep.mubr.bf16.mxu1 %v2213_v58  ;;  %v5213_v58 = vld [vmem:[#allocation14 + $0xc8] ss:$16 sps:$4 sm:$0xff]  }
 0x6e6   :  { %6199 = vst [vmem:[#allocation33_spill] sm:$0xff] %v5213_v58 }
 0x6e8   :  { %v3453_v60 = vpop.eup %3452 }
 0x6e9   :  { %v3455_v42 = vpop.eup %3454 }
 0x6ea   :  { %v3457_v34 = vpop.eup %3456  ;;  %v2201_v17 = vmul.f32 %v3455_v42, %v3453_v60  ;;  %v5219_v60 = vld [vmem:[#allocation14 + $0xac] ss:$16 sps:$4 sm:$0xff]   ;;  %v5222_v42 = vld [vmem:[#allocation14 + $0xa0] ss:$16 sps:$4 sm:$0xff]  }
 0x6eb   :  { %v2200_v9 = vmul.f32 %v3457_v34, %v2198_v63  ;;  %6201 = vst [vmem:[#allocation35_spill] sm:$0xff] %v5219_v60  ;;  %6202 = vst [vmem:[#allocation36_spill] sm:$0xff] %v5222_v42  ;;  %v5225_v63 = vld [vmem:[#allocation14 + $0xa8] ss:$16 sps:$4 sm:$0xff]   ;;  %v5228_v34 = vld [vmem:[#allocation14 + $0x84] ss:$16 sps:$4 sm:$0xff]  }
 0x6ec   :  { %6203 = vst [vmem:[#allocation37_spill] sm:$0xff] %v5225_v63  ;;  %6204 = vst [vmem:[#allocation38_spill] sm:$0xff] %v5228_v34 }
 0x6ed   :  { %v5141_v11 = vadd.f32 %v2201_v17, %v2200_v9  ;;  %v3459_v20 = vpop.eup %3458  ;;  %v5234_v17 = vld [vmem:[#allocation14 + $0x80] ss:$16 sps:$4 sm:$0xff]   ;;  %v5237_v9 = vld [vmem:[#allocation14 + $0x88] ss:$16 sps:$4 sm:$0xff]  }
 0x6ee   :  { %6206 = vst [vmem:[#allocation40_spill] sm:$0xff] %v5234_v17  ;;  %6207 = vst [vmem:[#allocation23_spill] sm:$0xff] %v5237_v9 }
 0x6ef   :  { %3460 = vtanh.f32 %v5141_v11 }
 0x6fc   :  { %v3461_v31 = vpop.eup %3460 }
 0x6fd   :  { %v2204_v23 = vmul.f32 %v3461_v31, %v3459_v20  ;;  %v5240_v20 = vld [vmem:[#allocation14 + $0x64] ss:$16 sps:$4 sm:$0xff]   ;;  %v5243_v31 = vld [vmem:[#allocation14 + $0x6c] ss:$16 sps:$4 sm:$0xff]  }
 0x6fe   :  { %6208 = vst [vmem:[#allocation24_spill] sm:$0xff] %v5240_v20  ;;  %6209 = vst [vmem:[#allocation78_spill] sm:$0xff] %v5243_v31 }
 0x6ff   :  { %v2208_v24 = vpack.c.bf16 %v2204_v23, %v2204_v23  ;;  %v5246_v23 = vld [vmem:[#allocation14 + $0x60] ss:$16 sps:$4 sm:$0xff]  }
 0x700   :  { %6210 = vst [vmem:[#allocation41_spill] sm:$0xff] %v5246_v23 }
 0x701   :  { %v2212_v25 = vrot.slane %v2208_v24, 1  ;;  %v5249_v24 = vld [vmem:[#allocation14 + $0x68] ss:$16 sps:$4 sm:$0xff]  }
 0x702   :  { %6211 = vst [vmem:[#allocation42_spill] sm:$0xff] %v5249_v24 }
 0x703   :  { %2249 = vmatmul.mubr.bf16.vlgmr.msra.gmra.mxu0 %v2212_v25  ;;  %2290 = vmatmul.mubr.bf16.vlgmr.msra.gmra.mxu1 %v2212_v25 }
 0x704   :  { %2323 = vmatpush1.bf16.msra.mxu0 %v4982_v48  ;;  %2364 = vmatpush1.bf16.msra.mxu1 %v4985_v55 }
 0x705   :  { %2324 = vmatprep.subr.bf16.mxu0 %v4988_v47  ;;  %2365 = vmatprep.subr.bf16.mxu1 %v4991_v45 }
 0x706   :  { %2354 = vmatprep.mubr.bf16.mxu0 %v5924_v6  ;;  %2395 = vmatprep.mubr.bf16.mxu1 %v5924_v6 }
 0x708   :  { %2325 = vmatpush1.bf16.msra.mxu0 %v4996_v54  ;;  %2366 = vmatpush1.bf16.msra.mxu1 %v4999_v41 }
 0x709   :  { %2326 = vmatprep.subr.bf16.mxu0 %v5002_v50  ;;  %2367 = vmatprep.subr.bf16.mxu1 %v5005_v36 }
 0x70c   :  { %2327 = vmatpush1.bf16.msra.mxu0 %v5008_v10  ;;  %2368 = vmatpush1.bf16.msra.mxu1 %v5011_v46 }
 0x70d   :  { %2328 = vmatprep.subr.bf16.mxu0 %v5014_v53  ;;  %2369 = vmatprep.subr.bf16.mxu1 %v5017_v26 }
 0x710   :  { %2329 = vmatpush1.bf16.msra.mxu0 %v5020_v56  ;;  %2370 = vmatpush1.bf16.msra.mxu1 %v5023_v40 }
 0x711   :  { %2330 = vmatprep.subr.bf16.mxu0 %v6197_v44  ;;  %2371 = vmatprep.subr.bf16.mxu1 %v5161_v27 }
 0x714   :  { %2331 = vmatpush1.bf16.msra.mxu0 %v5030_v33  ;;  %2372 = vmatpush1.bf16.msra.mxu1 %v5165_v29 }
 0x715   :  { %2332 = vmatprep.subr.bf16.mxu0 %v5034_v49  ;;  %2373 = vmatprep.subr.bf16.mxu1 %v5169_v62 }
 0x718   :  { %2333 = vmatpush1.bf16.msra.mxu0 %v5038_v7  ;;  %2374 = vmatpush1.bf16.msra.mxu1 %v5173_v32 }
 0x719   :  { %2334 = vmatprep.subr.bf16.mxu0 %v5042_v52  ;;  %2375 = vmatprep.subr.bf16.mxu1 %v5177_v4 }
 0x71c   :  { %2335 = vmatpush1.bf16.msra.mxu0 %v5046_v1  ;;  %2376 = vmatpush1.bf16.msra.mxu1 %v5181_v3 }
 0x71d   :  { %2336 = vmatprep.subr.bf16.mxu0 %v5050_v15  ;;  %2377 = vmatprep.subr.bf16.mxu1 %v5185_v16 }
 0x720   :  { %2337 = vmatpush1.bf16.msra.mxu0 %v5054_v19  ;;  %2378 = vmatpush1.bf16.msra.mxu1 %v5189_v12 }
 0x721   :  { %2458 = vmatprep.subr.bf16.mxu0 %v5192_v39  ;;  %2499 = vmatprep.subr.bf16.mxu1 %v5195_v14 }
 0x723   :  { %2355 = vmatmul.mubr.bf16.vlgmr.msra.gmra.mxu0 %v2212_v25  ;;  %2396 = vmatmul.mubr.bf16.vlgmr.msra.gmra.mxu1 %v2212_v25  ;;  %v5252_v25 = vld [vmem:[#allocation14 + $0x44] ss:$16 sps:$4 sm:$0xff]  }
 0x724   :  { %2459 = vmatpush1.bf16.msra.mxu0 %v5198_v13  ;;  %2500 = vmatpush1.bf16.msra.mxu1 %v5201_v38  ;;  %6212 = vst [vmem:[#allocation43_spill] sm:$0xff] %v5252_v25 }
 0x725   :  { %2460 = vmatprep.subr.bf16.mxu0 %v5204_v8  ;;  %2501 = vmatprep.subr.bf16.mxu1 %v5207_v57 }
 0x728   :  { %2461 = vmatpush1.bf16.msra.mxu0 %v5210_v2  ;;  %2502 = vmatpush1.bf16.msra.mxu1 %v5213_v58 }
 0x729   :  { %2462 = vmatprep.subr.bf16.mxu0 %v5216_v30  ;;  %2503 = vmatprep.subr.bf16.mxu1 %v5219_v60 }
 0x72c   :  { %2463 = vmatpush1.bf16.msra.mxu0 %v5222_v42  ;;  %2504 = vmatpush1.bf16.msra.mxu1 %v5225_v63 }
 0x72d   :  { %2464 = vmatprep.subr.bf16.mxu0 %v5228_v34  ;;  %2505 = vmatprep.subr.bf16.mxu1 %v5231_v35 }
 0x730   :  { %2465 = vmatpush1.bf16.msra.mxu0 %v5234_v17  ;;  %2506 = vmatpush1.bf16.msra.mxu1 %v5237_v9  ;;  %v5255_v9 = vld [vmem:[#allocation14 + $0x4c] ss:$16 sps:$4 sm:$0xff]  }
 0x731   :  { %2466 = vmatprep.subr.bf16.mxu0 %v5240_v20  ;;  %2507 = vmatprep.subr.bf16.mxu1 %v5243_v31  ;;  %6213 = vst [vmem:[#allocation44_spill] sm:$0xff] %v5255_v9  ;;  %v5258_v20 = vld [vmem:[#allocation14 + $0x40] ss:$16 sps:$4 sm:$0xff]   ;;  %v5261_v31 = vld [vmem:[#allocation14 + $0x48] ss:$16 sps:$4 sm:$0xff]  }
 0x732   :  { %6214 = vst [vmem:[#allocation45_spill] sm:$0xff] %v5258_v20  ;;  %6215 = vst [vmem:[#allocation46_spill] sm:$0xff] %v5261_v31 }
 0x734   :  { %2467 = vmatpush1.bf16.msra.mxu0 %v5246_v23  ;;  %2508 = vmatpush1.bf16.msra.mxu1 %v5249_v24  ;;  %v5264_v23 = vld [vmem:[#allocation14 + $0x24] ss:$16 sps:$4 sm:$0xff]   ;;  %v5267_v24 = vld [vmem:[#allocation14 + $0x2c] ss:$16 sps:$4 sm:$0xff]  }
 0x735   :  { %2468 = vmatprep.subr.bf16.mxu0 %v5252_v25  ;;  %2509 = vmatprep.subr.bf16.mxu1 %v5255_v9  ;;  %6216 = vst [vmem:[#allocation47_spill] sm:$0xff] %v5264_v23  ;;  %6217 = vst [vmem:[#allocation48_spill] sm:$0xff] %v5267_v24  ;;  %v5270_v25 = vld [vmem:[#allocation14 + $0x20] ss:$16 sps:$4 sm:$0xff]   ;;  %v5273_v9 = vld [vmem:[#allocation14 + $0x28] ss:$16 sps:$4 sm:$0xff]  }
 0x736   :  { %6218 = vst [vmem:[#allocation49_spill] sm:$0xff] %v5270_v25  ;;  %6219 = vst [vmem:[#allocation50_spill] sm:$0xff] %v5273_v9 }
 0x738   :  { %2469 = vmatpush1.bf16.msra.mxu0 %v5258_v20  ;;  %2510 = vmatpush1.bf16.msra.mxu1 %v5261_v31  ;;  %v5276_v20 = vld [vmem:[#allocation14 + $0x4] ss:$16 sps:$4 sm:$0xff]   ;;  %v5279_v31 = vld [vmem:[#allocation14 + $0xc] ss:$16 sps:$4 sm:$0xff]  }
 0x739   :  { %2470 = vmatprep.subr.bf16.mxu0 %v5264_v23  ;;  %2511 = vmatprep.subr.bf16.mxu1 %v5267_v24  ;;  %6220 = vst [vmem:[#allocation51_spill] sm:$0xff] %v5276_v20  ;;  %6221 = vst [vmem:[#allocation52_spill] sm:$0xff] %v5279_v31  ;;  %v5282_v23 = vld [vmem:[#allocation14] ss:$16 sps:$4 sm:$0xff]   ;;  %v5285_v24 = vld [vmem:[#allocation14 + $0x8] ss:$16 sps:$4 sm:$0xff]  }
 0x73a   :  { %6222 = vst [vmem:[#allocation53_spill] sm:$0xff] %v5282_v23  ;;  %6223 = vst [vmem:[#allocation29_spill] sm:$0xff] %v5285_v24 }
 0x73c   :  { %2471 = vmatpush1.bf16.msra.mxu0 %v5270_v25  ;;  %2512 = vmatpush1.bf16.msra.mxu1 %v5273_v9  ;;  %v5288_v25 = vld [vmem:[#allocation14 + $0x1e4] ss:$16 sps:$4 sm:$0xff]   ;;  %v5291_v9 = vld [vmem:[#allocation14 + $0x1ec] ss:$16 sps:$4 sm:$0xff]  }
 0x73d   :  { %2472 = vmatprep.subr.bf16.mxu0 %v5276_v20  ;;  %2513 = vmatprep.subr.bf16.mxu1 %v5279_v31  ;;  %6224 = vst [vmem:[#allocation30_spill] sm:$0xff] %v5288_v25  ;;  %6225 = vst [vmem:[#allocation82_spill] sm:$0xff] %v5291_v9  ;;  %v5294_v20 = vld [vmem:[#allocation14 + $0x1e0] ss:$16 sps:$4 sm:$0xff]   ;;  %v5297_v31 = vld [vmem:[#allocation14 + $0x1e8] ss:$16 sps:$4 sm:$0xff]  }
 0x73e   :  { %6226 = vst [vmem:[#allocation81_spill] sm:$0xff] %v5294_v20  ;;  %6227 = vst [vmem:[#allocation54_spill] sm:$0xff] %v5297_v31 }
 0x740   :  { %2473 = vmatpush1.bf16.msra.mxu0 %v5282_v23  ;;  %2514 = vmatpush1.bf16.msra.mxu1 %v5285_v24  ;;  %v5300_v23 = vld [vmem:[#allocation14 + $0x1c4] ss:$16 sps:$4 sm:$0xff]   ;;  %v5303_v24 = vld [vmem:[#allocation14 + $0x1cc] ss:$16 sps:$4 sm:$0xff]  }
 0x741   :  { %2474 = vmatprep.subr.bf16.mxu0 %v5288_v25  ;;  %2515 = vmatprep.subr.bf16.mxu1 %v5291_v9  ;;  %6228 = vst [vmem:[#allocation55_spill] sm:$0xff] %v5300_v23  ;;  %6229 = vst [vmem:[#allocation56_spill] sm:$0xff] %v5303_v24  ;;  %v5306_v25 = vld [vmem:[#allocation14 + $0x1c0] ss:$16 sps:$4 sm:$0xff]   ;;  %v5309_v9 = vld [vmem:[#allocation14 + $0x1c8] ss:$16 sps:$4 sm:$0xff]  }
 0x742   :  { %6230 = vst [vmem:[#allocation57_spill] sm:$0xff] %v5306_v25  ;;  %6231 = vst [vmem:[#allocation58_spill] sm:$0xff] %v5309_v9 }
 0x744   :  { %2475 = vmatpush2.bf16.msra.mxu0 %v5294_v20  ;;  %2516 = vmatpush2.bf16.msra.mxu1 %v5297_v31  ;;  %v5312_v20 = vld [vmem:[#allocation14 + $0x1a4] ss:$16 sps:$4 sm:$0xff]   ;;  %v5315_v31 = vld [vmem:[#allocation14 + $0x1ac] ss:$16 sps:$4 sm:$0xff]  }
 0x745   :  { %2476 = vmatprep.subr.bf16.mxu0 %v5300_v23  ;;  %2517 = vmatprep.subr.bf16.mxu1 %v5303_v24  ;;  %6232 = vst [vmem:[#allocation59_spill] sm:$0xff] %v5312_v20  ;;  %6233 = vst [vmem:[#allocation60_spill] sm:$0xff] %v5315_v31  ;;  %v5318_v23 = vld [vmem:[#allocation14 + $0x1a0] ss:$16 sps:$4 sm:$0xff]   ;;  %v5321_v24 = vld [vmem:[#allocation14 + $0x1a8] ss:$16 sps:$4 sm:$0xff]  }
 0x746   :  { %6234 = vst [vmem:[#allocation61_spill] sm:$0xff] %v5318_v23  ;;  %6235 = vst [vmem:[#allocation62_spill] sm:$0xff] %v5321_v24 }
 0x748   :  { %2477 = vmatpush2.bf16.msra.mxu0 %v5306_v25  ;;  %2518 = vmatpush2.bf16.msra.mxu1 %v5309_v9  ;;  %v5324_v25 = vld [vmem:[#allocation14 + $0x184] ss:$16 sps:$4 sm:$0xff]   ;;  %v5327_v9 = vld [vmem:[#allocation14 + $0x18c] ss:$16 sps:$4 sm:$0xff]  }
 0x749   :  { %2478 = vmatprep.subr.bf16.mxu0 %v5312_v20  ;;  %2519 = vmatprep.subr.bf16.mxu1 %v5315_v31  ;;  %6236 = vst [vmem:[#allocation63_spill] sm:$0xff] %v5324_v25  ;;  %6237 = vst [vmem:[#allocation64_spill] sm:$0xff] %v5327_v9  ;;  %v5330_v20 = vld [vmem:[#allocation14 + $0x180] ss:$16 sps:$4 sm:$0xff]   ;;  %v5333_v31 = vld [vmem:[#allocation14 + $0x188] ss:$16 sps:$4 sm:$0xff]  }
 0x74a   :  { %6238 = vst [vmem:[#allocation65_spill] sm:$0xff] %v5330_v20  ;;  %6239 = vst [vmem:[#allocation66_spill] sm:$0xff] %v5333_v31 }
 0x74c   :  { %2479 = vmatpush2.bf16.msra.mxu0 %v5318_v23  ;;  %2520 = vmatpush2.bf16.msra.mxu1 %v5321_v24  ;;  %v5336_v23 = vld [vmem:[#allocation14 + $0x164] ss:$16 sps:$4 sm:$0xff]   ;;  %v5339_v24 = vld [vmem:[#allocation14 + $0x16c] ss:$16 sps:$4 sm:$0xff]  }
 0x74d   :  { %2480 = vmatprep.subr.bf16.mxu0 %v5324_v25  ;;  %2521 = vmatprep.subr.bf16.mxu1 %v5327_v9  ;;  %6240 = vst [vmem:[#allocation67_spill] sm:$0xff] %v5336_v23  ;;  %6241 = vst [vmem:[#allocation68_spill] sm:$0xff] %v5339_v24  ;;  %v5342_v25 = vld [vmem:[#allocation14 + $0x160] ss:$16 sps:$4 sm:$0xff]   ;;  %v5345_v9 = vld [vmem:[#allocation14 + $0x168] ss:$16 sps:$4 sm:$0xff]  }
 0x74e   :  { %6242 = vst [vmem:[#allocation69_spill] sm:$0xff] %v5342_v25  ;;  %6243 = vst [vmem:[#allocation70_spill] sm:$0xff] %v5345_v9 }
 0x750   :  { %2481 = vmatpush2.bf16.msra.mxu0 %v5330_v20  ;;  %2522 = vmatpush2.bf16.msra.mxu1 %v5333_v31  ;;  %v5348_v20 = vld [vmem:[#allocation14 + $0x144] ss:$16 sps:$4 sm:$0xff]   ;;  %v5351_v31 = vld [vmem:[#allocation14 + $0x14c] ss:$16 sps:$4 sm:$0xff]  }
 0x751   :  { %2482 = vmatprep.subr.bf16.mxu0 %v5336_v23  ;;  %2523 = vmatprep.subr.bf16.mxu1 %v5339_v24  ;;  %6244 = vst [vmem:[#allocation71_spill] sm:$0xff] %v5348_v20  ;;  %6245 = vst [vmem:[#allocation72_spill] sm:$0xff] %v5351_v31  ;;  %v5354_v23 = vld [vmem:[#allocation14 + $0x140] ss:$16 sps:$4 sm:$0xff]   ;;  %v5357_v24 = vld [vmem:[#allocation14 + $0x148] ss:$16 sps:$4 sm:$0xff]  }
 0x752   :  { %6246 = vst [vmem:[#allocation73_spill] sm:$0xff] %v5354_v23  ;;  %6247 = vst [vmem:[#allocation74_spill] sm:$0xff] %v5357_v24 }
 0x754   :  { %2483 = vmatpush2.bf16.msra.mxu0 %v5342_v25  ;;  %2524 = vmatpush2.bf16.msra.mxu1 %v5345_v9  ;;  %v5360_v25 = vld [vmem:[#allocation14 + $0x124] ss:$16 sps:$4 sm:$0xff]   ;;  %v5363_v9 = vld [vmem:[#allocation14 + $0x12c] ss:$16 sps:$4 sm:$0xff]  }
 0x755   :  { %2484 = vmatprep.subr.bf16.mxu0 %v5348_v20  ;;  %2525 = vmatprep.subr.bf16.mxu1 %v5351_v31  ;;  %6248 = vst [vmem:[#allocation75_spill] sm:$0xff] %v5360_v25  ;;  %6249 = vst [vmem:[#allocation76_spill] sm:$0xff] %v5363_v9  ;;  %v5366_v20 = vld [vmem:[#allocation14 + $0x120] ss:$16 sps:$4 sm:$0xff]   ;;  %v5369_v31 = vld [vmem:[#allocation14 + $0x128] ss:$16 sps:$4 sm:$0xff]  }
 0x756   :  { %6250 = vst [vmem:[#allocation77_spill] sm:$0xff] %v5366_v20  ;;  %6251 = vst [vmem:[#allocation83_spill] sm:$0xff] %v5369_v31 }
 0x758   :  { %2485 = vmatpush2.bf16.msra.mxu0 %v5354_v23  ;;  %2526 = vmatpush2.bf16.msra.mxu1 %v5357_v24  ;;  %v5372_v23 = vld [vmem:[#allocation14 + $0x104] ss:$16 sps:$4 sm:$0xff]   ;;  %v5375_v24 = vld [vmem:[#allocation14 + $0x10c] ss:$16 sps:$4 sm:$0xff]  }
 0x759   :  { %2486 = vmatprep.subr.bf16.mxu0 %v5360_v25  ;;  %2527 = vmatprep.subr.bf16.mxu1 %v5363_v9  ;;  %6252 = vst [vmem:[#allocation84_spill] sm:$0xff] %v5372_v23  ;;  %6253 = vst [vmem:[#allocation85_spill] sm:$0xff] %v5375_v24  ;;  %v5378_v25 = vld [vmem:[#allocation14 + $0x100] ss:$16 sps:$4 sm:$0xff]   ;;  %v5381_v9 = vld [vmem:[#allocation14 + $0x108] ss:$16 sps:$4 sm:$0xff]  }
 0x75a   :  { %6254 = vst [vmem:[#allocation86_spill] sm:$0xff] %v5378_v25  ;;  %6255 = vst [vmem:[#allocation87_spill] sm:$0xff] %v5381_v9 }
 0x75c   :  { %2487 = vmatpush2.bf16.msra.mxu0 %v5366_v20  ;;  %2528 = vmatpush2.bf16.msra.mxu1 %v5369_v31 }
 0x75d   :  { %2488 = vmatprep.subr.bf16.mxu0 %v5372_v23  ;;  %2529 = vmatprep.subr.bf16.mxu1 %v5375_v24 }
 0x760   :  { %2489 = vmatpush2.bf16.msra.mxu0 %v5378_v25  ;;  %2530 = vmatpush2.bf16.msra.mxu1 %v5381_v9 }
 0x761   :  { %2564 = vmatprep.subr.bf16.mxu0 %v5122_v37  ;;  %2605 = vmatprep.subr.bf16.mxu1 %v5125_v51 }
 0x7c3   :  { %v2250_v31 = vpop.f32.mrf.mxu0  ;;  %v2291_v20 = vpop.f32.mrf.mxu1 }
 0x7c4   :  { %v2251_v23 = vadd.f32 %v2250_v31, %v6191_v5  ;;  %v2292_v51 = vadd.f32 %v2291_v20, %v6194_v0 }
 0x7c5   :  { %v2252_v17 = vpop.f32.mrf.mxu0  ;;  %v2293_v35 = vpop.f32.mrf.mxu1 }
 0x7c6   :  { %v3058_v34 = vmul.f32 -1.442695, %v2251_v23  ;;  %v2253_v24 = vadd.f32 %v2252_v17, %v6192_v22  ;;  %v2294_v37 = vadd.f32 %v2293_v35, %v6193_v61 }
 0x7c7   :  { %v2254_v63 = vpop.f32.mrf.mxu0  ;;  %v2295_v42 = vpop.f32.mrf.mxu1 }
 0x7c8   :  { %3462 = vpow2.f32 %v3058_v34  ;;  %v3059_v25 = vmul.f32 -1.442695, %v2253_v24  ;;  %v3060_v58 = vmul.f32 -1.442695, %v2294_v37 }
 0x7c9   :  { %v2255_v60 = vpop.f32.mrf.mxu0  ;;  %v2296_v30 = vpop.f32.mrf.mxu1 }
 0x7ca   :  { %3464 = vpow2.f32 %v3059_v25 }
 0x7cb   :  { %3466 = vtanh.f32 %v2292_v51 }
 0x7d5   :  { %v3463_v9 = vpop.eup %3462 }
 0x7d6   :  { %v2301_v2 = vadd.f32 1.0, %v3463_v9 }
 0x7d7   :  { %v3465_v31 = vpop.eup %3464 }
 0x7d8   :  { %3468 = vrcp.f32 %v2301_v2  ;;  %v2307_v23 = vadd.f32 1.0, %v3465_v31  ;;  %v3467_v34 = vpop.eup %3466 }
 0x7d9   :  { %3470 = vpow2.f32 %v3060_v58 }
 0x7da   :  { %3472 = vrcp.f32 %v2307_v23 }
 0x7e3   :  { %v2356_v63 = vpop.f32.mrf.mxu0  ;;  %v2397_v42 = vpop.f32.mrf.mxu1 }
 0x7e4   :  { %v2408_v17 = vrot.slane %v2356_v63, 4 }
 0x7e5   :  { %v3469_v60 = vpop.eup %3468  ;;  %v2358_v30 = vpop.f32.mrf.mxu0 }
 0x7e6   :  { %v2399_v24 = vpop.f32.mrf.mxu1  ;;  %v3471_v25 = vpop.eup %3470  ;;  %v2416_v35 = vadd.f32 %v2408_v17, %v6195_v59  ;;  %v2409_v20 = vrot.slane %v2358_v30, 4  ;;  %v2318_v61 = vmul.f32 %v3469_v60, %v3467_v34  ;;  %v2410_v34 = vrot.slane %v2397_v42, 4 }
 0x7e7   :  { %v3473_v0 = vpop.eup %3472  ;;  %v2360_v37 = vpop.f32.mrf.mxu0  ;;  %v2314_v31 = vadd.f32 1.0, %v3471_v25  ;;  %v2411_v17 = vrot.slane %v2399_v24, 4 }
 0x7e8   :  { %v2401_v9 = vpop.f32.mrf.mxu1  ;;  %v2317_v2 = vmul.f32 %v3473_v0, %v5135_v28  ;;  %v3061_v51 = vmul.f32 -1.442695, %v2416_v35  ;;  %v2417_v58 = vadd.f32 %v2409_v20, %v6196_v21  ;;  %v2418_v28 = vadd.f32 %v2410_v34, %v6157_v43 }
 0x7e9   :  { %v2361_v23 = vpop.f32.mrf.mxu0  ;;  %v2419_v30 = vadd.f32 %v2411_v17, %v6156_v18 }
 0x7ea   :  { %v2402_v22 = vpop.f32.mrf.mxu1  ;;  %3474 = vpow2.f32 %v3061_v51  ;;  %v3062_v63 = vmul.f32 -1.442695, %v2417_v58  ;;  %v5393_v5 = vadd.f32 %v2318_v61, %v2317_v2 }
 0x7eb   :  { %v3063_v60 = vmul.f32 -1.442695, %v2419_v30 }
 0x7ec   :  { %3476 = vpow2.f32 %v3062_v63 }
 0x7ed   :  { %3478 = vrcp.f32 %v2314_v31  ;;  %v2440_v31 = vrot.slane %v5141_v11, 6  ;;  %v6278_v11 = vld [vmem:[#allocation51_spill] sm:$0xff] }
 0x7ee   :  { %3480 = vtanh.f32 %v5393_v5 }
 0x7ef   :  { %3482 = vpow2.f32 %v3063_v60 }
 0x7f7   :  { %v3475_v0 = vpop.eup %3474 }
 0x7f8   :  { %v2423_v35 = vadd.f32 1.0, %v3475_v0 }
 0x7f9   :  { %v3477_v25 = vpop.eup %3476 }
 0x7fa   :  { %v3479_v22 = vpop.eup %3478  ;;  %3484 = vrcp.f32 %v2423_v35  ;;  %v2429_v20 = vadd.f32 1.0, %v3477_v25 }
 0x7fb   :  { %v3481_v61 = vpop.eup %3480  ;;  %3486 = vtanh.f32 %v2418_v28 }
 0x7fc   :  { %3488 = vrcp.f32 %v2429_v20  ;;  %v2321_v37 = vmul.f32 %v3481_v61, %v3479_v22  ;;  %v3483_v42 = vpop.eup %3482  ;;  %v6294_v22 = vld [vmem:[#allocation63_spill] sm:$0xff]  ;;  %v6295_v20 = vld [vmem:[#allocation64_spill] sm:$0xff]  ;;  %v6296_v61 = vld [vmem:[#allocation65_spill] sm:$0xff] }
 0x7fd   :  { %v2436_v63 = vadd.f32 1.0, %v3483_v42  ;;  %v6301_v42 = vld [vmem:[#allocation70_spill] sm:$0xff] }
 0x7fe   :  { %v2448_v24 = vrot.slane %v2321_v37, 4  ;;  %v6297_v37 = vld [vmem:[#allocation66_spill] sm:$0xff] }
 0x7ff   :  { %3490 = vrcp.f32 %v2436_v63  ;;  %v6306_v63 = vld [vmem:[#allocation75_spill] sm:$0xff] }
 0x800   :  { %v2451_v9 = vpack.c.bf16 %v2448_v24, %v2448_v24  ;;  %v6298_v24 = vld [vmem:[#allocation67_spill] sm:$0xff] }
 0x802   :  { %v2455_v2 = vrot.slane %v2451_v9, 2  ;;  %v6299_v9 = vld [vmem:[#allocation68_spill] sm:$0xff] }
 0x804   :  { %2490 = vmatprep.mubr.bf16.mxu0 %v2455_v2  ;;  %2531 = vmatprep.mubr.bf16.mxu1 %v2455_v2  ;;  %v6300_v2 = vld [vmem:[#allocation69_spill] sm:$0xff] }
 0x807   :  { %v3485_v51 = vpop.eup %3484 }
 0x808   :  { %v3487_v58 = vpop.eup %3486 }
 0x809   :  { %v3489_v23 = vpop.eup %3488  ;;  %v2443_v17 = vmul.f32 %v3487_v58, %v3485_v51  ;;  %v6302_v51 = vld [vmem:[#allocation71_spill] sm:$0xff]  ;;  %v6303_v58 = vld [vmem:[#allocation72_spill] sm:$0xff] }
 0x80a   :  { %v2442_v30 = vmul.f32 %v3489_v23, %v2440_v31  ;;  %v6304_v31 = vld [vmem:[#allocation73_spill] sm:$0xff]  ;;  %v6305_v23 = vld [vmem:[#allocation74_spill] sm:$0xff] }
 0x80c   :  { %v5399_v34 = vadd.f32 %v2443_v17, %v2442_v30  ;;  %v3491_v60 = vpop.eup %3490  ;;  %v6307_v17 = vld [vmem:[#allocation76_spill] sm:$0xff]  ;;  %v6308_v30 = vld [vmem:[#allocation77_spill] sm:$0xff] }
 0x80e   :  { %3492 = vtanh.f32 %v5399_v34 }
 0x81b   :  { %v3493_v0 = vpop.eup %3492 }
 0x81c   :  { %v2446_v28 = vmul.f32 %v3493_v0, %v3491_v60  ;;  %v6309_v60 = vld [vmem:[#allocation83_spill] sm:$0xff]  ;;  %v6310_v0 = vld [vmem:[#allocation84_spill] sm:$0xff] }
 0x81e   :  { %v2450_v35 = vpack.c.bf16 %v2446_v28, %v2446_v28  ;;  %v6311_v28 = vld [vmem:[#allocation85_spill] sm:$0xff] }
 0x820   :  { %v2454_v25 = vrot.slane %v2450_v35, 2  ;;  %v6312_v35 = vld [vmem:[#allocation86_spill] sm:$0xff] }
 0x822   :  { %2491 = vmatmul.mubr.bf16.vlgmr.msra.gmra.mxu0 %v2454_v25  ;;  %2532 = vmatmul.mubr.bf16.vlgmr.msra.gmra.mxu1 %v2454_v25 }
 0x823   :  { %2565 = vmatpush1.bf16.msra.mxu0 %v4982_v48  ;;  %2606 = vmatpush1.bf16.msra.mxu1 %v4985_v55  ;;  %v6257_v48 = vld [vmem:[#allocation33_spill] sm:$0xff]  ;;  %v6258_v55 = vld [vmem:[#allocation34_spill] sm:$0xff] }
 0x824   :  { %2566 = vmatprep.subr.bf16.mxu0 %v4988_v47  ;;  %2607 = vmatprep.subr.bf16.mxu1 %v4991_v45  ;;  %v6259_v47 = vld [vmem:[#allocation35_spill] sm:$0xff]  ;;  %v6260_v45 = vld [vmem:[#allocation36_spill] sm:$0xff] }
 0x825   :  { %2596 = vmatprep.mubr.bf16.mxu0 %v5924_v6  ;;  %2637 = vmatprep.mubr.bf16.mxu1 %v5924_v6  ;;  %v6256_v6 = vld [vmem:[#allocation32_spill] sm:$0xff] }
 0x827   :  { %2567 = vmatpush1.bf16.msra.mxu0 %v4996_v54  ;;  %2608 = vmatpush1.bf16.msra.mxu1 %v4999_v41  ;;  %v6261_v54 = vld [vmem:[#allocation37_spill] sm:$0xff]  ;;  %v6262_v41 = vld [vmem:[#allocation38_spill] sm:$0xff] }
 0x828   :  { %2568 = vmatprep.subr.bf16.mxu0 %v5002_v50  ;;  %2609 = vmatprep.subr.bf16.mxu1 %v5005_v36  ;;  %v6263_v50 = vld [vmem:[#allocation39_spill] sm:$0xff]  ;;  %v6264_v36 = vld [vmem:[#allocation40_spill] sm:$0xff] }
 0x82b   :  { %2569 = vmatpush1.bf16.msra.mxu0 %v5008_v10  ;;  %2610 = vmatpush1.bf16.msra.mxu1 %v5011_v46  ;;  %v6265_v10 = vld [vmem:[#allocation23_spill] sm:$0xff]  ;;  %v6266_v46 = vld [vmem:[#allocation24_spill] sm:$0xff] }
 0x82c   :  { %2570 = vmatprep.subr.bf16.mxu0 %v5014_v53  ;;  %2611 = vmatprep.subr.bf16.mxu1 %v5017_v26  ;;  %v6267_v53 = vld [vmem:[#allocation78_spill] sm:$0xff]  ;;  %v6268_v26 = vld [vmem:[#allocation41_spill] sm:$0xff] }
 0x82f   :  { %2571 = vmatpush1.bf16.msra.mxu0 %v5020_v56  ;;  %2612 = vmatpush1.bf16.msra.mxu1 %v5023_v40  ;;  %v6269_v56 = vld [vmem:[#allocation42_spill] sm:$0xff]  ;;  %v6270_v40 = vld [vmem:[#allocation43_spill] sm:$0xff] }
 0x830   :  { %2572 = vmatprep.subr.bf16.mxu0 %v6197_v44  ;;  %2613 = vmatprep.subr.bf16.mxu1 %v5161_v27  ;;  %v6279_v44 = vld [vmem:[#allocation52_spill] sm:$0xff]  ;;  %v6280_v27 = vld [vmem:[#allocation53_spill] sm:$0xff] }
 0x833   :  { %2573 = vmatpush1.bf16.msra.mxu0 %v5030_v33  ;;  %2614 = vmatpush1.bf16.msra.mxu1 %v5165_v29  ;;  %v6272_v33 = vld [vmem:[#allocation45_spill] sm:$0xff] }
 0x834   :  { %2574 = vmatprep.subr.bf16.mxu0 %v5034_v49  ;;  %2615 = vmatprep.subr.bf16.mxu1 %v5169_v62  ;;  %v6273_v49 = vld [vmem:[#allocation46_spill] sm:$0xff]  ;;  %v6281_v29 = vld [vmem:[#allocation29_spill] sm:$0xff] }
 0x835   :  { %v6282_v62 = vld [vmem:[#allocation30_spill] sm:$0xff] }
 0x837   :  { %2575 = vmatpush1.bf16.msra.mxu0 %v5038_v7  ;;  %2616 = vmatpush1.bf16.msra.mxu1 %v5173_v32  ;;  %v6274_v7 = vld [vmem:[#allocation47_spill] sm:$0xff]  ;;  %v6283_v32 = vld [vmem:[#allocation82_spill] sm:$0xff] }
 0x838   :  { %2576 = vmatprep.subr.bf16.mxu0 %v5042_v52  ;;  %2617 = vmatprep.subr.bf16.mxu1 %v5177_v4  ;;  %v6271_v52 = vld [vmem:[#allocation44_spill] sm:$0xff]  ;;  %v6284_v4 = vld [vmem:[#allocation81_spill] sm:$0xff] }
 0x83b   :  { %2577 = vmatpush1.bf16.msra.mxu0 %v5046_v1  ;;  %2618 = vmatpush1.bf16.msra.mxu1 %v5181_v3  ;;  %v6275_v1 = vld [vmem:[#allocation48_spill] sm:$0xff]  ;;  %v6285_v3 = vld [vmem:[#allocation54_spill] sm:$0xff] }
 0x83c   :  { %2578 = vmatprep.subr.bf16.mxu0 %v5050_v15  ;;  %2619 = vmatprep.subr.bf16.mxu1 %v5185_v16  ;;  %v6276_v15 = vld [vmem:[#allocation49_spill] sm:$0xff]  ;;  %v6286_v16 = vld [vmem:[#allocation55_spill] sm:$0xff] }
 0x83f   :  { %2579 = vmatpush1.bf16.msra.mxu0 %v5054_v19  ;;  %2620 = vmatpush1.bf16.msra.mxu1 %v5189_v12  ;;  %v6277_v19 = vld [vmem:[#allocation50_spill] sm:$0xff]  ;;  %v6287_v12 = vld [vmem:[#allocation56_spill] sm:$0xff] }
 0x840   :  { %2700 = vmatprep.subr.bf16.mxu0 %v5192_v39  ;;  %2741 = vmatprep.subr.bf16.mxu1 %v5195_v14  ;;  %v6288_v39 = vld [vmem:[#allocation57_spill] sm:$0xff]  ;;  %v6289_v14 = vld [vmem:[#allocation58_spill] sm:$0xff] }
 0x842   :  { %2597 = vmatmul.mubr.bf16.vlgmr.msra.gmra.mxu0 %v2454_v25  ;;  %2638 = vmatmul.mubr.bf16.vlgmr.msra.gmra.mxu1 %v2454_v25  ;;  %v6313_v25 = vld [vmem:[#allocation87_spill] sm:$0xff] }
 0x843   :  { %2701 = vmatpush1.bf16.msra.mxu0 %v5198_v13  ;;  %2742 = vmatpush1.bf16.msra.mxu1 %v5201_v38  ;;  %v6290_v13 = vld [vmem:[#allocation59_spill] sm:$0xff]  ;;  %v6291_v38 = vld [vmem:[#allocation60_spill] sm:$0xff] }
 0x844   :  { %2702 = vmatprep.subr.bf16.mxu0 %v5204_v8  ;;  %2743 = vmatprep.subr.bf16.mxu1 %v5207_v57  ;;  %v6292_v8 = vld [vmem:[#allocation61_spill] sm:$0xff]  ;;  %v6293_v57 = vld [vmem:[#allocation62_spill] sm:$0xff] }
 0x847   :  { %2703 = vmatpush1.bf16.msra.mxu0 %v6256_v6  ;;  %2744 = vmatpush1.bf16.msra.mxu1 %v6257_v48  ;;  %v6314_v6 = vmov 0.0  }
 0x848   :  { %2704 = vmatprep.subr.bf16.mxu0 %v6258_v55  ;;  %2745 = vmatprep.subr.bf16.mxu1 %v6259_v47  ;;  %v6315_v47 = vld [vmem:[#allocation25_spill] sm:$0xff] }
 0x84b   :  { %2705 = vmatpush1.bf16.msra.mxu0 %v6260_v45  ;;  %2746 = vmatpush1.bf16.msra.mxu1 %v6261_v54 }
 0x84c   :  { %2706 = vmatprep.subr.bf16.mxu0 %v6262_v41  ;;  %2747 = vmatprep.subr.bf16.mxu1 %v6263_v50 }
 0x84f   :  { %2707 = vmatpush1.bf16.msra.mxu0 %v6264_v36  ;;  %2748 = vmatpush1.bf16.msra.mxu1 %v6265_v10  ;;  %v6316_v36 = vld [vmem:[#allocation26_spill] sm:$0xff] }
 0x850   :  { %2708 = vmatprep.subr.bf16.mxu0 %v6266_v46  ;;  %2749 = vmatprep.subr.bf16.mxu1 %v6267_v53 }
 0x853   :  { %2709 = vmatpush1.bf16.msra.mxu0 %v6268_v26  ;;  %2750 = vmatpush1.bf16.msra.mxu1 %v6269_v56 }
 0x854   :  { %2710 = vmatprep.subr.bf16.mxu0 %v6270_v40  ;;  %2751 = vmatprep.subr.bf16.mxu1 %v6271_v52  ;;  %v6317_v52 = vld [vmem:[#allocation27_spill] sm:$0xff] }
 0x857   :  { %2711 = vmatpush1.bf16.msra.mxu0 %v6272_v33  ;;  %2752 = vmatpush1.bf16.msra.mxu1 %v6273_v49  ;;  %v6318_v49 = vld [vmem:[#allocation28_spill] sm:$0xff] }
 0x858   :  { %2712 = vmatprep.subr.bf16.mxu0 %v6274_v7  ;;  %2753 = vmatprep.subr.bf16.mxu1 %v6275_v1 }
 0x85b   :  { %2713 = vmatpush1.bf16.msra.mxu0 %v6276_v15  ;;  %2754 = vmatpush1.bf16.msra.mxu1 %v6277_v19 }
 0x85c   :  { %2714 = vmatprep.subr.bf16.mxu0 %v6278_v11  ;;  %2755 = vmatprep.subr.bf16.mxu1 %v6279_v44 }
 0x85f   :  { %2715 = vmatpush1.bf16.msra.mxu0 %v6280_v27  ;;  %2756 = vmatpush1.bf16.msra.mxu1 %v6281_v29 }
 0x860   :  { %2716 = vmatprep.subr.bf16.mxu0 %v6282_v62  ;;  %2757 = vmatprep.subr.bf16.mxu1 %v6283_v32 }
 0x863   :  { %2717 = vmatpush2.bf16.msra.mxu0 %v6284_v4  ;;  %2758 = vmatpush2.bf16.msra.mxu1 %v6285_v3 }
 0x864   :  { %2718 = vmatprep.subr.bf16.mxu0 %v6286_v16  ;;  %2759 = vmatprep.subr.bf16.mxu1 %v6287_v12 }
 0x867   :  { %2719 = vmatpush2.bf16.msra.mxu0 %v6288_v39  ;;  %2760 = vmatpush2.bf16.msra.mxu1 %v6289_v14 }
 0x868   :  { %2720 = vmatprep.subr.bf16.mxu0 %v6290_v13  ;;  %2761 = vmatprep.subr.bf16.mxu1 %v6291_v38 }
 0x86b   :  { %2721 = vmatpush2.bf16.msra.mxu0 %v6292_v8  ;;  %2762 = vmatpush2.bf16.msra.mxu1 %v6293_v57 }
 0x86c   :  { %2722 = vmatprep.subr.bf16.mxu0 %v6294_v22  ;;  %2763 = vmatprep.subr.bf16.mxu1 %v6295_v20 }
 0x86f   :  { %2723 = vmatpush2.bf16.msra.mxu0 %v6296_v61  ;;  %2764 = vmatpush2.bf16.msra.mxu1 %v6297_v37 }
 0x870   :  { %2724 = vmatprep.subr.bf16.mxu0 %v6298_v24  ;;  %2765 = vmatprep.subr.bf16.mxu1 %v6299_v9 }
 0x873   :  { %2725 = vmatpush2.bf16.msra.mxu0 %v6300_v2  ;;  %2766 = vmatpush2.bf16.msra.mxu1 %v6301_v42 }
 0x874   :  { %2726 = vmatprep.subr.bf16.mxu0 %v6302_v51  ;;  %2767 = vmatprep.subr.bf16.mxu1 %v6303_v58 }
 0x877   :  { %2727 = vmatpush2.bf16.msra.mxu0 %v6304_v31  ;;  %2768 = vmatpush2.bf16.msra.mxu1 %v6305_v23 }
 0x878   :  { %2728 = vmatprep.subr.bf16.mxu0 %v6306_v63  ;;  %2769 = vmatprep.subr.bf16.mxu1 %v6307_v17 }
 0x87b   :  { %2729 = vmatpush2.bf16.msra.mxu0 %v6308_v30  ;;  %2770 = vmatpush2.bf16.msra.mxu1 %v6309_v60 }
 0x87c   :  { %2730 = vmatprep.subr.bf16.mxu0 %v6310_v0  ;;  %2771 = vmatprep.subr.bf16.mxu1 %v6311_v28 }
 0x87f   :  { %2731 = vmatpush2.bf16.msra.mxu0 %v6312_v35  ;;  %2772 = vmatpush2.bf16.msra.mxu1 %v6313_v25 }
 0x880   :  { %3091 = vmatprep.subr.mxu0 %v6314_v6 }
 0x8e2   :  { %v2492_v48 = vpop.f32.mrf.mxu0  ;;  %v2533_v55 = vpop.f32.mrf.mxu1 }
 0x8e3   :  { %v2493_v45 = vadd.f32 %v2492_v48, %v6315_v47  ;;  %v2534_v7 = vadd.f32 %v2533_v55, %v6318_v49 }
 0x8e4   :  { %v2494_v54 = vpop.f32.mrf.mxu0  ;;  %v2535_v41 = vpop.f32.mrf.mxu1 }
 0x8e5   :  { %v3064_v50 = vmul.f32 -1.442695, %v2493_v45  ;;  %v2495_v10 = vadd.f32 %v2494_v54, %v6316_v36  ;;  %v2536_v33 = vadd.f32 %v2535_v41, %v6317_v52 }
 0x8e6   :  { %v2496_v46 = vpop.f32.mrf.mxu0  ;;  %v2537_v53 = vpop.f32.mrf.mxu1 }
 0x8e7   :  { %3494 = vpow2.f32 %v3064_v50  ;;  %v3065_v26 = vmul.f32 -1.442695, %v2495_v10  ;;  %v3066_v15 = vmul.f32 -1.442695, %v2536_v33  ;;  %v2828_v33 = vld [vmem:[#allocation15 + $0x78] sm:$0xff] }
 0x8e8   :  { %v2497_v56 = vpop.f32.mrf.mxu0  ;;  %v2538_v40 = vpop.f32.mrf.mxu1 }
 0x8e9   :  { %3496 = vpow2.f32 %v3065_v26 }
 0x8ea   :  { %3498 = vtanh.f32 %v2534_v7  ;;  %v2826_v7 = vld [vmem:[#allocation15 + $0x68] sm:$0xff] }
 0x8f4   :  { %v3495_v1 = vpop.eup %3494 }
 0x8f5   :  { %v2543_v19 = vadd.f32 1.0, %v3495_v1  ;;  %v2825_v1 = vld [vmem:[#allocation15 + $0x60] sm:$0xff] }
 0x8f6   :  { %v3497_v11 = vpop.eup %3496 }
 0x8f7   :  { %3500 = vrcp.f32 %v2543_v19  ;;  %v2549_v44 = vadd.f32 1.0, %v3497_v11  ;;  %v3499_v62 = vpop.eup %3498  ;;  %v2823_v19 = vld [vmem:[#allocation15 + $0x50] sm:$0xff]  ;;  %v2822_v11 = vld [vmem:[#allocation15 + $0x48] sm:$0xff] }
 0x8f8   :  { %3502 = vpow2.f32 %v3066_v15  ;;  %v2824_v15 = vld [vmem:[#allocation15 + $0x58] sm:$0xff] }
 0x8f9   :  { %3504 = vrcp.f32 %v2549_v44  ;;  %v2821_v44 = vld [vmem:[#allocation15 + $0x40] sm:$0xff] }
 0x902   :  { %v2598_v27 = vpop.f32.mrf.mxu0  ;;  %v2639_v29 = vpop.f32.mrf.mxu1 }
 0x903   :  { %v2650_v32 = vrot.slane %v2598_v27, 2  ;;  %v2652_v58 = vrot.slane %v2639_v29, 2  ;;  %v2820_v27 = vld [vmem:[#allocation15 + $0x38] sm:$0xff]  ;;  %v2819_v29 = vld [vmem:[#allocation15 + $0x30] sm:$0xff] }
 0x904   :  { %v3501_v4 = vpop.eup %3500  ;;  %v2600_v3 = vpop.f32.mrf.mxu0 }
 0x905   :  { %v2641_v16 = vpop.f32.mrf.mxu1  ;;  %v3503_v12 = vpop.eup %3502  ;;  %v2658_v39 = vadd.f32 %v2650_v32, %v6195_v59  ;;  %v2651_v14 = vrot.slane %v2600_v3, 2  ;;  %v2560_v57 = vmul.f32 %v3501_v4, %v3499_v62  ;;  %v2660_v23 = vadd.f32 %v2652_v58, %v6157_v43  ;;  %v2818_v62 = vld [vmem:[#allocation15 + $0x28] sm:$0xff]  ;;  %v2817_v32 = vld [vmem:[#allocation15 + $0x20] sm:$0xff]  ;;  %v2816_v4 = vld [vmem:[#allocation15 + $0x18] sm:$0xff] }
 0x906   :  { %v3505_v13 = vpop.eup %3504  ;;  %v2602_v38 = vpop.f32.mrf.mxu0  ;;  %v2556_v37 = vadd.f32 1.0, %v3503_v12  ;;  %v2653_v59 = vrot.slane %v2641_v16, 2  ;;  %v2682_v43 = vrot.slane %v5399_v34, 6  ;;  %v2827_v34 = vld [vmem:[#allocation15 + $0x70] sm:$0xff]  ;;  %v2814_v16 = vld [vmem:[#allocation15 + $0x8] sm:$0xff]  ;;  %v2813_v12 = vld [vmem:[#allocation15] sm:$0xff] }
 0x907   :  { %v2643_v8 = vpop.f32.mrf.mxu1  ;;  %v2559_v22 = vmul.f32 %v3505_v13, %v5393_v5  ;;  %v3067_v20 = vmul.f32 -1.442695, %v2658_v39  ;;  %v2659_v61 = vadd.f32 %v2651_v14, %v6196_v21  ;;  %v2815_v3 = vld [vmem:[#allocation15 + $0x10] sm:$0xff] }
 0x908   :  { %v2603_v24 = vpop.f32.mrf.mxu0  ;;  %v2661_v51 = vadd.f32 %v2653_v59, %v6156_v18 }
 0x909   :  { %v2644_v9 = vpop.f32.mrf.mxu1  ;;  %3506 = vpow2.f32 %v3067_v20  ;;  %v3068_v2 = vmul.f32 -1.442695, %v2659_v61  ;;  %v5506_v42 = vadd.f32 %v2560_v57, %v2559_v22 }
 0x90a   :  { %v3069_v31 = vmul.f32 -1.442695, %v2661_v51 }
 0x90b   :  { %3508 = vpow2.f32 %v3068_v2 }
 0x90c   :  { %3510 = vrcp.f32 %v2556_v37 }
 0x90d   :  { %3512 = vtanh.f32 %v5506_v42 }
 0x90e   :  { %3514 = vpow2.f32 %v3069_v31 }
 0x916   :  { %v3507_v5 = vpop.eup %3506 }
 0x917   :  { %v2665_v21 = vadd.f32 1.0, %v3507_v5 }
 0x918   :  { %v3509_v63 = vpop.eup %3508 }
 0x919   :  { %v3511_v17 = vpop.eup %3510  ;;  %3516 = vrcp.f32 %v2665_v21  ;;  %v2671_v30 = vadd.f32 1.0, %v3509_v63 }
 0x91a   :  { %v3513_v60 = vpop.eup %3512  ;;  %3518 = vtanh.f32 %v2660_v23 }
 0x91b   :  { %3520 = vrcp.f32 %v2671_v30  ;;  %v2563_v0 = vmul.f32 %v3513_v60, %v3511_v17  ;;  %v3515_v18 = vpop.eup %3514 }
 0x91c   :  { %v2678_v54 = vadd.f32 1.0, %v3515_v18 }
 0x91d   :  { %v2690_v28 = vrot.slane %v2563_v0, 2 }
 0x91e   :  { %3522 = vrcp.f32 %v2678_v54 }
 0x91f   :  { %v2693_v35 = vpack.c.bf16 %v2690_v28, %v2690_v28  ;;  %v3073_v28 = vld [vmem:[%s5546_s7] ss:$0 sm:$0xff] }
 0x921   :  { %v2697_v25 = vrot.slane %v2693_v35, 3 }
 0x923   :  { %2732 = vmatprep.mubr.bf16.mxu0 %v2697_v25  ;;  %2773 = vmatprep.mubr.bf16.mxu1 %v2697_v25 }
 0x926   :  { %v3517_v48 = vpop.eup %3516 }
 0x927   :  { %v3519_v55 = vpop.eup %3518 }
 0x928   :  { %v3521_v45 = vpop.eup %3520  ;;  %v2685_v41 = vmul.f32 %v3519_v55, %v3517_v48 }
 0x929   :  { %v2684_v50 = vmul.f32 %v3521_v45, %v2682_v43 }
 0x92b   :  { %v2686_v10 = vadd.f32 %v2685_v41, %v2684_v50  ;;  %v3523_v46 = vpop.eup %3522 }
 0x92d   :  { %2807 = vst [vmem:[#allocation3 - $0x6] sm:$0xc0] %v2686_v10  ;;  %3524 = vtanh.f32 %v2686_v10 }
 0x93a   :  { %v3525_v53 = vpop.eup %3524 }
 0x93b   :  { %v2688_v26 = vmul.f32 %v3525_v53, %v3523_v46 }
 0x93d   :  { %v2692_v56 = vpack.c.bf16 %v2688_v26, %v2688_v26  ;;  %2806 = vst [vmem:[#allocation2 - $0x6] sm:$0xc0] %v2688_v26 }
 0x93f   :  { %v2696_v40 = vrot.slane %v2692_v56, 3 }
 0x941   :  { %2733 = vmatmul.mubr.bf16.vlgmr.msra.gmra.mxu0 %v2696_v40  ;;  %2774 = vmatmul.mubr.bf16.vlgmr.msra.gmra.mxu1 %v2696_v40 }
 0x942   :  { %3092 = vmatpush3.msra.mxu0 %v2828_v33  ;;  %3123 = vmatprep.mubr.msk.f32.mxu0 %vm3898_vm1, %v6314_v6 }
 0x943   :  { %3093 = vmatprep.subr.mxu0 %v6314_v6 }
 0x944   :  { %3094 = vmatpush3.msra.mxu0 %v2827_v34 }
 0x945   :  { %3095 = vmatprep.subr.mxu0 %v6314_v6 }
 0x946   :  { %3096 = vmatpush3.msra.mxu0 %v2826_v7 }
 0x947   :  { %3097 = vmatprep.subr.mxu0 %v6314_v6 }
 0x948   :  { %3098 = vmatpush3.msra.mxu0 %v2825_v1 }
 0x949   :  { %3099 = vmatprep.subr.mxu0 %v6314_v6 }
 0x94a   :  { %3100 = vmatpush3.msra.mxu0 %v2824_v15 }
 0x94b   :  { %3101 = vmatprep.subr.mxu0 %v6314_v6 }
 0x94c   :  { %3102 = vmatpush3.msra.mxu0 %v2823_v19 }
 0x94d   :  { %3103 = vmatprep.subr.mxu0 %v6314_v6 }
 0x94e   :  { %3104 = vmatpush3.msra.mxu0 %v2822_v11 }
 0x94f   :  { %3105 = vmatprep.subr.mxu0 %v6314_v6 }
 0x950   :  { %3106 = vmatpush3.msra.mxu0 %v2821_v44 }
 0x951   :  { %3107 = vmatprep.subr.mxu0 %v6314_v6 }
 0x952   :  { %3108 = vmatpush3.msra.mxu0 %v2820_v27 }
 0x953   :  { %3109 = vmatprep.subr.mxu0 %v6314_v6 }
 0x954   :  { %3110 = vmatpush3.msra.mxu0 %v2819_v29 }
 0x955   :  { %3111 = vmatprep.subr.mxu0 %v6314_v6 }
 0x956   :  { %3112 = vmatpush3.msra.mxu0 %v2818_v62 }
 0x957   :  { %3113 = vmatprep.subr.mxu0 %v6314_v6 }
 0x958   :  { %3114 = vmatpush3.msra.mxu0 %v2817_v32 }
 0x959   :  { %3115 = vmatprep.subr.mxu0 %v6314_v6 }
 0x95a   :  { %3116 = vmatpush3.msra.mxu0 %v2816_v4 }
 0x95b   :  { %3117 = vmatprep.subr.mxu0 %v6314_v6 }
 0x95c   :  { %3118 = vmatpush3.msra.mxu0 %v2815_v3 }
 0x95d   :  { %3119 = vmatprep.subr.mxu0 %v6314_v6 }
 0x95e   :  { %3120 = vmatpush3.msra.mxu0 %v2814_v16 }
 0x95f   :  { %3121 = vmatprep.subr.mxu0 %v6314_v6 }
 0x960   :  { %3122 = vmatpush3.msra.mxu0 %v2813_v12 }
 0xa01   :  { %v2734_v39 = vpop.f32.mrf.mxu0  ;;  %v2775_v14 = vpop.f32.mrf.mxu1 }
 0xa02   :  { %v2735_v13 = vadd.f32 %v2734_v39, %v6315_v47  ;;  %v2776_v51 = vadd.f32 %v2775_v14, %v6318_v49 }
 0xa03   :  { %v2736_v38 = vpop.f32.mrf.mxu0  ;;  %v2777_v8 = vpop.f32.mrf.mxu1 }
 0xa04   :  { %v3070_v57 = vmul.f32 -1.442695, %v2735_v13  ;;  %v2737_v22 = vadd.f32 %v2736_v38, %v6316_v36  ;;  %v2778_v2 = vadd.f32 %v2777_v8, %v6317_v52 }
 0xa05   :  { %v2738_v20 = vpop.f32.mrf.mxu0  ;;  %v2779_v61 = vpop.f32.mrf.mxu1 }
 0xa06   :  { %3526 = vpow2.f32 %v3070_v57  ;;  %v3071_v37 = vmul.f32 -1.442695, %v2737_v22  ;;  %v3072_v6 = vmul.f32 -1.442695, %v2778_v2 }
 0xa07   :  { %v2739_v24 = vpop.f32.mrf.mxu0  ;;  %v2780_v9 = vpop.f32.mrf.mxu1 }
 0xa08   :  { %3528 = vpow2.f32 %v3071_v37 }
 0xa09   :  { %3530 = vpow2.f32 %v3072_v6 }
 0xa13   :  { %v3527_v59 = vpop.eup %3526 }
 0xa14   :  { %v2785_v58 = vadd.f32 1.0, %v3527_v59 }
 0xa15   :  { %v3529_v47 = vpop.eup %3528 }
 0xa16   :  { %3532 = vrcp.f32 %v2785_v58  ;;  %v2791_v31 = vadd.f32 1.0, %v3529_v47  ;;  %v3531_v36 = vpop.eup %3530 }
 0xa17   :  { %3534 = vtanh.f32 %v2776_v51  ;;  %v2798_v63 = vadd.f32 1.0, %v3531_v36 }
 0xa18   :  { %3536 = vrcp.f32 %v2791_v31 }
 0xa19   :  { %3538 = vrcp.f32 %v2798_v63 }
 0xa23   :  { %v3533_v5 = vpop.eup %3532 }
 0xa24   :  { %v3535_v23 = vpop.eup %3534 }
 0xa25   :  { %v3537_v21 = vpop.eup %3536  ;;  %v2802_v17 = vmul.f32 %v3535_v23, %v3533_v5 }
 0xa26   :  { %v2801_v30 = vmul.f32 %v3537_v21, %v5506_v42  ;;  %v3539_v49 = vpop.eup %3538 }
 0xa28   :  { %v2803_v52 = vadd.f32 %v2802_v17, %v2801_v30 }
 0xa2a   :  { %2809 = vst [vmem:[#allocation5] sm:$0x3] %v2803_v52  ;;  %3540 = vtanh.f32 %v2803_v52 }
 0xa37   :  { %v3541_v60 = vpop.eup %3540 }
 0xa38   :  { %v2805_v0 = vmul.f32 %v3541_v60, %v3539_v49 }
 0xa3a   :  { %2808 = vst [vmem:[#allocation4] sm:$0x3] %v2805_v0  ;;  %3124 = vmatmul.mubr.f32.vlgmr.msra.gmra.mxu0 %v2805_v0 }
 0xafa   :  { %v2902_v35 = vpop.f32.mrf.mxu0 }
 0xafb   :  { %v2903_v25 = vadd.f32 %v3073_v28, %v2902_v35 }
 0xafc   :  { %v3125_v18 = vpop.f32.mrf.mxu0 }
 0xafd   :  { %2906 = vst [vmem:[#allocation17] sm:$0x3] %v2903_v25 }
 0xafe   :  { %3865 = shalt.err (!%p3862_p6)
}
 0xaff   :  { %2916 = dma.vmem_to_hbm [thread:$0]  %s2914_s17, 32, %s5547_s8, [#allocation8]  }
 0xb00   :  { %3882 = dma.done.wait [#allocation8], 32  }
 0xb01   :  { %3883 = vsyncadd [#allocation8], 4294967264 }
 0xb02   :  { %2920 = vsyncpa [#allocation7], 1 }
 0xb03   :  { %2921 = vsyncpa [#allocation10], 1 }
 0xb04   :  { %2922 = vsyncpa [#allocation13], 1 }
 0xb05   :  { %2923 = vsyncpa [#allocation16], 1 }
 0xb06   :  { %2924 = vsyncpa [#allocation8], 1 }

</bundles_post_ra>
